<compile_context>
chip_gen: v7x
topology: tpu7x:2x2x1
jax: 0.10.0
libtpu: 0.0.40
codegen_flags: <defaults>
</compile_context>

<pallas_src>
import jax
import jax.numpy as jnp
from jax.experimental import pallas as pl
from jax.experimental.pallas import tpu as pltpu

INPUT_SIZE = 50
HIDDEN_SIZE = 120
OUTPUT_SIZE = 2
NUM_LAYERS = 3

# lane/sublane-aligned padded sizes
D_PAD = 128     # padded input feature dim
H_PAD = 128     # padded hidden dim (4*H_PAD = 512 fused-gate lanes)
OUT_PAD = 128   # padded linear output dim
B_SUB = 8       # batch padded to a multiple of the sublane count

# Gate order (PyTorch): i, f, g, o.  i/f/o columns pre-scaled by 0.5 so a single
# tanh produces every activation: sigmoid(x) = 0.5*tanh(x/2) + 0.5.
GATE_PRESCALE = (0.5, 0.5, 1.0, 0.5)


# ---------------------------------------------------------------------------
# Fused kernel factory: whole network in one grid-less pallas_call.
# x_ref: (T*Bp, D_PAD) bf16, time-major rows grouped per timestep.
# Per layer: wih (Din_pad, 4*H_PAD) bf16, whh (H_PAD, 4*H_PAD) bf16,
#            bias (1, 4*H_PAD) f32 (gate columns in order [i|f|g|o]).
# ---------------------------------------------------------------------------
def _make_net_kernel(T, Bp):
    Hp = H_PAD

    def net_kernel(x_ref,
                   wih0, whh0, b0,
                   wih1, whh1, b1,
                   wih2, whh2, b2,
                   wlin, blin,
                   out_ref,
                   gates_ref, seq0_ref, seq1_ref):

        def run_layer(inp_2d_bf16, wih_ref, whh_ref, b_ref, seq_out_ref):
            # (1) Input path for ALL timesteps in one batched MXU matmul;
            #     bias added once here (never inside the time loop).
            gates_ref[...] = (
                jnp.dot(inp_2d_bf16, wih_ref[...],
                        preferred_element_type=jnp.float32)
                + b_ref[...])

            # (2) Recurrence: only h @ Whh + elementwise on the critical path.
            def step(t, carry):
                h, c = carry
                row = pl.multiple_of(t * Bp, B_SUB)
                g = gates_ref[pl.ds(row, Bp), :] + jnp.dot(
                    h.astype(jnp.bfloat16), whh_ref[...],
                    preferred_element_type=jnp.float32)
                tg = jnp.tanh(g)      # one EUP pass covers all four gate blocks
                i_g = 0.5 * tg[:, 0 * Hp:1 * Hp] + 0.5
                f_g = 0.5 * tg[:, 1 * Hp:2 * Hp] + 0.5
                g_g = tg[:, 2 * Hp:3 * Hp]
                o_g = 0.5 * tg[:, 3 * Hp:4 * Hp] + 0.5
                c = f_g * c + i_g * g_g
                h = o_g * jnp.tanh(c)
                if seq_out_ref is not None:
                    seq_out_ref[pl.ds(row, Bp), :] = h
                return (h, c)

            zeros = jnp.zeros((Bp, Hp), jnp.float32)
            h_last, _ = jax.lax.fori_loop(
                0, T, step, (zeros, zeros),
                unroll=(True if T <= 8 else 4))
            return h_last

        # Layer stack; intermediate sequences stay in VMEM scratch.
        run_layer(x_ref[...], wih0, whh0, b0, seq0_ref)
        run_layer(seq0_ref[...].astype(jnp.bfloat16), wih1, whh1, b1, seq1_ref)
        h_top = run_layer(seq1_ref[...].astype(jnp.bfloat16), wih2, whh2, b2, None)

        # Fused final Linear (lane-dense 128-wide output; sliced in wrapper).
        out_ref[...] = (jnp.dot(h_top, wlin[...],
                                preferred_element_type=jnp.float32)
                        + blin[...])

    return net_kernel


def net_forward(packed_params, x_btd):
    """x_btd: [B, T, D] (batch_first, like the PyTorch module) -> [B, OUTPUT_SIZE]."""
    B, T, D = x_btd.shape
    Bp = ((B + B_SUB - 1) // B_SUB) * B_SUB

    # Layout plumbing (single fused XLA pass): time-major, zero-pad batch +
    # feature dims, flatten to (T*Bp, D_PAD), bf16 for the MXU input path.
    x = jnp.transpose(x_btd, (1, 0, 2))                          # (T, B, D)
    x = jnp.pad(x, ((0, 0), (0, Bp - B), (0, D_PAD - D)))
    x = x.reshape(T * Bp, D_PAD).astype(jnp.bfloat16)

    kernel = _make_net_kernel(T, Bp)
    out_pad = pl.pallas_call(
        kernel,
        out_shape=jax.ShapeDtypeStruct((Bp, OUT_PAD), jnp.float32),
        scratch_shapes=[
            pltpu.VMEM((T * Bp, 4 * H_PAD), jnp.float32),  # per-layer gate slab
            pltpu.VMEM((T * Bp, H_PAD), jnp.float32),      # layer-0 output seq
            pltpu.VMEM((T * Bp, H_PAD), jnp.float32),      # layer-1 output seq
        ],
    )(x, *packed_params)
    return out_pad[:B, :OUTPUT_SIZE]


# ---------------------------------------------------------------------------
# Parameter init (PyTorch layout / uniform(-1/sqrt(H), 1/sqrt(H))) and
# conversion to the fused, zero-padded, gate-prescaled kernel layout.
# ---------------------------------------------------------------------------
def init_params(key):
    bound = 1.0 / (HIDDEN_SIZE ** 0.5)
    raw = {"lstm": []}
    for layer in range(NUM_LAYERS):
        din = INPUT_SIZE if layer == 0 else HIDDEN_SIZE
        key, k1, k2, k3, k4 = jax.random.split(key, 5)
        w_ih = jax.random.uniform(k1, (4 * HIDDEN_SIZE, din), jnp.float32, -bound, bound)
        w_hh = jax.random.uniform(k2, (4 * HIDDEN_SIZE, HIDDEN_SIZE), jnp.float32, -bound, bound)
        b_ih = jax.random.uniform(k3, (4 * HIDDEN_SIZE,), jnp.float32, -bound, bound)
        b_hh = jax.random.uniform(k4, (4 * HIDDEN_SIZE,), jnp.float32, -bound, bound)
        raw["lstm"].append((w_ih, w_hh, b_ih, b_hh))
    key, k5, k6 = jax.random.split(key, 3)
    w_lin = jax.random.uniform(k5, (OUTPUT_SIZE, HIDDEN_SIZE), jnp.float32, -bound, bound)
    b_lin = jax.random.uniform(k6, (OUTPUT_SIZE,), jnp.float32, -bound, bound)
    raw["linear"] = (w_lin, b_lin)
    return raw


def pack_params(raw):
    """Torch-layout params -> fused, 128-lane zero-padded, bf16, 0.5-prescaled layout."""
    H, Hp = HIDDEN_SIZE, H_PAD
    scale = jnp.asarray(GATE_PRESCALE, jnp.float32)     # [i, f, g, o]
    packed = []
    for layer, (w_ih, w_hh, b_ih, b_hh) in enumerate(raw["lstm"]):
        din = w_ih.shape[1]
        din_pad = D_PAD if layer == 0 else Hp
        # (4H, din) -> (din, 4, H) -> prescale i/f/o -> zero-pad -> (din_pad, 4*Hp)
        wih = jnp.transpose(w_ih.reshape(4, H, din), (2, 0, 1)) * scale[None, :, None]
        wih = jnp.pad(wih, ((0, din_pad - din), (0, 0), (0, Hp - H)))
        packed.append(wih.reshape(din_pad, 4 * Hp).astype(jnp.bfloat16))
        whh = jnp.transpose(w_hh.reshape(4, H, H), (2, 0, 1)) * scale[None, :, None]
        whh = jnp.pad(whh, ((0, Hp - H), (0, 0), (0, Hp - H)))
        packed.append(whh.reshape(Hp, 4 * Hp).astype(jnp.bfloat16))
        b = (b_ih + b_hh).reshape(4, H) * scale[:, None]
        b = jnp.pad(b, ((0, 0), (0, Hp - H)))
        packed.append(b.reshape(1, 4 * Hp))              # f32 bias
    w_lin, b_lin = raw["linear"]
    wl = jnp.pad(jnp.transpose(w_lin), ((0, Hp - H), (0, OUT_PAD - OUTPUT_SIZE)))
    bl = jnp.pad(b_lin.reshape(1, OUTPUT_SIZE), ((0, 0), (0, OUT_PAD - OUTPUT_SIZE)))
    packed += [wl, bl]                                   # f32 linear head
    return packed


# ---------------------------------------------------------------------------
# Pure-JAX f32 reference on the raw (torch-layout) params for correctness check.
# ---------------------------------------------------------------------------
def net_reference(raw, x_btd):
    B, T, _ = x_btd.shape
    H = HIDDEN_SIZE
    layer_in = x_btd
    for (w_ih, w_hh, b_ih, b_hh) in raw["lstm"]:
        h = jnp.zeros((B, H), jnp.float32)
        c = jnp.zeros((B, H), jnp.float32)
        outs = []
        for t in range(T):
            g = layer_in[:, t, :] @ w_ih.T + h @ w_hh.T + b_ih + b_hh
            i_g = jax.nn.sigmoid(g[:, 0 * H:1 * H])
            f_g = jax.nn.sigmoid(g[:, 1 * H:2 * H])
            g_g = jnp.tanh(g[:, 2 * H:3 * H])
            o_g = jax.nn.sigmoid(g[:, 3 * H:4 * H])
            c = f_g * c + i_g * g_g
            h = o_g * jnp.tanh(c)
            outs.append(h)
        layer_in = jnp.stack(outs, axis=1)
    w_lin, b_lin = raw["linear"]
    return layer_in[:, -1, :] @ w_lin.T + b_lin


if __name__ == "__main__":
    key = jax.random.PRNGKey(0)
    key, pkey, xkey = jax.random.split(key, 3)

    raw_params = init_params(pkey)
    packed_params = pack_params(raw_params)

    B, T = 2, 8
    x = jax.random.normal(xkey, (B, T, INPUT_SIZE), dtype=jnp.float32)

    out = jax.block_until_ready(net_forward(packed_params, x))
    assert out.shape == (B, OUTPUT_SIZE), out.shape

    ref = net_reference(raw_params, x)
    # Tolerance accounts for bf16 weight slabs / bf16 matmul LHS (f32 accumulation).
    assert jnp.allclose(out, ref, atol=2e-2, rtol=2e-2), \
        float(jnp.max(jnp.abs(out - ref)))

    print("KERNEL_OK")
</pallas_src>

<mosaic_0001>
module attributes {stable_mosaic.version = 11 : i64} {
  func.func @net_kernel(%arg0: memref<64x128xbf16, #tpu.memory_space<vmem>>, %arg1: memref<128x512xbf16, #tpu.memory_space<vmem>>, %arg2: memref<128x512xbf16, #tpu.memory_space<vmem>>, %arg3: memref<1x512xf32, #tpu.memory_space<vmem>>, %arg4: memref<128x512xbf16, #tpu.memory_space<vmem>>, %arg5: memref<128x512xbf16, #tpu.memory_space<vmem>>, %arg6: memref<1x512xf32, #tpu.memory_space<vmem>>, %arg7: memref<128x512xbf16, #tpu.memory_space<vmem>>, %arg8: memref<128x512xbf16, #tpu.memory_space<vmem>>, %arg9: memref<1x512xf32, #tpu.memory_space<vmem>>, %arg10: memref<128x128xf32, #tpu.memory_space<vmem>>, %arg11: memref<1x128xf32, #tpu.memory_space<vmem>>, %arg12: memref<8x128xf32, #tpu.memory_space<vmem>>, %arg13: memref<64x512xf32, #tpu.memory_space<vmem>>, %arg14: memref<64x128xf32, #tpu.memory_space<vmem>>, %arg15: memref<64x128xf32, #tpu.memory_space<vmem>>) attributes {dimension_semantics = [], scalar_prefetch = 0 : i64, scratch_operands = 3 : i64, tpu.core_type = #tpu.core_type<tc>} {
    %c0 = arith.constant 0 : index
    %c0_0 = arith.constant 0 : index
    %0 = vector.load %arg0[%c0, %c0_0] : memref<64x128xbf16, #tpu.memory_space<vmem>>, vector<64x128xbf16>
    %c0_1 = arith.constant 0 : index
    %c0_2 = arith.constant 0 : index
    %1 = vector.load %arg1[%c0_1, %c0_2] : memref<128x512xbf16, #tpu.memory_space<vmem>>, vector<128x512xbf16>
    %cst = arith.constant dense<0.000000e+00> : vector<64x512xf32>
    %2 = tpu.matmul %0, %1, %cst {dimension_numbers = #tpu.dot_dimension_numbers<[1], [0], [0], [1], [0, 0, 1, 1], [], []>} : vector<64x128xbf16>, vector<128x512xbf16>, vector<64x512xf32> -> vector<64x512xf32>
    %c0_3 = arith.constant 0 : index
    %c0_4 = arith.constant 0 : index
    %3 = vector.load %arg3[%c0_3, %c0_4] : memref<1x512xf32, #tpu.memory_space<vmem>>, vector<1x512xf32>
    %4 = vector.broadcast %3 : vector<1x512xf32> to vector<64x512xf32>
    %5 = arith.addf %2, %4 : vector<64x512xf32>
    %c0_5 = arith.constant 0 : index
    %c0_6 = arith.constant 0 : index
    %6 = vector.load %arg13[%c0_5, %c0_6] : memref<64x512xf32, #tpu.memory_space<vmem>>, vector<64x512xf32>
    tpu.vector_store %arg13[%c0_5, %c0_6], %5 {strides = array<i32>} : memref<64x512xf32, #tpu.memory_space<vmem>>, vector<64x512xf32>,
    %cst_7 = arith.constant 0.000000e+00 : f32
    %7 = vector.broadcast %cst_7 : f32 to vector<8x128xf32>
    %c0_i32 = arith.constant 0 : i32
    %c8_i32 = arith.constant 8 : i32
    %8 = arith.muli %c0_i32, %c8_i32 : i32
    %9 = tpu.assume_multiple %8, 8 : i32
    %10 = arith.index_cast %9 : i32 to index
    %c0_8 = arith.constant 0 : index
    %11 = vector.load %arg13[%10, %c0_8] : memref<64x512xf32, #tpu.memory_space<vmem>>, vector<8x512xf32>
    %12 = arith.truncf %7 : vector<8x128xf32> to vector<8x128xbf16>
    %c0_9 = arith.constant 0 : index
    %c0_10 = arith.constant 0 : index
    %13 = vector.load %arg2[%c0_9, %c0_10] : memref<128x512xbf16, #tpu.memory_space<vmem>>, vector<128x512xbf16>
    %cst_11 = arith.constant dense<0.000000e+00> : vector<8x512xf32>
    %14 = tpu.matmul %12, %13, %cst_11 {dimension_numbers = #tpu.dot_dimension_numbers<[1], [0], [0], [1], [0, 0, 1, 1], [], []>} : vector<8x128xbf16>, vector<128x512xbf16>, vector<8x512xf32> -> vector<8x512xf32>
    %15 = arith.addf %11, %14 : vector<8x512xf32>
    %16 = math.tanh %15 : vector<8x512xf32>
    %17 = vector.extract_strided_slice %16 {offsets = [0, 0], sizes = [8, 128], strides = [1, 1]} : vector<8x512xf32> to vector<8x128xf32>
    %cst_12 = arith.constant 5.000000e-01 : f32
    %18 = vector.broadcast %cst_12 : f32 to vector<8x128xf32>
    %19 = arith.mulf %18, %17 : vector<8x128xf32>
    %cst_13 = arith.constant 5.000000e-01 : f32
    %20 = vector.broadcast %cst_13 : f32 to vector<8x128xf32>
    %21 = arith.addf %19, %20 : vector<8x128xf32>
    %22 = vector.extract_strided_slice %16 {offsets = [0, 128], sizes = [8, 128], strides = [1, 1]} : vector<8x512xf32> to vector<8x128xf32>
    %cst_14 = arith.constant 5.000000e-01 : f32
    %23 = vector.broadcast %cst_14 : f32 to vector<8x128xf32>
    %24 = arith.mulf %23, %22 : vector<8x128xf32>
    %cst_15 = arith.constant 5.000000e-01 : f32
    %25 = vector.broadcast %cst_15 : f32 to vector<8x128xf32>
    %26 = arith.addf %24, %25 : vector<8x128xf32>
    %27 = vector.extract_strided_slice %16 {offsets = [0, 256], sizes = [8, 128], strides = [1, 1]} : vector<8x512xf32> to vector<8x128xf32>
    %28 = vector.extract_strided_slice %16 {offsets = [0, 384], sizes = [8, 128], strides = [1, 1]} : vector<8x512xf32> to vector<8x128xf32>
    %cst_16 = arith.constant 5.000000e-01 : f32
    %29 = vector.broadcast %cst_16 : f32 to vector<8x128xf32>
    %30 = arith.mulf %29, %28 : vector<8x128xf32>
    %cst_17 = arith.constant 5.000000e-01 : f32
    %31 = vector.broadcast %cst_17 : f32 to vector<8x128xf32>
    %32 = arith.addf %30, %31 : vector<8x128xf32>
    %33 = arith.mulf %26, %7 : vector<8x128xf32>
    %34 = arith.mulf %21, %27 : vector<8x128xf32>
    %35 = arith.addf %33, %34 : vector<8x128xf32>
    %36 = math.tanh %35 : vector<8x128xf32>
    %37 = arith.mulf %32, %36 : vector<8x128xf32>
    %38 = arith.index_cast %9 : i32 to index
    %c0_18 = arith.constant 0 : index
    %39 = vector.load %arg14[%38, %c0_18] : memref<64x128xf32, #tpu.memory_space<vmem>>, vector<8x128xf32>
    tpu.vector_store %arg14[%38, %c0_18], %37 {strides = array<i32>} : memref<64x128xf32, #tpu.memory_space<vmem>>, vector<8x128xf32>,
    %c1_i32 = arith.constant 1 : i32
    %c8_i32_19 = arith.constant 8 : i32
    %40 = arith.muli %c1_i32, %c8_i32_19 : i32
    %41 = tpu.assume_multiple %40, 8 : i32
    %42 = arith.index_cast %41 : i32 to index
    %c0_20 = arith.constant 0 : index
    %43 = vector.load %arg13[%42, %c0_20] : memref<64x512xf32, #tpu.memory_space<vmem>>, vector<8x512xf32>
    %44 = arith.truncf %37 : vector<8x128xf32> to vector<8x128xbf16>
    %c0_21 = arith.constant 0 : index
    %c0_22 = arith.constant 0 : index
    %45 = vector.load %arg2[%c0_21, %c0_22] : memref<128x512xbf16, #tpu.memory_space<vmem>>, vector<128x512xbf16>
    %cst_23 = arith.constant dense<0.000000e+00> : vector<8x512xf32>
    %46 = tpu.matmul %44, %45, %cst_23 {dimension_numbers = #tpu.dot_dimension_numbers<[1], [0], [0], [1], [0, 0, 1, 1], [], []>} : vector<8x128xbf16>, vector<128x512xbf16>, vector<8x512xf32> -> vector<8x512xf32>
    %47 = arith.addf %43, %46 : vector<8x512xf32>
    %48 = math.tanh %47 : vector<8x512xf32>
    %49 = vector.extract_strided_slice %48 {offsets = [0, 0], sizes = [8, 128], strides = [1, 1]} : vector<8x512xf32> to vector<8x128xf32>
    %cst_24 = arith.constant 5.000000e-01 : f32
    %50 = vector.broadcast %cst_24 : f32 to vector<8x128xf32>
    %51 = arith.mulf %50, %49 : vector<8x128xf32>
    %cst_25 = arith.constant 5.000000e-01 : f32
    %52 = vector.broadcast %cst_25 : f32 to vector<8x128xf32>
    %53 = arith.addf %51, %52 : vector<8x128xf32>
    %54 = vector.extract_strided_slice %48 {offsets = [0, 128], sizes = [8, 128], strides = [1, 1]} : vector<8x512xf32> to vector<8x128xf32>
    %cst_26 = arith.constant 5.000000e-01 : f32
    %55 = vector.broadcast %cst_26 : f32 to vector<8x128xf32>
    %56 = arith.mulf %55, %54 : vector<8x128xf32>
    %cst_27 = arith.constant 5.000000e-01 : f32
    %57 = vector.broadcast %cst_27 : f32 to vector<8x128xf32>
    %58 = arith.addf %56, %57 : vector<8x128xf32>
    %59 = vector.extract_strided_slice %48 {offsets = [0, 256], sizes = [8, 128], strides = [1, 1]} : vector<8x512xf32> to vector<8x128xf32>
    %60 = vector.extract_strided_slice %48 {offsets = [0, 384], sizes = [8, 128], strides = [1, 1]} : vector<8x512xf32> to vector<8x128xf32>
    %cst_28 = arith.constant 5.000000e-01 : f32
    %61 = vector.broadcast %cst_28 : f32 to vector<8x128xf32>
    %62 = arith.mulf %61, %60 : vector<8x128xf32>
    %cst_29 = arith.constant 5.000000e-01 : f32
    %63 = vector.broadcast %cst_29 : f32 to vector<8x128xf32>
    %64 = arith.addf %62, %63 : vector<8x128xf32>
    %65 = arith.mulf %58, %35 : vector<8x128xf32>
    %66 = arith.mulf %53, %59 : vector<8x128xf32>
    %67 = arith.addf %65, %66 : vector<8x128xf32>
    %68 = math.tanh %67 : vector<8x128xf32>
    %69 = arith.mulf %64, %68 : vector<8x128xf32>
    %70 = arith.index_cast %41 : i32 to index
    %c0_30 = arith.constant 0 : index
    %71 = vector.load %arg14[%70, %c0_30] : memref<64x128xf32, #tpu.memory_space<vmem>>, vector<8x128xf32>
    tpu.vector_store %arg14[%70, %c0_30], %69 {strides = array<i32>} : memref<64x128xf32, #tpu.memory_space<vmem>>, vector<8x128xf32>,
    %c2_i32 = arith.constant 2 : i32
    %c8_i32_31 = arith.constant 8 : i32
    %72 = arith.muli %c2_i32, %c8_i32_31 : i32
    %73 = tpu.assume_multiple %72, 8 : i32
    %74 = arith.index_cast %73 : i32 to index
    %c0_32 = arith.constant 0 : index
    %75 = vector.load %arg13[%74, %c0_32] : memref<64x512xf32, #tpu.memory_space<vmem>>, vector<8x512xf32>
    %76 = arith.truncf %69 : vector<8x128xf32> to vector<8x128xbf16>
    %c0_33 = arith.constant 0 : index
    %c0_34 = arith.constant 0 : index
    %77 = vector.load %arg2[%c0_33, %c0_34] : memref<128x512xbf16, #tpu.memory_space<vmem>>, vector<128x512xbf16>
    %cst_35 = arith.constant dense<0.000000e+00> : vector<8x512xf32>
    %78 = tpu.matmul %76, %77, %cst_35 {dimension_numbers = #tpu.dot_dimension_numbers<[1], [0], [0], [1], [0, 0, 1, 1], [], []>} : vector<8x128xbf16>, vector<128x512xbf16>, vector<8x512xf32> -> vector<8x512xf32>
    %79 = arith.addf %75, %78 : vector<8x512xf32>
    %80 = math.tanh %79 : vector<8x512xf32>
    %81 = vector.extract_strided_slice %80 {offsets = [0, 0], sizes = [8, 128], strides = [1, 1]} : vector<8x512xf32> to vector<8x128xf32>
    %cst_36 = arith.constant 5.000000e-01 : f32
    %82 = vector.broadcast %cst_36 : f32 to vector<8x128xf32>
    %83 = arith.mulf %82, %81 : vector<8x128xf32>
    %cst_37 = arith.constant 5.000000e-01 : f32
    %84 = vector.broadcast %cst_37 : f32 to vector<8x128xf32>
    %85 = arith.addf %83, %84 : vector<8x128xf32>
    %86 = vector.extract_strided_slice %80 {offsets = [0, 128], sizes = [8, 128], strides = [1, 1]} : vector<8x512xf32> to vector<8x128xf32>
    %cst_38 = arith.constant 5.000000e-01 : f32
    %87 = vector.broadcast %cst_38 : f32 to vector<8x128xf32>
    %88 = arith.mulf %87, %86 : vector<8x128xf32>
    %cst_39 = arith.constant 5.000000e-01 : f32
    %89 = vector.broadcast %cst_39 : f32 to vector<8x128xf32>
    %90 = arith.addf %88, %89 : vector<8x128xf32>
    %91 = vector.extract_strided_slice %80 {offsets = [0, 256], sizes = [8, 128], strides = [1, 1]} : vector<8x512xf32> to vector<8x128xf32>
    %92 = vector.extract_strided_slice %80 {offsets = [0, 384], sizes = [8, 128], strides = [1, 1]} : vector<8x512xf32> to vector<8x128xf32>
    %cst_40 = arith.constant 5.000000e-01 : f32
    %93 = vector.broadcast %cst_40 : f32 to vector<8x128xf32>
    %94 = arith.mulf %93, %92 : vector<8x128xf32>
    %cst_41 = arith.constant 5.000000e-01 : f32
    %95 = vector.broadcast %cst_41 : f32 to vector<8x128xf32>
    %96 = arith.addf %94, %95 : vector<8x128xf32>
    %97 = arith.mulf %90, %67 : vector<8x128xf32>
    %98 = arith.mulf %85, %91 : vector<8x128xf32>
    %99 = arith.addf %97, %98 : vector<8x128xf32>
    %100 = math.tanh %99 : vector<8x128xf32>
    %101 = arith.mulf %96, %100 : vector<8x128xf32>
    %102 = arith.index_cast %73 : i32 to index
    %c0_42 = arith.constant 0 : index
    %103 = vector.load %arg14[%102, %c0_42] : memref<64x128xf32, #tpu.memory_space<vmem>>, vector<8x128xf32>
    tpu.vector_store %arg14[%102, %c0_42], %101 {strides = array<i32>} : memref<64x128xf32, #tpu.memory_space<vmem>>, vector<8x128xf32>,
    %c3_i32 = arith.constant 3 : i32
    %c8_i32_43 = arith.constant 8 : i32
    %104 = arith.muli %c3_i32, %c8_i32_43 : i32
    %105 = tpu.assume_multiple %104, 8 : i32
    %106 = arith.index_cast %105 : i32 to index
    %c0_44 = arith.constant 0 : index
    %107 = vector.load %arg13[%106, %c0_44] : memref<64x512xf32, #tpu.memory_space<vmem>>, vector<8x512xf32>
    %108 = arith.truncf %101 : vector<8x128xf32> to vector<8x128xbf16>
    %c0_45 = arith.constant 0 : index
    %c0_46 = arith.constant 0 : index
    %109 = vector.load %arg2[%c0_45, %c0_46] : memref<128x512xbf16, #tpu.memory_space<vmem>>, vector<128x512xbf16>
    %cst_47 = arith.constant dense<0.000000e+00> : vector<8x512xf32>
    %110 = tpu.matmul %108, %109, %cst_47 {dimension_numbers = #tpu.dot_dimension_numbers<[1], [0], [0], [1], [0, 0, 1, 1], [], []>} : vector<8x128xbf16>, vector<128x512xbf16>, vector<8x512xf32> -> vector<8x512xf32>
    %111 = arith.addf %107, %110 : vector<8x512xf32>
    %112 = math.tanh %111 : vector<8x512xf32>
    %113 = vector.extract_strided_slice %112 {offsets = [0, 0], sizes = [8, 128], strides = [1, 1]} : vector<8x512xf32> to vector<8x128xf32>
    %cst_48 = arith.constant 5.000000e-01 : f32
    %114 = vector.broadcast %cst_48 : f32 to vector<8x128xf32>
    %115 = arith.mulf %114, %113 : vector<8x128xf32>
    %cst_49 = arith.constant 5.000000e-01 : f32
    %116 = vector.broadcast %cst_49 : f32 to vector<8x128xf32>
    %117 = arith.addf %115, %116 : vector<8x128xf32>
    %118 = vector.extract_strided_slice %112 {offsets = [0, 128], sizes = [8, 128], strides = [1, 1]} : vector<8x512xf32> to vector<8x128xf32>
    %cst_50 = arith.constant 5.000000e-01 : f32
    %119 = vector.broadcast %cst_50 : f32 to vector<8x128xf32>
    %120 = arith.mulf %119, %118 : vector<8x128xf32>
    %cst_51 = arith.constant 5.000000e-01 : f32
    %121 = vector.broadcast %cst_51 : f32 to vector<8x128xf32>
    %122 = arith.addf %120, %121 : vector<8x128xf32>
    %123 = vector.extract_strided_slice %112 {offsets = [0, 256], sizes = [8, 128], strides = [1, 1]} : vector<8x512xf32> to vector<8x128xf32>
    %124 = vector.extract_strided_slice %112 {offsets = [0, 384], sizes = [8, 128], strides = [1, 1]} : vector<8x512xf32> to vector<8x128xf32>
    %cst_52 = arith.constant 5.000000e-01 : f32
    %125 = vector.broadcast %cst_52 : f32 to vector<8x128xf32>
    %126 = arith.mulf %125, %124 : vector<8x128xf32>
    %cst_53 = arith.constant 5.000000e-01 : f32
    %127 = vector.broadcast %cst_53 : f32 to vector<8x128xf32>
    %128 = arith.addf %126, %127 : vector<8x128xf32>
    %129 = arith.mulf %122, %99 : vector<8x128xf32>
    %130 = arith.mulf %117, %123 : vector<8x128xf32>
    %131 = arith.addf %129, %130 : vector<8x128xf32>
    %132 = math.tanh %131 : vector<8x128xf32>
    %133 = arith.mulf %128, %132 : vector<8x128xf32>
    %134 = arith.index_cast %105 : i32 to index
    %c0_54 = arith.constant 0 : index
    %135 = vector.load %arg14[%134, %c0_54] : memref<64x128xf32, #tpu.memory_space<vmem>>, vector<8x128xf32>
    tpu.vector_store %arg14[%134, %c0_54], %133 {strides = array<i32>} : memref<64x128xf32, #tpu.memory_space<vmem>>, vector<8x128xf32>,
    %c4_i32 = arith.constant 4 : i32
    %c8_i32_55 = arith.constant 8 : i32
    %136 = arith.muli %c4_i32, %c8_i32_55 : i32
    %137 = tpu.assume_multiple %136, 8 : i32
    %138 = arith.index_cast %137 : i32 to index
    %c0_56 = arith.constant 0 : index
    %139 = vector.load %arg13[%138, %c0_56] : memref<64x512xf32, #tpu.memory_space<vmem>>, vector<8x512xf32>
    %140 = arith.truncf %133 : vector<8x128xf32> to vector<8x128xbf16>
    %c0_57 = arith.constant 0 : index
    %c0_58 = arith.constant 0 : index
    %141 = vector.load %arg2[%c0_57, %c0_58] : memref<128x512xbf16, #tpu.memory_space<vmem>>, vector<128x512xbf16>
    %cst_59 = arith.constant dense<0.000000e+00> : vector<8x512xf32>
    %142 = tpu.matmul %140, %141, %cst_59 {dimension_numbers = #tpu.dot_dimension_numbers<[1], [0], [0], [1], [0, 0, 1, 1], [], []>} : vector<8x128xbf16>, vector<128x512xbf16>, vector<8x512xf32> -> vector<8x512xf32>
    %143 = arith.addf %139, %142 : vector<8x512xf32>
    %144 = math.tanh %143 : vector<8x512xf32>
    %145 = vector.extract_strided_slice %144 {offsets = [0, 0], sizes = [8, 128], strides = [1, 1]} : vector<8x512xf32> to vector<8x128xf32>
    %cst_60 = arith.constant 5.000000e-01 : f32
    %146 = vector.broadcast %cst_60 : f32 to vector<8x128xf32>
    %147 = arith.mulf %146, %145 : vector<8x128xf32>
    %cst_61 = arith.constant 5.000000e-01 : f32
    %148 = vector.broadcast %cst_61 : f32 to vector<8x128xf32>
    %149 = arith.addf %147, %148 : vector<8x128xf32>
    %150 = vector.extract_strided_slice %144 {offsets = [0, 128], sizes = [8, 128], strides = [1, 1]} : vector<8x512xf32> to vector<8x128xf32>
    %cst_62 = arith.constant 5.000000e-01 : f32
    %151 = vector.broadcast %cst_62 : f32 to vector<8x128xf32>
    %152 = arith.mulf %151, %150 : vector<8x128xf32>
    %cst_63 = arith.constant 5.000000e-01 : f32
    %153 = vector.broadcast %cst_63 : f32 to vector<8x128xf32>
    %154 = arith.addf %152, %153 : vector<8x128xf32>
    %155 = vector.extract_strided_slice %144 {offsets = [0, 256], sizes = [8, 128], strides = [1, 1]} : vector<8x512xf32> to vector<8x128xf32>
    %156 = vector.extract_strided_slice %144 {offsets = [0, 384], sizes = [8, 128], strides = [1, 1]} : vector<8x512xf32> to vector<8x128xf32>
    %cst_64 = arith.constant 5.000000e-01 : f32
    %157 = vector.broadcast %cst_64 : f32 to vector<8x128xf32>
    %158 = arith.mulf %157, %156 : vector<8x128xf32>
    %cst_65 = arith.constant 5.000000e-01 : f32
    %159 = vector.broadcast %cst_65 : f32 to vector<8x128xf32>
    %160 = arith.addf %158, %159 : vector<8x128xf32>
    %161 = arith.mulf %154, %131 : vector<8x128xf32>
    %162 = arith.mulf %149, %155 : vector<8x128xf32>
    %163 = arith.addf %161, %162 : vector<8x128xf32>
    %164 = math.tanh %163 : vector<8x128xf32>
    %165 = arith.mulf %160, %164 : vector<8x128xf32>
    %166 = arith.index_cast %137 : i32 to index
    %c0_66 = arith.constant 0 : index
    %167 = vector.load %arg14[%166, %c0_66] : memref<64x128xf32, #tpu.memory_space<vmem>>, vector<8x128xf32>
    tpu.vector_store %arg14[%166, %c0_66], %165 {strides = array<i32>} : memref<64x128xf32, #tpu.memory_space<vmem>>, vector<8x128xf32>,
    %c5_i32 = arith.constant 5 : i32
    %c8_i32_67 = arith.constant 8 : i32
    %168 = arith.muli %c5_i32, %c8_i32_67 : i32
    %169 = tpu.assume_multiple %168, 8 : i32
    %170 = arith.index_cast %169 : i32 to index
    %c0_68 = arith.constant 0 : index
    %171 = vector.load %arg13[%170, %c0_68] : memref<64x512xf32, #tpu.memory_space<vmem>>, vector<8x512xf32>
    %172 = arith.truncf %165 : vector<8x128xf32> to vector<8x128xbf16>
    %c0_69 = arith.constant 0 : index
    %c0_70 = arith.constant 0 : index
    %173 = vector.load %arg2[%c0_69, %c0_70] : memref<128x512xbf16, #tpu.memory_space<vmem>>, vector<128x512xbf16>
    %cst_71 = arith.constant dense<0.000000e+00> : vector<8x512xf32>
    %174 = tpu.matmul %172, %173, %cst_71 {dimension_numbers = #tpu.dot_dimension_numbers<[1], [0], [0], [1], [0, 0, 1, 1], [], []>} : vector<8x128xbf16>, vector<128x512xbf16>, vector<8x512xf32> -> vector<8x512xf32>
    %175 = arith.addf %171, %174 : vector<8x512xf32>
    %176 = math.tanh %175 : vector<8x512xf32>
    %177 = vector.extract_strided_slice %176 {offsets = [0, 0], sizes = [8, 128], strides = [1, 1]} : vector<8x512xf32> to vector<8x128xf32>
    %cst_72 = arith.constant 5.000000e-01 : f32
    %178 = vector.broadcast %cst_72 : f32 to vector<8x128xf32>
    %179 = arith.mulf %178, %177 : vector<8x128xf32>
    %cst_73 = arith.constant 5.000000e-01 : f32
    %180 = vector.broadcast %cst_73 : f32 to vector<8x128xf32>
    %181 = arith.addf %179, %180 : vector<8x128xf32>
    %182 = vector.extract_strided_slice %176 {offsets = [0, 128], sizes = [8, 128], strides = [1, 1]} : vector<8x512xf32> to vector<8x128xf32>
    %cst_74 = arith.constant 5.000000e-01 : f32
    %183 = vector.broadcast %cst_74 : f32 to vector<8x128xf32>
    %184 = arith.mulf %183, %182 : vector<8x128xf32>
    %cst_75 = arith.constant 5.000000e-01 : f32
    %185 = vector.broadcast %cst_75 : f32 to vector<8x128xf32>
    %186 = arith.addf %184, %185 : vector<8x128xf32>
    %187 = vector.extract_strided_slice %176 {offsets = [0, 256], sizes = [8, 128], strides = [1, 1]} : vector<8x512xf32> to vector<8x128xf32>
    %188 = vector.extract_strided_slice %176 {offsets = [0, 384], sizes = [8, 128], strides = [1, 1]} : vector<8x512xf32> to vector<8x128xf32>
    %cst_76 = arith.constant 5.000000e-01 : f32
    %189 = vector.broadcast %cst_76 : f32 to vector<8x128xf32>
    %190 = arith.mulf %189, %188 : vector<8x128xf32>
    %cst_77 = arith.constant 5.000000e-01 : f32
    %191 = vector.broadcast %cst_77 : f32 to vector<8x128xf32>
    %192 = arith.addf %190, %191 : vector<8x128xf32>
    %193 = arith.mulf %186, %163 : vector<8x128xf32>
    %194 = arith.mulf %181, %187 : vector<8x128xf32>
    %195 = arith.addf %193, %194 : vector<8x128xf32>
    %196 = math.tanh %195 : vector<8x128xf32>
    %197 = arith.mulf %192, %196 : vector<8x128xf32>
    %198 = arith.index_cast %169 : i32 to index
    %c0_78 = arith.constant 0 : index
    %199 = vector.load %arg14[%198, %c0_78] : memref<64x128xf32, #tpu.memory_space<vmem>>, vector<8x128xf32>
    tpu.vector_store %arg14[%198, %c0_78], %197 {strides = array<i32>} : memref<64x128xf32, #tpu.memory_space<vmem>>, vector<8x128xf32>,
    %c6_i32 = arith.constant 6 : i32
    %c8_i32_79 = arith.constant 8 : i32
    %200 = arith.muli %c6_i32, %c8_i32_79 : i32
    %201 = tpu.assume_multiple %200, 8 : i32
    %202 = arith.index_cast %201 : i32 to index
    %c0_80 = arith.constant 0 : index
    %203 = vector.load %arg13[%202, %c0_80] : memref<64x512xf32, #tpu.memory_space<vmem>>, vector<8x512xf32>
    %204 = arith.truncf %197 : vector<8x128xf32> to vector<8x128xbf16>
    %c0_81 = arith.constant 0 : index
    %c0_82 = arith.constant 0 : index
    %205 = vector.load %arg2[%c0_81, %c0_82] : memref<128x512xbf16, #tpu.memory_space<vmem>>, vector<128x512xbf16>
    %cst_83 = arith.constant dense<0.000000e+00> : vector<8x512xf32>
    %206 = tpu.matmul %204, %205, %cst_83 {dimension_numbers = #tpu.dot_dimension_numbers<[1], [0], [0], [1], [0, 0, 1, 1], [], []>} : vector<8x128xbf16>, vector<128x512xbf16>, vector<8x512xf32> -> vector<8x512xf32>
    %207 = arith.addf %203, %206 : vector<8x512xf32>
    %208 = math.tanh %207 : vector<8x512xf32>
    %209 = vector.extract_strided_slice %208 {offsets = [0, 0], sizes = [8, 128], strides = [1, 1]} : vector<8x512xf32> to vector<8x128xf32>
    %cst_84 = arith.constant 5.000000e-01 : f32
    %210 = vector.broadcast %cst_84 : f32 to vector<8x128xf32>
    %211 = arith.mulf %210, %209 : vector<8x128xf32>
    %cst_85 = arith.constant 5.000000e-01 : f32
    %212 = vector.broadcast %cst_85 : f32 to vector<8x128xf32>
    %213 = arith.addf %211, %212 : vector<8x128xf32>
    %214 = vector.extract_strided_slice %208 {offsets = [0, 128], sizes = [8, 128], strides = [1, 1]} : vector<8x512xf32> to vector<8x128xf32>
    %cst_86 = arith.constant 5.000000e-01 : f32
    %215 = vector.broadcast %cst_86 : f32 to vector<8x128xf32>
    %216 = arith.mulf %215, %214 : vector<8x128xf32>
    %cst_87 = arith.constant 5.000000e-01 : f32
    %217 = vector.broadcast %cst_87 : f32 to vector<8x128xf32>
    %218 = arith.addf %216, %217 : vector<8x128xf32>
    %219 = vector.extract_strided_slice %208 {offsets = [0, 256], sizes = [8, 128], strides = [1, 1]} : vector<8x512xf32> to vector<8x128xf32>
    %220 = vector.extract_strided_slice %208 {offsets = [0, 384], sizes = [8, 128], strides = [1, 1]} : vector<8x512xf32> to vector<8x128xf32>
    %cst_88 = arith.constant 5.000000e-01 : f32
    %221 = vector.broadcast %cst_88 : f32 to vector<8x128xf32>
    %222 = arith.mulf %221, %220 : vector<8x128xf32>
    %cst_89 = arith.constant 5.000000e-01 : f32
    %223 = vector.broadcast %cst_89 : f32 to vector<8x128xf32>
    %224 = arith.addf %222, %223 : vector<8x128xf32>
    %225 = arith.mulf %218, %195 : vector<8x128xf32>
    %226 = arith.mulf %213, %219 : vector<8x128xf32>
    %227 = arith.addf %225, %226 : vector<8x128xf32>
    %228 = math.tanh %227 : vector<8x128xf32>
    %229 = arith.mulf %224, %228 : vector<8x128xf32>
    %230 = arith.index_cast %201 : i32 to index
    %c0_90 = arith.constant 0 : index
    %231 = vector.load %arg14[%230, %c0_90] : memref<64x128xf32, #tpu.memory_space<vmem>>, vector<8x128xf32>
    tpu.vector_store %arg14[%230, %c0_90], %229 {strides = array<i32>} : memref<64x128xf32, #tpu.memory_space<vmem>>, vector<8x128xf32>,
    %c7_i32 = arith.constant 7 : i32
    %c8_i32_91 = arith.constant 8 : i32
    %232 = arith.muli %c7_i32, %c8_i32_91 : i32
    %233 = tpu.assume_multiple %232, 8 : i32
    %234 = arith.index_cast %233 : i32 to index
    %c0_92 = arith.constant 0 : index
    %235 = vector.load %arg13[%234, %c0_92] : memref<64x512xf32, #tpu.memory_space<vmem>>, vector<8x512xf32>
    %236 = arith.truncf %229 : vector<8x128xf32> to vector<8x128xbf16>
    %c0_93 = arith.constant 0 : index
    %c0_94 = arith.constant 0 : index
    %237 = vector.load %arg2[%c0_93, %c0_94] : memref<128x512xbf16, #tpu.memory_space<vmem>>, vector<128x512xbf16>
    %cst_95 = arith.constant dense<0.000000e+00> : vector<8x512xf32>
    %238 = tpu.matmul %236, %237, %cst_95 {dimension_numbers = #tpu.dot_dimension_numbers<[1], [0], [0], [1], [0, 0, 1, 1], [], []>} : vector<8x128xbf16>, vector<128x512xbf16>, vector<8x512xf32> -> vector<8x512xf32>
    %239 = arith.addf %235, %238 : vector<8x512xf32>
    %240 = math.tanh %239 : vector<8x512xf32>
    %241 = vector.extract_strided_slice %240 {offsets = [0, 0], sizes = [8, 128], strides = [1, 1]} : vector<8x512xf32> to vector<8x128xf32>
    %cst_96 = arith.constant 5.000000e-01 : f32
    %242 = vector.broadcast %cst_96 : f32 to vector<8x128xf32>
    %243 = arith.mulf %242, %241 : vector<8x128xf32>
    %cst_97 = arith.constant 5.000000e-01 : f32
    %244 = vector.broadcast %cst_97 : f32 to vector<8x128xf32>
    %245 = arith.addf %243, %244 : vector<8x128xf32>
    %246 = vector.extract_strided_slice %240 {offsets = [0, 128], sizes = [8, 128], strides = [1, 1]} : vector<8x512xf32> to vector<8x128xf32>
    %cst_98 = arith.constant 5.000000e-01 : f32
    %247 = vector.broadcast %cst_98 : f32 to vector<8x128xf32>
    %248 = arith.mulf %247, %246 : vector<8x128xf32>
    %cst_99 = arith.constant 5.000000e-01 : f32
    %249 = vector.broadcast %cst_99 : f32 to vector<8x128xf32>
    %250 = arith.addf %248, %249 : vector<8x128xf32>
    %251 = vector.extract_strided_slice %240 {offsets = [0, 256], sizes = [8, 128], strides = [1, 1]} : vector<8x512xf32> to vector<8x128xf32>
    %252 = vector.extract_strided_slice %240 {offsets = [0, 384], sizes = [8, 128], strides = [1, 1]} : vector<8x512xf32> to vector<8x128xf32>
    %cst_100 = arith.constant 5.000000e-01 : f32
    %253 = vector.broadcast %cst_100 : f32 to vector<8x128xf32>
    %254 = arith.mulf %253, %252 : vector<8x128xf32>
    %cst_101 = arith.constant 5.000000e-01 : f32
    %255 = vector.broadcast %cst_101 : f32 to vector<8x128xf32>
    %256 = arith.addf %254, %255 : vector<8x128xf32>
    %257 = arith.mulf %250, %227 : vector<8x128xf32>
    %258 = arith.mulf %245, %251 : vector<8x128xf32>
    %259 = arith.addf %257, %258 : vector<8x128xf32>
    %260 = math.tanh %259 : vector<8x128xf32>
    %261 = arith.mulf %256, %260 : vector<8x128xf32>
    %262 = arith.index_cast %233 : i32 to index
    %c0_102 = arith.constant 0 : index
    %263 = vector.load %arg14[%262, %c0_102] : memref<64x128xf32, #tpu.memory_space<vmem>>, vector<8x128xf32>
    tpu.vector_store %arg14[%262, %c0_102], %261 {strides = array<i32>} : memref<64x128xf32, #tpu.memory_space<vmem>>, vector<8x128xf32>,
    %c8_i32_103 = arith.constant 8 : i32
    %c0_104 = arith.constant 0 : index
    %c0_105 = arith.constant 0 : index
    %264 = vector.load %arg14[%c0_104, %c0_105] : memref<64x128xf32, #tpu.memory_space<vmem>>, vector<64x128xf32>
    %265 = arith.truncf %264 : vector<64x128xf32> to vector<64x128xbf16>
    %c0_106 = arith.constant 0 : index
    %c0_107 = arith.constant 0 : index
    %266 = vector.load %arg4[%c0_106, %c0_107] : memref<128x512xbf16, #tpu.memory_space<vmem>>, vector<128x512xbf16>
    %cst_108 = arith.constant dense<0.000000e+00> : vector<64x512xf32>
    %267 = tpu.matmul %265, %266, %cst_108 {dimension_numbers = #tpu.dot_dimension_numbers<[1], [0], [0], [1], [0, 0, 1, 1], [], []>} : vector<64x128xbf16>, vector<128x512xbf16>, vector<64x512xf32> -> vector<64x512xf32>
    %c0_109 = arith.constant 0 : index
    %c0_110 = arith.constant 0 : index
    %268 = vector.load %arg6[%c0_109, %c0_110] : memref<1x512xf32, #tpu.memory_space<vmem>>, vector<1x512xf32>
    %269 = vector.broadcast %268 : vector<1x512xf32> to vector<64x512xf32>
    %270 = arith.addf %267, %269 : vector<64x512xf32>
    %c0_111 = arith.constant 0 : index
    %c0_112 = arith.constant 0 : index
    %271 = vector.load %arg13[%c0_111, %c0_112] : memref<64x512xf32, #tpu.memory_space<vmem>>, vector<64x512xf32>
    tpu.vector_store %arg13[%c0_111, %c0_112], %270 {strides = array<i32>} : memref<64x512xf32, #tpu.memory_space<vmem>>, vector<64x512xf32>,
    %cst_113 = arith.constant 0.000000e+00 : f32
    %272 = vector.broadcast %cst_113 : f32 to vector<8x128xf32>
    %c0_i32_114 = arith.constant 0 : i32
    %c8_i32_115 = arith.constant 8 : i32
    %273 = arith.muli %c0_i32_114, %c8_i32_115 : i32
    %274 = tpu.assume_multiple %273, 8 : i32
    %275 = arith.index_cast %274 : i32 to index
    %c0_116 = arith.constant 0 : index
    %276 = vector.load %arg13[%275, %c0_116] : memref<64x512xf32, #tpu.memory_space<vmem>>, vector<8x512xf32>
    %277 = arith.truncf %272 : vector<8x128xf32> to vector<8x128xbf16>
    %c0_117 = arith.constant 0 : index
    %c0_118 = arith.constant 0 : index
    %278 = vector.load %arg5[%c0_117, %c0_118] : memref<128x512xbf16, #tpu.memory_space<vmem>>, vector<128x512xbf16>
    %cst_119 = arith.constant dense<0.000000e+00> : vector<8x512xf32>
    %279 = tpu.matmul %277, %278, %cst_119 {dimension_numbers = #tpu.dot_dimension_numbers<[1], [0], [0], [1], [0, 0, 1, 1], [], []>} : vector<8x128xbf16>, vector<128x512xbf16>, vector<8x512xf32> -> vector<8x512xf32>
    %280 = arith.addf %276, %279 : vector<8x512xf32>
    %281 = math.tanh %280 : vector<8x512xf32>
    %282 = vector.extract_strided_slice %281 {offsets = [0, 0], sizes = [8, 128], strides = [1, 1]} : vector<8x512xf32> to vector<8x128xf32>
    %cst_120 = arith.constant 5.000000e-01 : f32
    %283 = vector.broadcast %cst_120 : f32 to vector<8x128xf32>
    %284 = arith.mulf %283, %282 : vector<8x128xf32>
    %cst_121 = arith.constant 5.000000e-01 : f32
    %285 = vector.broadcast %cst_121 : f32 to vector<8x128xf32>
    %286 = arith.addf %284, %285 : vector<8x128xf32>
    %287 = vector.extract_strided_slice %281 {offsets = [0, 128], sizes = [8, 128], strides = [1, 1]} : vector<8x512xf32> to vector<8x128xf32>
    %cst_122 = arith.constant 5.000000e-01 : f32
    %288 = vector.broadcast %cst_122 : f32 to vector<8x128xf32>
    %289 = arith.mulf %288, %287 : vector<8x128xf32>
    %cst_123 = arith.constant 5.000000e-01 : f32
    %290 = vector.broadcast %cst_123 : f32 to vector<8x128xf32>
    %291 = arith.addf %289, %290 : vector<8x128xf32>
    %292 = vector.extract_strided_slice %281 {offsets = [0, 256], sizes = [8, 128], strides = [1, 1]} : vector<8x512xf32> to vector<8x128xf32>
    %293 = vector.extract_strided_slice %281 {offsets = [0, 384], sizes = [8, 128], strides = [1, 1]} : vector<8x512xf32> to vector<8x128xf32>
    %cst_124 = arith.constant 5.000000e-01 : f32
    %294 = vector.broadcast %cst_124 : f32 to vector<8x128xf32>
    %295 = arith.mulf %294, %293 : vector<8x128xf32>
    %cst_125 = arith.constant 5.000000e-01 : f32
    %296 = vector.broadcast %cst_125 : f32 to vector<8x128xf32>
    %297 = arith.addf %295, %296 : vector<8x128xf32>
    %298 = arith.mulf %291, %272 : vector<8x128xf32>
    %299 = arith.mulf %286, %292 : vector<8x128xf32>
    %300 = arith.addf %298, %299 : vector<8x128xf32>
    %301 = math.tanh %300 : vector<8x128xf32>
    %302 = arith.mulf %297, %301 : vector<8x128xf32>
    %303 = arith.index_cast %274 : i32 to index
    %c0_126 = arith.constant 0 : index
    %304 = vector.load %arg15[%303, %c0_126] : memref<64x128xf32, #tpu.memory_space<vmem>>, vector<8x128xf32>
    tpu.vector_store %arg15[%303, %c0_126], %302 {strides = array<i32>} : memref<64x128xf32, #tpu.memory_space<vmem>>, vector<8x128xf32>,
    %c1_i32_127 = arith.constant 1 : i32
    %c8_i32_128 = arith.constant 8 : i32
    %305 = arith.muli %c1_i32_127, %c8_i32_128 : i32
    %306 = tpu.assume_multiple %305, 8 : i32
    %307 = arith.index_cast %306 : i32 to index
    %c0_129 = arith.constant 0 : index
    %308 = vector.load %arg13[%307, %c0_129] : memref<64x512xf32, #tpu.memory_space<vmem>>, vector<8x512xf32>
    %309 = arith.truncf %302 : vector<8x128xf32> to vector<8x128xbf16>
    %c0_130 = arith.constant 0 : index
    %c0_131 = arith.constant 0 : index
    %310 = vector.load %arg5[%c0_130, %c0_131] : memref<128x512xbf16, #tpu.memory_space<vmem>>, vector<128x512xbf16>
    %cst_132 = arith.constant dense<0.000000e+00> : vector<8x512xf32>
    %311 = tpu.matmul %309, %310, %cst_132 {dimension_numbers = #tpu.dot_dimension_numbers<[1], [0], [0], [1], [0, 0, 1, 1], [], []>} : vector<8x128xbf16>, vector<128x512xbf16>, vector<8x512xf32> -> vector<8x512xf32>
    %312 = arith.addf %308, %311 : vector<8x512xf32>
    %313 = math.tanh %312 : vector<8x512xf32>
    %314 = vector.extract_strided_slice %313 {offsets = [0, 0], sizes = [8, 128], strides = [1, 1]} : vector<8x512xf32> to vector<8x128xf32>
    %cst_133 = arith.constant 5.000000e-01 : f32
    %315 = vector.broadcast %cst_133 : f32 to vector<8x128xf32>
    %316 = arith.mulf %315, %314 : vector<8x128xf32>
    %cst_134 = arith.constant 5.000000e-01 : f32
    %317 = vector.broadcast %cst_134 : f32 to vector<8x128xf32>
    %318 = arith.addf %316, %317 : vector<8x128xf32>
    %319 = vector.extract_strided_slice %313 {offsets = [0, 128], sizes = [8, 128], strides = [1, 1]} : vector<8x512xf32> to vector<8x128xf32>
    %cst_135 = arith.constant 5.000000e-01 : f32
    %320 = vector.broadcast %cst_135 : f32 to vector<8x128xf32>
    %321 = arith.mulf %320, %319 : vector<8x128xf32>
    %cst_136 = arith.constant 5.000000e-01 : f32
    %322 = vector.broadcast %cst_136 : f32 to vector<8x128xf32>
    %323 = arith.addf %321, %322 : vector<8x128xf32>
    %324 = vector.extract_strided_slice %313 {offsets = [0, 256], sizes = [8, 128], strides = [1, 1]} : vector<8x512xf32> to vector<8x128xf32>
    %325 = vector.extract_strided_slice %313 {offsets = [0, 384], sizes = [8, 128], strides = [1, 1]} : vector<8x512xf32> to vector<8x128xf32>
    %cst_137 = arith.constant 5.000000e-01 : f32
    %326 = vector.broadcast %cst_137 : f32 to vector<8x128xf32>
    %327 = arith.mulf %326, %325 : vector<8x128xf32>
    %cst_138 = arith.constant 5.000000e-01 : f32
    %328 = vector.broadcast %cst_138 : f32 to vector<8x128xf32>
    %329 = arith.addf %327, %328 : vector<8x128xf32>
    %330 = arith.mulf %323, %300 : vector<8x128xf32>
    %331 = arith.mulf %318, %324 : vector<8x128xf32>
    %332 = arith.addf %330, %331 : vector<8x128xf32>
    %333 = math.tanh %332 : vector<8x128xf32>
    %334 = arith.mulf %329, %333 : vector<8x128xf32>
    %335 = arith.index_cast %306 : i32 to index
    %c0_139 = arith.constant 0 : index
    %336 = vector.load %arg15[%335, %c0_139] : memref<64x128xf32, #tpu.memory_space<vmem>>, vector<8x128xf32>
    tpu.vector_store %arg15[%335, %c0_139], %334 {strides = array<i32>} : memref<64x128xf32, #tpu.memory_space<vmem>>, vector<8x128xf32>,
    %c2_i32_140 = arith.constant 2 : i32
    %c8_i32_141 = arith.constant 8 : i32
    %337 = arith.muli %c2_i32_140, %c8_i32_141 : i32
    %338 = tpu.assume_multiple %337, 8 : i32
    %339 = arith.index_cast %338 : i32 to index
    %c0_142 = arith.constant 0 : index
    %340 = vector.load %arg13[%339, %c0_142] : memref<64x512xf32, #tpu.memory_space<vmem>>, vector<8x512xf32>
    %341 = arith.truncf %334 : vector<8x128xf32> to vector<8x128xbf16>
    %c0_143 = arith.constant 0 : index
    %c0_144 = arith.constant 0 : index
    %342 = vector.load %arg5[%c0_143, %c0_144] : memref<128x512xbf16, #tpu.memory_space<vmem>>, vector<128x512xbf16>
    %cst_145 = arith.constant dense<0.000000e+00> : vector<8x512xf32>
    %343 = tpu.matmul %341, %342, %cst_145 {dimension_numbers = #tpu.dot_dimension_numbers<[1], [0], [0], [1], [0, 0, 1, 1], [], []>} : vector<8x128xbf16>, vector<128x512xbf16>, vector<8x512xf32> -> vector<8x512xf32>
    %344 = arith.addf %340, %343 : vector<8x512xf32>
    %345 = math.tanh %344 : vector<8x512xf32>
    %346 = vector.extract_strided_slice %345 {offsets = [0, 0], sizes = [8, 128], strides = [1, 1]} : vector<8x512xf32> to vector<8x128xf32>
    %cst_146 = arith.constant 5.000000e-01 : f32
    %347 = vector.broadcast %cst_146 : f32 to vector<8x128xf32>
    %348 = arith.mulf %347, %346 : vector<8x128xf32>
    %cst_147 = arith.constant 5.000000e-01 : f32
    %349 = vector.broadcast %cst_147 : f32 to vector<8x128xf32>
    %350 = arith.addf %348, %349 : vector<8x128xf32>
    %351 = vector.extract_strided_slice %345 {offsets = [0, 128], sizes = [8, 128], strides = [1, 1]} : vector<8x512xf32> to vector<8x128xf32>
    %cst_148 = arith.constant 5.000000e-01 : f32
    %352 = vector.broadcast %cst_148 : f32 to vector<8x128xf32>
    %353 = arith.mulf %352, %351 : vector<8x128xf32>
    %cst_149 = arith.constant 5.000000e-01 : f32
    %354 = vector.broadcast %cst_149 : f32 to vector<8x128xf32>
    %355 = arith.addf %353, %354 : vector<8x128xf32>
    %356 = vector.extract_strided_slice %345 {offsets = [0, 256], sizes = [8, 128], strides = [1, 1]} : vector<8x512xf32> to vector<8x128xf32>
    %357 = vector.extract_strided_slice %345 {offsets = [0, 384], sizes = [8, 128], strides = [1, 1]} : vector<8x512xf32> to vector<8x128xf32>
    %cst_150 = arith.constant 5.000000e-01 : f32
    %358 = vector.broadcast %cst_150 : f32 to vector<8x128xf32>
    %359 = arith.mulf %358, %357 : vector<8x128xf32>
    %cst_151 = arith.constant 5.000000e-01 : f32
    %360 = vector.broadcast %cst_151 : f32 to vector<8x128xf32>
    %361 = arith.addf %359, %360 : vector<8x128xf32>
    %362 = arith.mulf %355, %332 : vector<8x128xf32>
    %363 = arith.mulf %350, %356 : vector<8x128xf32>
    %364 = arith.addf %362, %363 : vector<8x128xf32>
    %365 = math.tanh %364 : vector<8x128xf32>
    %366 = arith.mulf %361, %365 : vector<8x128xf32>
    %367 = arith.index_cast %338 : i32 to index
    %c0_152 = arith.constant 0 : index
    %368 = vector.load %arg15[%367, %c0_152] : memref<64x128xf32, #tpu.memory_space<vmem>>, vector<8x128xf32>
    tpu.vector_store %arg15[%367, %c0_152], %366 {strides = array<i32>} : memref<64x128xf32, #tpu.memory_space<vmem>>, vector<8x128xf32>,
    %c3_i32_153 = arith.constant 3 : i32
    %c8_i32_154 = arith.constant 8 : i32
    %369 = arith.muli %c3_i32_153, %c8_i32_154 : i32
    %370 = tpu.assume_multiple %369, 8 : i32
    %371 = arith.index_cast %370 : i32 to index
    %c0_155 = arith.constant 0 : index
    %372 = vector.load %arg13[%371, %c0_155] : memref<64x512xf32, #tpu.memory_space<vmem>>, vector<8x512xf32>
    %373 = arith.truncf %366 : vector<8x128xf32> to vector<8x128xbf16>
    %c0_156 = arith.constant 0 : index
    %c0_157 = arith.constant 0 : index
    %374 = vector.load %arg5[%c0_156, %c0_157] : memref<128x512xbf16, #tpu.memory_space<vmem>>, vector<128x512xbf16>
    %cst_158 = arith.constant dense<0.000000e+00> : vector<8x512xf32>
    %375 = tpu.matmul %373, %374, %cst_158 {dimension_numbers = #tpu.dot_dimension_numbers<[1], [0], [0], [1], [0, 0, 1, 1], [], []>} : vector<8x128xbf16>, vector<128x512xbf16>, vector<8x512xf32> -> vector<8x512xf32>
    %376 = arith.addf %372, %375 : vector<8x512xf32>
    %377 = math.tanh %376 : vector<8x512xf32>
    %378 = vector.extract_strided_slice %377 {offsets = [0, 0], sizes = [8, 128], strides = [1, 1]} : vector<8x512xf32> to vector<8x128xf32>
    %cst_159 = arith.constant 5.000000e-01 : f32
    %379 = vector.broadcast %cst_159 : f32 to vector<8x128xf32>
    %380 = arith.mulf %379, %378 : vector<8x128xf32>
    %cst_160 = arith.constant 5.000000e-01 : f32
    %381 = vector.broadcast %cst_160 : f32 to vector<8x128xf32>
    %382 = arith.addf %380, %381 : vector<8x128xf32>
    %383 = vector.extract_strided_slice %377 {offsets = [0, 128], sizes = [8, 128], strides = [1, 1]} : vector<8x512xf32> to vector<8x128xf32>
    %cst_161 = arith.constant 5.000000e-01 : f32
    %384 = vector.broadcast %cst_161 : f32 to vector<8x128xf32>
    %385 = arith.mulf %384, %383 : vector<8x128xf32>
    %cst_162 = arith.constant 5.000000e-01 : f32
    %386 = vector.broadcast %cst_162 : f32 to vector<8x128xf32>
    %387 = arith.addf %385, %386 : vector<8x128xf32>
    %388 = vector.extract_strided_slice %377 {offsets = [0, 256], sizes = [8, 128], strides = [1, 1]} : vector<8x512xf32> to vector<8x128xf32>
    %389 = vector.extract_strided_slice %377 {offsets = [0, 384], sizes = [8, 128], strides = [1, 1]} : vector<8x512xf32> to vector<8x128xf32>
    %cst_163 = arith.constant 5.000000e-01 : f32
    %390 = vector.broadcast %cst_163 : f32 to vector<8x128xf32>
    %391 = arith.mulf %390, %389 : vector<8x128xf32>
    %cst_164 = arith.constant 5.000000e-01 : f32
    %392 = vector.broadcast %cst_164 : f32 to vector<8x128xf32>
    %393 = arith.addf %391, %392 : vector<8x128xf32>
    %394 = arith.mulf %387, %364 : vector<8x128xf32>
    %395 = arith.mulf %382, %388 : vector<8x128xf32>
    %396 = arith.addf %394, %395 : vector<8x128xf32>
    %397 = math.tanh %396 : vector<8x128xf32>
    %398 = arith.mulf %393, %397 : vector<8x128xf32>
    %399 = arith.index_cast %370 : i32 to index
    %c0_165 = arith.constant 0 : index
    %400 = vector.load %arg15[%399, %c0_165] : memref<64x128xf32, #tpu.memory_space<vmem>>, vector<8x128xf32>
    tpu.vector_store %arg15[%399, %c0_165], %398 {strides = array<i32>} : memref<64x128xf32, #tpu.memory_space<vmem>>, vector<8x128xf32>,
    %c4_i32_166 = arith.constant 4 : i32
    %c8_i32_167 = arith.constant 8 : i32
    %401 = arith.muli %c4_i32_166, %c8_i32_167 : i32
    %402 = tpu.assume_multiple %401, 8 : i32
    %403 = arith.index_cast %402 : i32 to index
    %c0_168 = arith.constant 0 : index
    %404 = vector.load %arg13[%403, %c0_168] : memref<64x512xf32, #tpu.memory_space<vmem>>, vector<8x512xf32>
    %405 = arith.truncf %398 : vector<8x128xf32> to vector<8x128xbf16>
    %c0_169 = arith.constant 0 : index
    %c0_170 = arith.constant 0 : index
    %406 = vector.load %arg5[%c0_169, %c0_170] : memref<128x512xbf16, #tpu.memory_space<vmem>>, vector<128x512xbf16>
    %cst_171 = arith.constant dense<0.000000e+00> : vector<8x512xf32>
    %407 = tpu.matmul %405, %406, %cst_171 {dimension_numbers = #tpu.dot_dimension_numbers<[1], [0], [0], [1], [0, 0, 1, 1], [], []>} : vector<8x128xbf16>, vector<128x512xbf16>, vector<8x512xf32> -> vector<8x512xf32>
    %408 = arith.addf %404, %407 : vector<8x512xf32>
    %409 = math.tanh %408 : vector<8x512xf32>
    %410 = vector.extract_strided_slice %409 {offsets = [0, 0], sizes = [8, 128], strides = [1, 1]} : vector<8x512xf32> to vector<8x128xf32>
    %cst_172 = arith.constant 5.000000e-01 : f32
    %411 = vector.broadcast %cst_172 : f32 to vector<8x128xf32>
    %412 = arith.mulf %411, %410 : vector<8x128xf32>
    %cst_173 = arith.constant 5.000000e-01 : f32
    %413 = vector.broadcast %cst_173 : f32 to vector<8x128xf32>
    %414 = arith.addf %412, %413 : vector<8x128xf32>
    %415 = vector.extract_strided_slice %409 {offsets = [0, 128], sizes = [8, 128], strides = [1, 1]} : vector<8x512xf32> to vector<8x128xf32>
    %cst_174 = arith.constant 5.000000e-01 : f32
    %416 = vector.broadcast %cst_174 : f32 to vector<8x128xf32>
    %417 = arith.mulf %416, %415 : vector<8x128xf32>
    %cst_175 = arith.constant 5.000000e-01 : f32
    %418 = vector.broadcast %cst_175 : f32 to vector<8x128xf32>
    %419 = arith.addf %417, %418 : vector<8x128xf32>
    %420 = vector.extract_strided_slice %409 {offsets = [0, 256], sizes = [8, 128], strides = [1, 1]} : vector<8x512xf32> to vector<8x128xf32>
    %421 = vector.extract_strided_slice %409 {offsets = [0, 384], sizes = [8, 128], strides = [1, 1]} : vector<8x512xf32> to vector<8x128xf32>
    %cst_176 = arith.constant 5.000000e-01 : f32
    %422 = vector.broadcast %cst_176 : f32 to vector<8x128xf32>
    %423 = arith.mulf %422, %421 : vector<8x128xf32>
    %cst_177 = arith.constant 5.000000e-01 : f32
    %424 = vector.broadcast %cst_177 : f32 to vector<8x128xf32>
    %425 = arith.addf %423, %424 : vector<8x128xf32>
    %426 = arith.mulf %419, %396 : vector<8x128xf32>
    %427 = arith.mulf %414, %420 : vector<8x128xf32>
    %428 = arith.addf %426, %427 : vector<8x128xf32>
    %429 = math.tanh %428 : vector<8x128xf32>
    %430 = arith.mulf %425, %429 : vector<8x128xf32>
    %431 = arith.index_cast %402 : i32 to index
    %c0_178 = arith.constant 0 : index
    %432 = vector.load %arg15[%431, %c0_178] : memref<64x128xf32, #tpu.memory_space<vmem>>, vector<8x128xf32>
    tpu.vector_store %arg15[%431, %c0_178], %430 {strides = array<i32>} : memref<64x128xf32, #tpu.memory_space<vmem>>, vector<8x128xf32>,
    %c5_i32_179 = arith.constant 5 : i32
    %c8_i32_180 = arith.constant 8 : i32
    %433 = arith.muli %c5_i32_179, %c8_i32_180 : i32
    %434 = tpu.assume_multiple %433, 8 : i32
    %435 = arith.index_cast %434 : i32 to index
    %c0_181 = arith.constant 0 : index
    %436 = vector.load %arg13[%435, %c0_181] : memref<64x512xf32, #tpu.memory_space<vmem>>, vector<8x512xf32>
    %437 = arith.truncf %430 : vector<8x128xf32> to vector<8x128xbf16>
    %c0_182 = arith.constant 0 : index
    %c0_183 = arith.constant 0 : index
    %438 = vector.load %arg5[%c0_182, %c0_183] : memref<128x512xbf16, #tpu.memory_space<vmem>>, vector<128x512xbf16>
    %cst_184 = arith.constant dense<0.000000e+00> : vector<8x512xf32>
    %439 = tpu.matmul %437, %438, %cst_184 {dimension_numbers = #tpu.dot_dimension_numbers<[1], [0], [0], [1], [0, 0, 1, 1], [], []>} : vector<8x128xbf16>, vector<128x512xbf16>, vector<8x512xf32> -> vector<8x512xf32>
    %440 = arith.addf %436, %439 : vector<8x512xf32>
    %441 = math.tanh %440 : vector<8x512xf32>
    %442 = vector.extract_strided_slice %441 {offsets = [0, 0], sizes = [8, 128], strides = [1, 1]} : vector<8x512xf32> to vector<8x128xf32>
    %cst_185 = arith.constant 5.000000e-01 : f32
    %443 = vector.broadcast %cst_185 : f32 to vector<8x128xf32>
    %444 = arith.mulf %443, %442 : vector<8x128xf32>
    %cst_186 = arith.constant 5.000000e-01 : f32
    %445 = vector.broadcast %cst_186 : f32 to vector<8x128xf32>
    %446 = arith.addf %444, %445 : vector<8x128xf32>
    %447 = vector.extract_strided_slice %441 {offsets = [0, 128], sizes = [8, 128], strides = [1, 1]} : vector<8x512xf32> to vector<8x128xf32>
    %cst_187 = arith.constant 5.000000e-01 : f32
    %448 = vector.broadcast %cst_187 : f32 to vector<8x128xf32>
    %449 = arith.mulf %448, %447 : vector<8x128xf32>
    %cst_188 = arith.constant 5.000000e-01 : f32
    %450 = vector.broadcast %cst_188 : f32 to vector<8x128xf32>
    %451 = arith.addf %449, %450 : vector<8x128xf32>
    %452 = vector.extract_strided_slice %441 {offsets = [0, 256], sizes = [8, 128], strides = [1, 1]} : vector<8x512xf32> to vector<8x128xf32>
    %453 = vector.extract_strided_slice %441 {offsets = [0, 384], sizes = [8, 128], strides = [1, 1]} : vector<8x512xf32> to vector<8x128xf32>
    %cst_189 = arith.constant 5.000000e-01 : f32
    %454 = vector.broadcast %cst_189 : f32 to vector<8x128xf32>
    %455 = arith.mulf %454, %453 : vector<8x128xf32>
    %cst_190 = arith.constant 5.000000e-01 : f32
    %456 = vector.broadcast %cst_190 : f32 to vector<8x128xf32>
    %457 = arith.addf %455, %456 : vector<8x128xf32>
    %458 = arith.mulf %451, %428 : vector<8x128xf32>
    %459 = arith.mulf %446, %452 : vector<8x128xf32>
    %460 = arith.addf %458, %459 : vector<8x128xf32>
    %461 = math.tanh %460 : vector<8x128xf32>
    %462 = arith.mulf %457, %461 : vector<8x128xf32>
    %463 = arith.index_cast %434 : i32 to index
    %c0_191 = arith.constant 0 : index
    %464 = vector.load %arg15[%463, %c0_191] : memref<64x128xf32, #tpu.memory_space<vmem>>, vector<8x128xf32>
    tpu.vector_store %arg15[%463, %c0_191], %462 {strides = array<i32>} : memref<64x128xf32, #tpu.memory_space<vmem>>, vector<8x128xf32>,
    %c6_i32_192 = arith.constant 6 : i32
    %c8_i32_193 = arith.constant 8 : i32
    %465 = arith.muli %c6_i32_192, %c8_i32_193 : i32
    %466 = tpu.assume_multiple %465, 8 : i32
    %467 = arith.index_cast %466 : i32 to index
    %c0_194 = arith.constant 0 : index
    %468 = vector.load %arg13[%467, %c0_194] : memref<64x512xf32, #tpu.memory_space<vmem>>, vector<8x512xf32>
    %469 = arith.truncf %462 : vector<8x128xf32> to vector<8x128xbf16>
    %c0_195 = arith.constant 0 : index
    %c0_196 = arith.constant 0 : index
    %470 = vector.load %arg5[%c0_195, %c0_196] : memref<128x512xbf16, #tpu.memory_space<vmem>>, vector<128x512xbf16>
    %cst_197 = arith.constant dense<0.000000e+00> : vector<8x512xf32>
    %471 = tpu.matmul %469, %470, %cst_197 {dimension_numbers = #tpu.dot_dimension_numbers<[1], [0], [0], [1], [0, 0, 1, 1], [], []>} : vector<8x128xbf16>, vector<128x512xbf16>, vector<8x512xf32> -> vector<8x512xf32>
    %472 = arith.addf %468, %471 : vector<8x512xf32>
    %473 = math.tanh %472 : vector<8x512xf32>
    %474 = vector.extract_strided_slice %473 {offsets = [0, 0], sizes = [8, 128], strides = [1, 1]} : vector<8x512xf32> to vector<8x128xf32>
    %cst_198 = arith.constant 5.000000e-01 : f32
    %475 = vector.broadcast %cst_198 : f32 to vector<8x128xf32>
    %476 = arith.mulf %475, %474 : vector<8x128xf32>
    %cst_199 = arith.constant 5.000000e-01 : f32
    %477 = vector.broadcast %cst_199 : f32 to vector<8x128xf32>
    %478 = arith.addf %476, %477 : vector<8x128xf32>
    %479 = vector.extract_strided_slice %473 {offsets = [0, 128], sizes = [8, 128], strides = [1, 1]} : vector<8x512xf32> to vector<8x128xf32>
    %cst_200 = arith.constant 5.000000e-01 : f32
    %480 = vector.broadcast %cst_200 : f32 to vector<8x128xf32>
    %481 = arith.mulf %480, %479 : vector<8x128xf32>
    %cst_201 = arith.constant 5.000000e-01 : f32
    %482 = vector.broadcast %cst_201 : f32 to vector<8x128xf32>
    %483 = arith.addf %481, %482 : vector<8x128xf32>
    %484 = vector.extract_strided_slice %473 {offsets = [0, 256], sizes = [8, 128], strides = [1, 1]} : vector<8x512xf32> to vector<8x128xf32>
    %485 = vector.extract_strided_slice %473 {offsets = [0, 384], sizes = [8, 128], strides = [1, 1]} : vector<8x512xf32> to vector<8x128xf32>
    %cst_202 = arith.constant 5.000000e-01 : f32
    %486 = vector.broadcast %cst_202 : f32 to vector<8x128xf32>
    %487 = arith.mulf %486, %485 : vector<8x128xf32>
    %cst_203 = arith.constant 5.000000e-01 : f32
    %488 = vector.broadcast %cst_203 : f32 to vector<8x128xf32>
    %489 = arith.addf %487, %488 : vector<8x128xf32>
    %490 = arith.mulf %483, %460 : vector<8x128xf32>
    %491 = arith.mulf %478, %484 : vector<8x128xf32>
    %492 = arith.addf %490, %491 : vector<8x128xf32>
    %493 = math.tanh %492 : vector<8x128xf32>
    %494 = arith.mulf %489, %493 : vector<8x128xf32>
    %495 = arith.index_cast %466 : i32 to index
    %c0_204 = arith.constant 0 : index
    %496 = vector.load %arg15[%495, %c0_204] : memref<64x128xf32, #tpu.memory_space<vmem>>, vector<8x128xf32>
    tpu.vector_store %arg15[%495, %c0_204], %494 {strides = array<i32>} : memref<64x128xf32, #tpu.memory_space<vmem>>, vector<8x128xf32>,
    %c7_i32_205 = arith.constant 7 : i32
    %c8_i32_206 = arith.constant 8 : i32
    %497 = arith.muli %c7_i32_205, %c8_i32_206 : i32
    %498 = tpu.assume_multiple %497, 8 : i32
    %499 = arith.index_cast %498 : i32 to index
    %c0_207 = arith.constant 0 : index
    %500 = vector.load %arg13[%499, %c0_207] : memref<64x512xf32, #tpu.memory_space<vmem>>, vector<8x512xf32>
    %501 = arith.truncf %494 : vector<8x128xf32> to vector<8x128xbf16>
    %c0_208 = arith.constant 0 : index
    %c0_209 = arith.constant 0 : index
    %502 = vector.load %arg5[%c0_208, %c0_209] : memref<128x512xbf16, #tpu.memory_space<vmem>>, vector<128x512xbf16>
    %cst_210 = arith.constant dense<0.000000e+00> : vector<8x512xf32>
    %503 = tpu.matmul %501, %502, %cst_210 {dimension_numbers = #tpu.dot_dimension_numbers<[1], [0], [0], [1], [0, 0, 1, 1], [], []>} : vector<8x128xbf16>, vector<128x512xbf16>, vector<8x512xf32> -> vector<8x512xf32>
    %504 = arith.addf %500, %503 : vector<8x512xf32>
    %505 = math.tanh %504 : vector<8x512xf32>
    %506 = vector.extract_strided_slice %505 {offsets = [0, 0], sizes = [8, 128], strides = [1, 1]} : vector<8x512xf32> to vector<8x128xf32>
    %cst_211 = arith.constant 5.000000e-01 : f32
    %507 = vector.broadcast %cst_211 : f32 to vector<8x128xf32>
    %508 = arith.mulf %507, %506 : vector<8x128xf32>
    %cst_212 = arith.constant 5.000000e-01 : f32
    %509 = vector.broadcast %cst_212 : f32 to vector<8x128xf32>
    %510 = arith.addf %508, %509 : vector<8x128xf32>
    %511 = vector.extract_strided_slice %505 {offsets = [0, 128], sizes = [8, 128], strides = [1, 1]} : vector<8x512xf32> to vector<8x128xf32>
    %cst_213 = arith.constant 5.000000e-01 : f32
    %512 = vector.broadcast %cst_213 : f32 to vector<8x128xf32>
    %513 = arith.mulf %512, %511 : vector<8x128xf32>
    %cst_214 = arith.constant 5.000000e-01 : f32
    %514 = vector.broadcast %cst_214 : f32 to vector<8x128xf32>
    %515 = arith.addf %513, %514 : vector<8x128xf32>
    %516 = vector.extract_strided_slice %505 {offsets = [0, 256], sizes = [8, 128], strides = [1, 1]} : vector<8x512xf32> to vector<8x128xf32>
    %517 = vector.extract_strided_slice %505 {offsets = [0, 384], sizes = [8, 128], strides = [1, 1]} : vector<8x512xf32> to vector<8x128xf32>
    %cst_215 = arith.constant 5.000000e-01 : f32
    %518 = vector.broadcast %cst_215 : f32 to vector<8x128xf32>
    %519 = arith.mulf %518, %517 : vector<8x128xf32>
    %cst_216 = arith.constant 5.000000e-01 : f32
    %520 = vector.broadcast %cst_216 : f32 to vector<8x128xf32>
    %521 = arith.addf %519, %520 : vector<8x128xf32>
    %522 = arith.mulf %515, %492 : vector<8x128xf32>
    %523 = arith.mulf %510, %516 : vector<8x128xf32>
    %524 = arith.addf %522, %523 : vector<8x128xf32>
    %525 = math.tanh %524 : vector<8x128xf32>
    %526 = arith.mulf %521, %525 : vector<8x128xf32>
    %527 = arith.index_cast %498 : i32 to index
    %c0_217 = arith.constant 0 : index
    %528 = vector.load %arg15[%527, %c0_217] : memref<64x128xf32, #tpu.memory_space<vmem>>, vector<8x128xf32>
    tpu.vector_store %arg15[%527, %c0_217], %526 {strides = array<i32>} : memref<64x128xf32, #tpu.memory_space<vmem>>, vector<8x128xf32>,
    %c8_i32_218 = arith.constant 8 : i32
    %c0_219 = arith.constant 0 : index
    %c0_220 = arith.constant 0 : index
    %529 = vector.load %arg15[%c0_219, %c0_220] : memref<64x128xf32, #tpu.memory_space<vmem>>, vector<64x128xf32>
    %530 = arith.truncf %529 : vector<64x128xf32> to vector<64x128xbf16>
    %c0_221 = arith.constant 0 : index
    %c0_222 = arith.constant 0 : index
    %531 = vector.load %arg7[%c0_221, %c0_222] : memref<128x512xbf16, #tpu.memory_space<vmem>>, vector<128x512xbf16>
    %cst_223 = arith.constant dense<0.000000e+00> : vector<64x512xf32>
    %532 = tpu.matmul %530, %531, %cst_223 {dimension_numbers = #tpu.dot_dimension_numbers<[1], [0], [0], [1], [0, 0, 1, 1], [], []>} : vector<64x128xbf16>, vector<128x512xbf16>, vector<64x512xf32> -> vector<64x512xf32>
    %c0_224 = arith.constant 0 : index
    %c0_225 = arith.constant 0 : index
    %533 = vector.load %arg9[%c0_224, %c0_225] : memref<1x512xf32, #tpu.memory_space<vmem>>, vector<1x512xf32>
    %534 = vector.broadcast %533 : vector<1x512xf32> to vector<64x512xf32>
    %535 = arith.addf %532, %534 : vector<64x512xf32>
    %c0_226 = arith.constant 0 : index
    %c0_227 = arith.constant 0 : index
    %536 = vector.load %arg13[%c0_226, %c0_227] : memref<64x512xf32, #tpu.memory_space<vmem>>, vector<64x512xf32>
    tpu.vector_store %arg13[%c0_226, %c0_227], %535 {strides = array<i32>} : memref<64x512xf32, #tpu.memory_space<vmem>>, vector<64x512xf32>,
    %cst_228 = arith.constant 0.000000e+00 : f32
    %537 = vector.broadcast %cst_228 : f32 to vector<8x128xf32>
    %c0_i32_229 = arith.constant 0 : i32
    %c8_i32_230 = arith.constant 8 : i32
    %538 = arith.muli %c0_i32_229, %c8_i32_230 : i32
    %539 = tpu.assume_multiple %538, 8 : i32
    %540 = arith.index_cast %539 : i32 to index
    %c0_231 = arith.constant 0 : index
    %541 = vector.load %arg13[%540, %c0_231] : memref<64x512xf32, #tpu.memory_space<vmem>>, vector<8x512xf32>
    %542 = arith.truncf %537 : vector<8x128xf32> to vector<8x128xbf16>
    %c0_232 = arith.constant 0 : index
    %c0_233 = arith.constant 0 : index
    %543 = vector.load %arg8[%c0_232, %c0_233] : memref<128x512xbf16, #tpu.memory_space<vmem>>, vector<128x512xbf16>
    %cst_234 = arith.constant dense<0.000000e+00> : vector<8x512xf32>
    %544 = tpu.matmul %542, %543, %cst_234 {dimension_numbers = #tpu.dot_dimension_numbers<[1], [0], [0], [1], [0, 0, 1, 1], [], []>} : vector<8x128xbf16>, vector<128x512xbf16>, vector<8x512xf32> -> vector<8x512xf32>
    %545 = arith.addf %541, %544 : vector<8x512xf32>
    %546 = math.tanh %545 : vector<8x512xf32>
    %547 = vector.extract_strided_slice %546 {offsets = [0, 0], sizes = [8, 128], strides = [1, 1]} : vector<8x512xf32> to vector<8x128xf32>
    %cst_235 = arith.constant 5.000000e-01 : f32
    %548 = vector.broadcast %cst_235 : f32 to vector<8x128xf32>
    %549 = arith.mulf %548, %547 : vector<8x128xf32>
    %cst_236 = arith.constant 5.000000e-01 : f32
    %550 = vector.broadcast %cst_236 : f32 to vector<8x128xf32>
    %551 = arith.addf %549, %550 : vector<8x128xf32>
    %552 = vector.extract_strided_slice %546 {offsets = [0, 128], sizes = [8, 128], strides = [1, 1]} : vector<8x512xf32> to vector<8x128xf32>
    %cst_237 = arith.constant 5.000000e-01 : f32
    %553 = vector.broadcast %cst_237 : f32 to vector<8x128xf32>
    %554 = arith.mulf %553, %552 : vector<8x128xf32>
    %cst_238 = arith.constant 5.000000e-01 : f32
    %555 = vector.broadcast %cst_238 : f32 to vector<8x128xf32>
    %556 = arith.addf %554, %555 : vector<8x128xf32>
    %557 = vector.extract_strided_slice %546 {offsets = [0, 256], sizes = [8, 128], strides = [1, 1]} : vector<8x512xf32> to vector<8x128xf32>
    %558 = vector.extract_strided_slice %546 {offsets = [0, 384], sizes = [8, 128], strides = [1, 1]} : vector<8x512xf32> to vector<8x128xf32>
    %cst_239 = arith.constant 5.000000e-01 : f32
    %559 = vector.broadcast %cst_239 : f32 to vector<8x128xf32>
    %560 = arith.mulf %559, %558 : vector<8x128xf32>
    %cst_240 = arith.constant 5.000000e-01 : f32
    %561 = vector.broadcast %cst_240 : f32 to vector<8x128xf32>
    %562 = arith.addf %560, %561 : vector<8x128xf32>
    %563 = arith.mulf %556, %537 : vector<8x128xf32>
    %564 = arith.mulf %551, %557 : vector<8x128xf32>
    %565 = arith.addf %563, %564 : vector<8x128xf32>
    %566 = math.tanh %565 : vector<8x128xf32>
    %567 = arith.mulf %562, %566 : vector<8x128xf32>
    %c1_i32_241 = arith.constant 1 : i32
    %c8_i32_242 = arith.constant 8 : i32
    %568 = arith.muli %c1_i32_241, %c8_i32_242 : i32
    %569 = tpu.assume_multiple %568, 8 : i32
    %570 = arith.index_cast %569 : i32 to index
    %c0_243 = arith.constant 0 : index
    %571 = vector.load %arg13[%570, %c0_243] : memref<64x512xf32, #tpu.memory_space<vmem>>, vector<8x512xf32>
    %572 = arith.truncf %567 : vector<8x128xf32> to vector<8x128xbf16>
    %c0_244 = arith.constant 0 : index
    %c0_245 = arith.constant 0 : index
    %573 = vector.load %arg8[%c0_244, %c0_245] : memref<128x512xbf16, #tpu.memory_space<vmem>>, vector<128x512xbf16>
    %cst_246 = arith.constant dense<0.000000e+00> : vector<8x512xf32>
    %574 = tpu.matmul %572, %573, %cst_246 {dimension_numbers = #tpu.dot_dimension_numbers<[1], [0], [0], [1], [0, 0, 1, 1], [], []>} : vector<8x128xbf16>, vector<128x512xbf16>, vector<8x512xf32> -> vector<8x512xf32>
    %575 = arith.addf %571, %574 : vector<8x512xf32>
    %576 = math.tanh %575 : vector<8x512xf32>
    %577 = vector.extract_strided_slice %576 {offsets = [0, 0], sizes = [8, 128], strides = [1, 1]} : vector<8x512xf32> to vector<8x128xf32>
    %cst_247 = arith.constant 5.000000e-01 : f32
    %578 = vector.broadcast %cst_247 : f32 to vector<8x128xf32>
    %579 = arith.mulf %578, %577 : vector<8x128xf32>
    %cst_248 = arith.constant 5.000000e-01 : f32
    %580 = vector.broadcast %cst_248 : f32 to vector<8x128xf32>
    %581 = arith.addf %579, %580 : vector<8x128xf32>
    %582 = vector.extract_strided_slice %576 {offsets = [0, 128], sizes = [8, 128], strides = [1, 1]} : vector<8x512xf32> to vector<8x128xf32>
    %cst_249 = arith.constant 5.000000e-01 : f32
    %583 = vector.broadcast %cst_249 : f32 to vector<8x128xf32>
    %584 = arith.mulf %583, %582 : vector<8x128xf32>
    %cst_250 = arith.constant 5.000000e-01 : f32
    %585 = vector.broadcast %cst_250 : f32 to vector<8x128xf32>
    %586 = arith.addf %584, %585 : vector<8x128xf32>
    %587 = vector.extract_strided_slice %576 {offsets = [0, 256], sizes = [8, 128], strides = [1, 1]} : vector<8x512xf32> to vector<8x128xf32>
    %588 = vector.extract_strided_slice %576 {offsets = [0, 384], sizes = [8, 128], strides = [1, 1]} : vector<8x512xf32> to vector<8x128xf32>
    %cst_251 = arith.constant 5.000000e-01 : f32
    %589 = vector.broadcast %cst_251 : f32 to vector<8x128xf32>
    %590 = arith.mulf %589, %588 : vector<8x128xf32>
    %cst_252 = arith.constant 5.000000e-01 : f32
    %591 = vector.broadcast %cst_252 : f32 to vector<8x128xf32>
    %592 = arith.addf %590, %591 : vector<8x128xf32>
    %593 = arith.mulf %586, %565 : vector<8x128xf32>
    %594 = arith.mulf %581, %587 : vector<8x128xf32>
    %595 = arith.addf %593, %594 : vector<8x128xf32>
    %596 = math.tanh %595 : vector<8x128xf32>
    %597 = arith.mulf %592, %596 : vector<8x128xf32>
    %c2_i32_253 = arith.constant 2 : i32
    %c8_i32_254 = arith.constant 8 : i32
    %598 = arith.muli %c2_i32_253, %c8_i32_254 : i32
    %599 = tpu.assume_multiple %598, 8 : i32
    %600 = arith.index_cast %599 : i32 to index
    %c0_255 = arith.constant 0 : index
    %601 = vector.load %arg13[%600, %c0_255] : memref<64x512xf32, #tpu.memory_space<vmem>>, vector<8x512xf32>
    %602 = arith.truncf %597 : vector<8x128xf32> to vector<8x128xbf16>
    %c0_256 = arith.constant 0 : index
    %c0_257 = arith.constant 0 : index
    %603 = vector.load %arg8[%c0_256, %c0_257] : memref<128x512xbf16, #tpu.memory_space<vmem>>, vector<128x512xbf16>
    %cst_258 = arith.constant dense<0.000000e+00> : vector<8x512xf32>
    %604 = tpu.matmul %602, %603, %cst_258 {dimension_numbers = #tpu.dot_dimension_numbers<[1], [0], [0], [1], [0, 0, 1, 1], [], []>} : vector<8x128xbf16>, vector<128x512xbf16>, vector<8x512xf32> -> vector<8x512xf32>
    %605 = arith.addf %601, %604 : vector<8x512xf32>
    %606 = math.tanh %605 : vector<8x512xf32>
    %607 = vector.extract_strided_slice %606 {offsets = [0, 0], sizes = [8, 128], strides = [1, 1]} : vector<8x512xf32> to vector<8x128xf32>
    %cst_259 = arith.constant 5.000000e-01 : f32
    %608 = vector.broadcast %cst_259 : f32 to vector<8x128xf32>
    %609 = arith.mulf %608, %607 : vector<8x128xf32>
    %cst_260 = arith.constant 5.000000e-01 : f32
    %610 = vector.broadcast %cst_260 : f32 to vector<8x128xf32>
    %611 = arith.addf %609, %610 : vector<8x128xf32>
    %612 = vector.extract_strided_slice %606 {offsets = [0, 128], sizes = [8, 128], strides = [1, 1]} : vector<8x512xf32> to vector<8x128xf32>
    %cst_261 = arith.constant 5.000000e-01 : f32
    %613 = vector.broadcast %cst_261 : f32 to vector<8x128xf32>
    %614 = arith.mulf %613, %612 : vector<8x128xf32>
    %cst_262 = arith.constant 5.000000e-01 : f32
    %615 = vector.broadcast %cst_262 : f32 to vector<8x128xf32>
    %616 = arith.addf %614, %615 : vector<8x128xf32>
    %617 = vector.extract_strided_slice %606 {offsets = [0, 256], sizes = [8, 128], strides = [1, 1]} : vector<8x512xf32> to vector<8x128xf32>
    %618 = vector.extract_strided_slice %606 {offsets = [0, 384], sizes = [8, 128], strides = [1, 1]} : vector<8x512xf32> to vector<8x128xf32>
    %cst_263 = arith.constant 5.000000e-01 : f32
    %619 = vector.broadcast %cst_263 : f32 to vector<8x128xf32>
    %620 = arith.mulf %619, %618 : vector<8x128xf32>
    %cst_264 = arith.constant 5.000000e-01 : f32
    %621 = vector.broadcast %cst_264 : f32 to vector<8x128xf32>
    %622 = arith.addf %620, %621 : vector<8x128xf32>
    %623 = arith.mulf %616, %595 : vector<8x128xf32>
    %624 = arith.mulf %611, %617 : vector<8x128xf32>
    %625 = arith.addf %623, %624 : vector<8x128xf32>
    %626 = math.tanh %625 : vector<8x128xf32>
    %627 = arith.mulf %622, %626 : vector<8x128xf32>
    %c3_i32_265 = arith.constant 3 : i32
    %c8_i32_266 = arith.constant 8 : i32
    %628 = arith.muli %c3_i32_265, %c8_i32_266 : i32
    %629 = tpu.assume_multiple %628, 8 : i32
    %630 = arith.index_cast %629 : i32 to index
    %c0_267 = arith.constant 0 : index
    %631 = vector.load %arg13[%630, %c0_267] : memref<64x512xf32, #tpu.memory_space<vmem>>, vector<8x512xf32>
    %632 = arith.truncf %627 : vector<8x128xf32> to vector<8x128xbf16>
    %c0_268 = arith.constant 0 : index
    %c0_269 = arith.constant 0 : index
    %633 = vector.load %arg8[%c0_268, %c0_269] : memref<128x512xbf16, #tpu.memory_space<vmem>>, vector<128x512xbf16>
    %cst_270 = arith.constant dense<0.000000e+00> : vector<8x512xf32>
    %634 = tpu.matmul %632, %633, %cst_270 {dimension_numbers = #tpu.dot_dimension_numbers<[1], [0], [0], [1], [0, 0, 1, 1], [], []>} : vector<8x128xbf16>, vector<128x512xbf16>, vector<8x512xf32> -> vector<8x512xf32>
    %635 = arith.addf %631, %634 : vector<8x512xf32>
    %636 = math.tanh %635 : vector<8x512xf32>
    %637 = vector.extract_strided_slice %636 {offsets = [0, 0], sizes = [8, 128], strides = [1, 1]} : vector<8x512xf32> to vector<8x128xf32>
    %cst_271 = arith.constant 5.000000e-01 : f32
    %638 = vector.broadcast %cst_271 : f32 to vector<8x128xf32>
    %639 = arith.mulf %638, %637 : vector<8x128xf32>
    %cst_272 = arith.constant 5.000000e-01 : f32
    %640 = vector.broadcast %cst_272 : f32 to vector<8x128xf32>
    %641 = arith.addf %639, %640 : vector<8x128xf32>
    %642 = vector.extract_strided_slice %636 {offsets = [0, 128], sizes = [8, 128], strides = [1, 1]} : vector<8x512xf32> to vector<8x128xf32>
    %cst_273 = arith.constant 5.000000e-01 : f32
    %643 = vector.broadcast %cst_273 : f32 to vector<8x128xf32>
    %644 = arith.mulf %643, %642 : vector<8x128xf32>
    %cst_274 = arith.constant 5.000000e-01 : f32
    %645 = vector.broadcast %cst_274 : f32 to vector<8x128xf32>
    %646 = arith.addf %644, %645 : vector<8x128xf32>
    %647 = vector.extract_strided_slice %636 {offsets = [0, 256], sizes = [8, 128], strides = [1, 1]} : vector<8x512xf32> to vector<8x128xf32>
    %648 = vector.extract_strided_slice %636 {offsets = [0, 384], sizes = [8, 128], strides = [1, 1]} : vector<8x512xf32> to vector<8x128xf32>
    %cst_275 = arith.constant 5.000000e-01 : f32
    %649 = vector.broadcast %cst_275 : f32 to vector<8x128xf32>
    %650 = arith.mulf %649, %648 : vector<8x128xf32>
    %cst_276 = arith.constant 5.000000e-01 : f32
    %651 = vector.broadcast %cst_276 : f32 to vector<8x128xf32>
    %652 = arith.addf %650, %651 : vector<8x128xf32>
    %653 = arith.mulf %646, %625 : vector<8x128xf32>
    %654 = arith.mulf %641, %647 : vector<8x128xf32>
    %655 = arith.addf %653, %654 : vector<8x128xf32>
    %656 = math.tanh %655 : vector<8x128xf32>
    %657 = arith.mulf %652, %656 : vector<8x128xf32>
    %c4_i32_277 = arith.constant 4 : i32
    %c8_i32_278 = arith.constant 8 : i32
    %658 = arith.muli %c4_i32_277, %c8_i32_278 : i32
    %659 = tpu.assume_multiple %658, 8 : i32
    %660 = arith.index_cast %659 : i32 to index
    %c0_279 = arith.constant 0 : index
    %661 = vector.load %arg13[%660, %c0_279] : memref<64x512xf32, #tpu.memory_space<vmem>>, vector<8x512xf32>
    %662 = arith.truncf %657 : vector<8x128xf32> to vector<8x128xbf16>
    %c0_280 = arith.constant 0 : index
    %c0_281 = arith.constant 0 : index
    %663 = vector.load %arg8[%c0_280, %c0_281] : memref<128x512xbf16, #tpu.memory_space<vmem>>, vector<128x512xbf16>
    %cst_282 = arith.constant dense<0.000000e+00> : vector<8x512xf32>
    %664 = tpu.matmul %662, %663, %cst_282 {dimension_numbers = #tpu.dot_dimension_numbers<[1], [0], [0], [1], [0, 0, 1, 1], [], []>} : vector<8x128xbf16>, vector<128x512xbf16>, vector<8x512xf32> -> vector<8x512xf32>
    %665 = arith.addf %661, %664 : vector<8x512xf32>
    %666 = math.tanh %665 : vector<8x512xf32>
    %667 = vector.extract_strided_slice %666 {offsets = [0, 0], sizes = [8, 128], strides = [1, 1]} : vector<8x512xf32> to vector<8x128xf32>
    %cst_283 = arith.constant 5.000000e-01 : f32
    %668 = vector.broadcast %cst_283 : f32 to vector<8x128xf32>
    %669 = arith.mulf %668, %667 : vector<8x128xf32>
    %cst_284 = arith.constant 5.000000e-01 : f32
    %670 = vector.broadcast %cst_284 : f32 to vector<8x128xf32>
    %671 = arith.addf %669, %670 : vector<8x128xf32>
    %672 = vector.extract_strided_slice %666 {offsets = [0, 128], sizes = [8, 128], strides = [1, 1]} : vector<8x512xf32> to vector<8x128xf32>
    %cst_285 = arith.constant 5.000000e-01 : f32
    %673 = vector.broadcast %cst_285 : f32 to vector<8x128xf32>
    %674 = arith.mulf %673, %672 : vector<8x128xf32>
    %cst_286 = arith.constant 5.000000e-01 : f32
    %675 = vector.broadcast %cst_286 : f32 to vector<8x128xf32>
    %676 = arith.addf %674, %675 : vector<8x128xf32>
    %677 = vector.extract_strided_slice %666 {offsets = [0, 256], sizes = [8, 128], strides = [1, 1]} : vector<8x512xf32> to vector<8x128xf32>
    %678 = vector.extract_strided_slice %666 {offsets = [0, 384], sizes = [8, 128], strides = [1, 1]} : vector<8x512xf32> to vector<8x128xf32>
    %cst_287 = arith.constant 5.000000e-01 : f32
    %679 = vector.broadcast %cst_287 : f32 to vector<8x128xf32>
    %680 = arith.mulf %679, %678 : vector<8x128xf32>
    %cst_288 = arith.constant 5.000000e-01 : f32
    %681 = vector.broadcast %cst_288 : f32 to vector<8x128xf32>
    %682 = arith.addf %680, %681 : vector<8x128xf32>
    %683 = arith.mulf %676, %655 : vector<8x128xf32>
    %684 = arith.mulf %671, %677 : vector<8x128xf32>
    %685 = arith.addf %683, %684 : vector<8x128xf32>
    %686 = math.tanh %685 : vector<8x128xf32>
    %687 = arith.mulf %682, %686 : vector<8x128xf32>
    %c5_i32_289 = arith.constant 5 : i32
    %c8_i32_290 = arith.constant 8 : i32
    %688 = arith.muli %c5_i32_289, %c8_i32_290 : i32
    %689 = tpu.assume_multiple %688, 8 : i32
    %690 = arith.index_cast %689 : i32 to index
    %c0_291 = arith.constant 0 : index
    %691 = vector.load %arg13[%690, %c0_291] : memref<64x512xf32, #tpu.memory_space<vmem>>, vector<8x512xf32>
    %692 = arith.truncf %687 : vector<8x128xf32> to vector<8x128xbf16>
    %c0_292 = arith.constant 0 : index
    %c0_293 = arith.constant 0 : index
    %693 = vector.load %arg8[%c0_292, %c0_293] : memref<128x512xbf16, #tpu.memory_space<vmem>>, vector<128x512xbf16>
    %cst_294 = arith.constant dense<0.000000e+00> : vector<8x512xf32>
    %694 = tpu.matmul %692, %693, %cst_294 {dimension_numbers = #tpu.dot_dimension_numbers<[1], [0], [0], [1], [0, 0, 1, 1], [], []>} : vector<8x128xbf16>, vector<128x512xbf16>, vector<8x512xf32> -> vector<8x512xf32>
    %695 = arith.addf %691, %694 : vector<8x512xf32>
    %696 = math.tanh %695 : vector<8x512xf32>
    %697 = vector.extract_strided_slice %696 {offsets = [0, 0], sizes = [8, 128], strides = [1, 1]} : vector<8x512xf32> to vector<8x128xf32>
    %cst_295 = arith.constant 5.000000e-01 : f32
    %698 = vector.broadcast %cst_295 : f32 to vector<8x128xf32>
    %699 = arith.mulf %698, %697 : vector<8x128xf32>
    %cst_296 = arith.constant 5.000000e-01 : f32
    %700 = vector.broadcast %cst_296 : f32 to vector<8x128xf32>
    %701 = arith.addf %699, %700 : vector<8x128xf32>
    %702 = vector.extract_strided_slice %696 {offsets = [0, 128], sizes = [8, 128], strides = [1, 1]} : vector<8x512xf32> to vector<8x128xf32>
    %cst_297 = arith.constant 5.000000e-01 : f32
    %703 = vector.broadcast %cst_297 : f32 to vector<8x128xf32>
    %704 = arith.mulf %703, %702 : vector<8x128xf32>
    %cst_298 = arith.constant 5.000000e-01 : f32
    %705 = vector.broadcast %cst_298 : f32 to vector<8x128xf32>
    %706 = arith.addf %704, %705 : vector<8x128xf32>
    %707 = vector.extract_strided_slice %696 {offsets = [0, 256], sizes = [8, 128], strides = [1, 1]} : vector<8x512xf32> to vector<8x128xf32>
    %708 = vector.extract_strided_slice %696 {offsets = [0, 384], sizes = [8, 128], strides = [1, 1]} : vector<8x512xf32> to vector<8x128xf32>
    %cst_299 = arith.constant 5.000000e-01 : f32
    %709 = vector.broadcast %cst_299 : f32 to vector<8x128xf32>
    %710 = arith.mulf %709, %708 : vector<8x128xf32>
    %cst_300 = arith.constant 5.000000e-01 : f32
    %711 = vector.broadcast %cst_300 : f32 to vector<8x128xf32>
    %712 = arith.addf %710, %711 : vector<8x128xf32>
    %713 = arith.mulf %706, %685 : vector<8x128xf32>
    %714 = arith.mulf %701, %707 : vector<8x128xf32>
    %715 = arith.addf %713, %714 : vector<8x128xf32>
    %716 = math.tanh %715 : vector<8x128xf32>
    %717 = arith.mulf %712, %716 : vector<8x128xf32>
    %c6_i32_301 = arith.constant 6 : i32
    %c8_i32_302 = arith.constant 8 : i32
    %718 = arith.muli %c6_i32_301, %c8_i32_302 : i32
    %719 = tpu.assume_multiple %718, 8 : i32
    %720 = arith.index_cast %719 : i32 to index
    %c0_303 = arith.constant 0 : index
    %721 = vector.load %arg13[%720, %c0_303] : memref<64x512xf32, #tpu.memory_space<vmem>>, vector<8x512xf32>
    %722 = arith.truncf %717 : vector<8x128xf32> to vector<8x128xbf16>
    %c0_304 = arith.constant 0 : index
    %c0_305 = arith.constant 0 : index
    %723 = vector.load %arg8[%c0_304, %c0_305] : memref<128x512xbf16, #tpu.memory_space<vmem>>, vector<128x512xbf16>
    %cst_306 = arith.constant dense<0.000000e+00> : vector<8x512xf32>
    %724 = tpu.matmul %722, %723, %cst_306 {dimension_numbers = #tpu.dot_dimension_numbers<[1], [0], [0], [1], [0, 0, 1, 1], [], []>} : vector<8x128xbf16>, vector<128x512xbf16>, vector<8x512xf32> -> vector<8x512xf32>
    %725 = arith.addf %721, %724 : vector<8x512xf32>
    %726 = math.tanh %725 : vector<8x512xf32>
    %727 = vector.extract_strided_slice %726 {offsets = [0, 0], sizes = [8, 128], strides = [1, 1]} : vector<8x512xf32> to vector<8x128xf32>
    %cst_307 = arith.constant 5.000000e-01 : f32
    %728 = vector.broadcast %cst_307 : f32 to vector<8x128xf32>
    %729 = arith.mulf %728, %727 : vector<8x128xf32>
    %cst_308 = arith.constant 5.000000e-01 : f32
    %730 = vector.broadcast %cst_308 : f32 to vector<8x128xf32>
    %731 = arith.addf %729, %730 : vector<8x128xf32>
    %732 = vector.extract_strided_slice %726 {offsets = [0, 128], sizes = [8, 128], strides = [1, 1]} : vector<8x512xf32> to vector<8x128xf32>
    %cst_309 = arith.constant 5.000000e-01 : f32
    %733 = vector.broadcast %cst_309 : f32 to vector<8x128xf32>
    %734 = arith.mulf %733, %732 : vector<8x128xf32>
    %cst_310 = arith.constant 5.000000e-01 : f32
    %735 = vector.broadcast %cst_310 : f32 to vector<8x128xf32>
    %736 = arith.addf %734, %735 : vector<8x128xf32>
    %737 = vector.extract_strided_slice %726 {offsets = [0, 256], sizes = [8, 128], strides = [1, 1]} : vector<8x512xf32> to vector<8x128xf32>
    %738 = vector.extract_strided_slice %726 {offsets = [0, 384], sizes = [8, 128], strides = [1, 1]} : vector<8x512xf32> to vector<8x128xf32>
    %cst_311 = arith.constant 5.000000e-01 : f32
    %739 = vector.broadcast %cst_311 : f32 to vector<8x128xf32>
    %740 = arith.mulf %739, %738 : vector<8x128xf32>
    %cst_312 = arith.constant 5.000000e-01 : f32
    %741 = vector.broadcast %cst_312 : f32 to vector<8x128xf32>
    %742 = arith.addf %740, %741 : vector<8x128xf32>
    %743 = arith.mulf %736, %715 : vector<8x128xf32>
    %744 = arith.mulf %731, %737 : vector<8x128xf32>
    %745 = arith.addf %743, %744 : vector<8x128xf32>
    %746 = math.tanh %745 : vector<8x128xf32>
    %747 = arith.mulf %742, %746 : vector<8x128xf32>
    %c7_i32_313 = arith.constant 7 : i32
    %c8_i32_314 = arith.constant 8 : i32
    %748 = arith.muli %c7_i32_313, %c8_i32_314 : i32
    %749 = tpu.assume_multiple %748, 8 : i32
    %750 = arith.index_cast %749 : i32 to index
    %c0_315 = arith.constant 0 : index
    %751 = vector.load %arg13[%750, %c0_315] : memref<64x512xf32, #tpu.memory_space<vmem>>, vector<8x512xf32>
    %752 = arith.truncf %747 : vector<8x128xf32> to vector<8x128xbf16>
    %c0_316 = arith.constant 0 : index
    %c0_317 = arith.constant 0 : index
    %753 = vector.load %arg8[%c0_316, %c0_317] : memref<128x512xbf16, #tpu.memory_space<vmem>>, vector<128x512xbf16>
    %cst_318 = arith.constant dense<0.000000e+00> : vector<8x512xf32>
    %754 = tpu.matmul %752, %753, %cst_318 {dimension_numbers = #tpu.dot_dimension_numbers<[1], [0], [0], [1], [0, 0, 1, 1], [], []>} : vector<8x128xbf16>, vector<128x512xbf16>, vector<8x512xf32> -> vector<8x512xf32>
    %755 = arith.addf %751, %754 : vector<8x512xf32>
    %756 = math.tanh %755 : vector<8x512xf32>
    %757 = vector.extract_strided_slice %756 {offsets = [0, 0], sizes = [8, 128], strides = [1, 1]} : vector<8x512xf32> to vector<8x128xf32>
    %cst_319 = arith.constant 5.000000e-01 : f32
    %758 = vector.broadcast %cst_319 : f32 to vector<8x128xf32>
    %759 = arith.mulf %758, %757 : vector<8x128xf32>
    %cst_320 = arith.constant 5.000000e-01 : f32
    %760 = vector.broadcast %cst_320 : f32 to vector<8x128xf32>
    %761 = arith.addf %759, %760 : vector<8x128xf32>
    %762 = vector.extract_strided_slice %756 {offsets = [0, 128], sizes = [8, 128], strides = [1, 1]} : vector<8x512xf32> to vector<8x128xf32>
    %cst_321 = arith.constant 5.000000e-01 : f32
    %763 = vector.broadcast %cst_321 : f32 to vector<8x128xf32>
    %764 = arith.mulf %763, %762 : vector<8x128xf32>
    %cst_322 = arith.constant 5.000000e-01 : f32
    %765 = vector.broadcast %cst_322 : f32 to vector<8x128xf32>
    %766 = arith.addf %764, %765 : vector<8x128xf32>
    %767 = vector.extract_strided_slice %756 {offsets = [0, 256], sizes = [8, 128], strides = [1, 1]} : vector<8x512xf32> to vector<8x128xf32>
    %768 = vector.extract_strided_slice %756 {offsets = [0, 384], sizes = [8, 128], strides = [1, 1]} : vector<8x512xf32> to vector<8x128xf32>
    %cst_323 = arith.constant 5.000000e-01 : f32
    %769 = vector.broadcast %cst_323 : f32 to vector<8x128xf32>
    %770 = arith.mulf %769, %768 : vector<8x128xf32>
    %cst_324 = arith.constant 5.000000e-01 : f32
    %771 = vector.broadcast %cst_324 : f32 to vector<8x128xf32>
    %772 = arith.addf %770, %771 : vector<8x128xf32>
    %773 = arith.mulf %766, %745 : vector<8x128xf32>
    %774 = arith.mulf %761, %767 : vector<8x128xf32>
    %775 = arith.addf %773, %774 : vector<8x128xf32>
    %776 = math.tanh %775 : vector<8x128xf32>
    %777 = arith.mulf %772, %776 : vector<8x128xf32>
    %c8_i32_325 = arith.constant 8 : i32
    %c0_326 = arith.constant 0 : index
    %c0_327 = arith.constant 0 : index
    %778 = vector.load %arg10[%c0_326, %c0_327] : memref<128x128xf32, #tpu.memory_space<vmem>>, vector<128x128xf32>
    %cst_328 = arith.constant dense<0.000000e+00> : vector<8x128xf32>
    %779 = tpu.matmul %777, %778, %cst_328 {dimension_numbers = #tpu.dot_dimension_numbers<[1], [0], [0], [1], [0, 0, 1, 1], [], []>} : vector<8x128xf32>, vector<128x128xf32>, vector<8x128xf32> -> vector<8x128xf32>
    %c0_329 = arith.constant 0 : index
    %c0_330 = arith.constant 0 : index
    %780 = vector.load %arg11[%c0_329, %c0_330] : memref<1x128xf32, #tpu.memory_space<vmem>>, vector<1x128xf32>
    %781 = vector.broadcast %780 : vector<1x128xf32> to vector<8x128xf32>
    %782 = arith.addf %779, %781 : vector<8x128xf32>
    %c0_331 = arith.constant 0 : index
    %c0_332 = arith.constant 0 : index
    %783 = vector.load %arg12[%c0_331, %c0_332] : memref<8x128xf32, #tpu.memory_space<vmem>>, vector<8x128xf32>
    tpu.vector_store %arg12[%c0_331, %c0_332], %782 {strides = array<i32>} : memref<8x128xf32, #tpu.memory_space<vmem>>, vector<8x128xf32>,
    return
  }
}

</mosaic_0001>

<bundles_post_ra>
// kernel: tpu_custom_call.1
= control target key start
LH: loop header
LB: loop body
LE: loop exit
PB: predicated region body
PF: predicated region fallthrough
CT: control target
= control target key end

     0   :  { %17 = vsyncpa [#allocation6], 0  ;;  %s10899_s0 = inlined_call_operand.hbm [shape: bf16[64,128], index: 0, kind: input, shape index: {}]   ;;  %s10900_s1 = inlined_call_operand.hbm [shape: bf16[128,512], index: 1, kind: input, shape index: {}]   ;;  %s10901_s2 = inlined_call_operand.hbm [shape: bf16[128,512], index: 2, kind: input, shape index: {}]   ;;  %s10902_s3 = inlined_call_operand.vmem [shape: f32[1,512], index: 3, kind: input, shape index: {}]   ;;  %s10903_s4 = inlined_call_operand.hbm [shape: bf16[128,512], index: 4, kind: input, shape index: {}]   ;;  %s10904_s5 = inlined_call_operand.hbm [shape: bf16[128,512], index: 5, kind: input, shape index: {}]   ;;  %s10905_s6 = inlined_call_operand.vmem [shape: f32[1,512], index: 6, kind: input, shape index: {}]   ;;  %s10906_s7 = inlined_call_operand.hbm [shape: bf16[128,512], index: 7, kind: input, shape index: {}]   ;;  %s10907_s8 = inlined_call_operand.hbm [shape: bf16[128,512], index: 8, kind: input, shape index: {}]   ;;  %s10908_s9 = inlined_call_operand.vmem [shape: f32[1,512], index: 9, kind: input, shape index: {}]   ;;  %s10909_s10 = inlined_call_operand.hbm [shape: f32[128,128], index: 10, kind: input, shape index: {}]   ;;  %s10910_s11 = inlined_call_operand.vmem [shape: f32[1,128], index: 11, kind: input, shape index: {}]   ;;  %s10911_s12 = inlined_call_operand.hbm [shape: f32[8,128], index: 12, kind: output, shape index: {}]  }
   0x1   :  { %18 = vsyncpa [#allocation9], 0 }
   0x2   :  { %19 = vsyncpa [#allocation12], 0 }
   0x3   :  { %20 = vsyncpa [#allocation15], 0 }
   0x4   :  { %21 = vsyncpa [#allocation18], 0 }
   0x5   :  { %22 = vsyncpa [#allocation7], 0  ;;  %s8975_s21 = smov [#allocation8]   ;;  %s8765_s25 = scalar_lea.hbm %s10900_s1, 4096 }
   0x6   :  { %s40_s22 = sshll.u32 %s8975_s21, 4  ;;  %p8766_p0 = scmp.ne.s32.totalorder %s10900_s1, %s8765_s25  ;;  %s41_s22 = int_to_ptr.vmem [resolvable:$true] %s40_s22 }
   0x7   :  { %p8769_p1 = scmp.lt.u32.totalorder %s8765_s25, %s10900_s1 }
   0x9   :  { %p8771_p2 = pnand %p8769_p1, %p8766_p0 }
   0xb   :  { %8774 = shalt.err (!%p8771_p2)
}
   0xc   :  { %s8775_s30 = scalar_lea.vmem %s41_s22, 4096  ;;  %p8780_p4 = scmp.lt.s32.totalorder %s41_s22, %s41_s22 }
   0xd   :  { %p8776_p3 = scmp.ne.s32.totalorder %s41_s22, %s8775_s30  ;;  %p8781_p5 = scmp.lt.s32.totalorder %s8775_s30, %s8775_s30 }
   0xf   :  { %p8782_p6 = por %p8781_p5, %p8780_p4 }
  0x11   :  { %p8783_p7 = pnand %p8782_p6, %p8776_p3 }
  0x13   :  { %8786 = shalt.err (!%p8783_p7)
}
  0x14   :  { %s8976_s13 = smov 256   ;;  %s8977_s14 = smov 16  }
  0x15   :  { %46 = dma.hbm_to_vmem [thread:$0]  %s10900_s1, 4096, %s41_s22, [#allocation9], %s8976_s13, %s8976_s13, %s8977_s14  }
  0x16   :  { %s8978_s17 = smov [#allocation11]   ;;  %s8979_s19 = smov [#allocation14]  }
  0x17   :  { %s66_s18 = sshll.u32 %s8978_s17, 4  ;;  %s92_s20 = sshll.u32 %s8979_s19, 4  ;;  %s67_s18 = int_to_ptr.vmem [resolvable:$true] %s66_s18  ;;  %s93_s20 = int_to_ptr.vmem [resolvable:$true] %s92_s20 }
  0x18   :  { %s8787_s24 = scalar_lea.hbm %s10903_s4, 4096 }
  0x19   :  { %p8788_p8 = scmp.ne.s32.totalorder %s10903_s4, %s8787_s24  ;;  %p8791_p9 = scmp.lt.u32.totalorder %s8787_s24, %s10903_s4 }
  0x1b   :  { %p8793_p10 = pnand %p8791_p9, %p8788_p8 }
  0x1d   :  { %8796 = shalt.err (!%p8793_p10)
}
  0x1e   :  { %s8797_s1 = scalar_lea.vmem %s67_s18, 4096  ;;  %p8802_p12 = scmp.lt.s32.totalorder %s67_s18, %s67_s18 }
  0x1f   :  { %p8798_p11 = scmp.ne.s32.totalorder %s67_s18, %s8797_s1  ;;  %p8803_p13 = scmp.lt.s32.totalorder %s8797_s1, %s8797_s1 }
  0x21   :  { %p8804_p0 = por %p8803_p13, %p8802_p12 }
  0x23   :  { %p8805_p1 = pnand %p8804_p0, %p8798_p11 }
  0x25   :  { %8808 = shalt.err (!%p8805_p1)
}
  0x26   :  { %72 = dma.hbm_to_vmem [thread:$0]  %s10903_s4, 4096, %s67_s18, [#allocation12], %s8976_s13, %s8976_s13, %s8977_s14  }
  0x27   :  { %s8809_s16 = scalar_lea.hbm %s10906_s7, 4096 }
  0x28   :  { %p8810_p2 = scmp.ne.s32.totalorder %s10906_s7, %s8809_s16  ;;  %p8813_p3 = scmp.lt.u32.totalorder %s8809_s16, %s10906_s7 }
  0x2a   :  { %p8815_p4 = pnand %p8813_p3, %p8810_p2 }
  0x2c   :  { %8818 = shalt.err (!%p8815_p4)
}
  0x2d   :  { %s8819_s24 = scalar_lea.vmem %s93_s20, 4096  ;;  %p8824_p6 = scmp.lt.s32.totalorder %s93_s20, %s93_s20 }
  0x2e   :  { %p8820_p5 = scmp.ne.s32.totalorder %s93_s20, %s8819_s24  ;;  %p8825_p7 = scmp.lt.s32.totalorder %s8819_s24, %s8819_s24 }
  0x30   :  { %p8826_p8 = por %p8825_p7, %p8824_p6 }
  0x32   :  { %p8827_p9 = pnand %p8826_p8, %p8820_p5 }
  0x34   :  { %8830 = shalt.err (!%p8827_p9)
}
  0x35   :  { %98 = dma.hbm_to_vmem [thread:$0]  %s10906_s7, 4096, %s93_s20, [#allocation15], %s8976_s13, %s8976_s13, %s8977_s14  }
  0x36   :  { %s8980_s25 = smov [#allocation5]   ;;  %s8831_s1 = scalar_lea.hbm %s10899_s0, 512 }
  0x37   :  { %s28_s26 = sshll.u32 %s8980_s25, 4  ;;  %p8832_p10 = scmp.ne.s32.totalorder %s10899_s0, %s8831_s1  ;;  %s29_s26 = int_to_ptr.vmem [resolvable:$true] %s28_s26 }
  0x38   :  { %p8835_p11 = scmp.lt.u32.totalorder %s8831_s1, %s10899_s0 }
  0x3a   :  { %p8837_p12 = pnand %p8835_p11, %p8832_p10 }
  0x3c   :  { %8840 = shalt.err (!%p8837_p12)
}
  0x3d   :  { %s8841_s16 = scalar_lea.vmem %s29_s26, 512  ;;  %p8846_p0 = scmp.lt.s32.totalorder %s29_s26, %s29_s26 }
  0x3e   :  { %p8842_p13 = scmp.ne.s32.totalorder %s29_s26, %s8841_s16  ;;  %p8847_p1 = scmp.lt.s32.totalorder %s8841_s16, %s8841_s16 }
  0x40   :  { %p8848_p2 = por %p8847_p1, %p8846_p0 }
  0x42   :  { %p8849_p3 = pnand %p8848_p2, %p8842_p13 }
  0x44   :  { %8852 = shalt.err (!%p8849_p3)
}
  0x45   :  { %s8981_s7 = smov 64   ;;  %s8982_s20 = smov 4  }
  0x46   :  { %34 = dma.hbm_to_vmem [thread:$0]  %s10899_s0, 512, %s29_s26, [#allocation6], %s8981_s7, %s8981_s7, %s8982_s20  }
  0x47   :  { %s8983_s21 = smov [#allocation10]   ;;  %s8984_s24 = smov [#allocation13]  }
  0x48   :  { %s52_s23 = sshll.u32 %s8983_s21, 4  ;;  %s78_s4 = sshll.u32 %s8984_s24, 4  ;;  %s53_s23 = int_to_ptr.vmem [resolvable:$true] %s52_s23  ;;  %s9116_s4 = int_to_ptr.vmem [resolvable:$true] %s78_s4 }
  0x49   :  { %s8853_s27 = scalar_lea.hbm %s10901_s2, 4096 }
  0x4a   :  { %p8854_p4 = scmp.ne.s32.totalorder %s10901_s2, %s8853_s27  ;;  %p8857_p5 = scmp.lt.u32.totalorder %s8853_s27, %s10901_s2 }
  0x4c   :  { %p8859_p6 = pnand %p8857_p5, %p8854_p4 }
  0x4e   :  { %8862 = shalt.err (!%p8859_p6)
}
  0x4f   :  { %s8863_s0 = scalar_lea.vmem %s53_s23, 4096  ;;  %p8868_p8 = scmp.lt.s32.totalorder %s53_s23, %s53_s23 }
  0x50   :  { %p8864_p7 = scmp.ne.s32.totalorder %s53_s23, %s8863_s0  ;;  %p8869_p9 = scmp.lt.s32.totalorder %s8863_s0, %s8863_s0 }
  0x52   :  { %p8870_p10 = por %p8869_p9, %p8868_p8 }
  0x54   :  { %p8871_p11 = pnand %p8870_p10, %p8864_p7 }
  0x56   :  { %8874 = shalt.err (!%p8871_p11)
}
  0x57   :  { %58 = dma.hbm_to_vmem [thread:$0]  %s10901_s2, 4096, %s53_s23, [#allocation9], %s8976_s13, %s8976_s13, %s8977_s14  }
  0x58   :  { %s8875_s7 = scalar_lea.hbm %s10904_s5, 4096 }
  0x59   :  { %p8876_p12 = scmp.ne.s32.totalorder %s10904_s5, %s8875_s7  ;;  %p8879_p13 = scmp.lt.u32.totalorder %s8875_s7, %s10904_s5 }
  0x5b   :  { %p8881_p0 = pnand %p8879_p13, %p8876_p12 }
  0x5d   :  { %8884 = shalt.err (!%p8881_p0)
}
  0x5e   :  { %s8885_s24 = scalar_lea.vmem %s9116_s4, 4096  ;;  %p8890_p2 = scmp.lt.s32.totalorder %s9116_s4, %s9116_s4 }
  0x5f   :  { %p8886_p1 = scmp.ne.s32.totalorder %s9116_s4, %s8885_s24  ;;  %p8891_p3 = scmp.lt.s32.totalorder %s8885_s24, %s8885_s24 }
  0x61   :  { %p8892_p4 = por %p8891_p3, %p8890_p2 }
  0x63   :  { %p8893_p5 = pnand %p8892_p4, %p8886_p1 }
  0x65   :  { %8896 = shalt.err (!%p8893_p5)
}
  0x66   :  { %84 = dma.hbm_to_vmem [thread:$0]  %s10904_s5, 4096, %s9116_s4, [#allocation12], %s8976_s13, %s8976_s13, %s8977_s14  }
  0x67   :  { %s8985_s18 = smov [#allocation16]   ;;  %s8986_s27 = smov [#allocation17]  }
  0x68   :  { %s104_s25 = sshll.u32 %s8985_s18, 4  ;;  %s118_s28 = sshll.u32 %s8986_s27, 4  ;;  %s105_s25 = int_to_ptr.vmem [resolvable:$true] %s104_s25  ;;  %s9153_s28 = int_to_ptr.vmem [resolvable:$true] %s118_s28 }
  0x69   :  { %s8897_s29 = scalar_lea.hbm %s10907_s8, 4096 }
  0x6a   :  { %p8898_p6 = scmp.ne.s32.totalorder %s10907_s8, %s8897_s29  ;;  %p8901_p7 = scmp.lt.u32.totalorder %s8897_s29, %s10907_s8 }
  0x6c   :  { %p8903_p8 = pnand %p8901_p7, %p8898_p6 }
  0x6e   :  { %8906 = shalt.err (!%p8903_p8)
}
  0x6f   :  { %s8907_s5 = scalar_lea.vmem %s105_s25, 4096  ;;  %p8912_p10 = scmp.lt.s32.totalorder %s105_s25, %s105_s25 }
  0x70   :  { %p8908_p9 = scmp.ne.s32.totalorder %s105_s25, %s8907_s5  ;;  %p8913_p11 = scmp.lt.s32.totalorder %s8907_s5, %s8907_s5 }
  0x72   :  { %p8914_p12 = por %p8913_p11, %p8912_p10 }
  0x74   :  { %p8915_p13 = pnand %p8914_p12, %p8908_p9 }
  0x76   :  { %8918 = shalt.err (!%p8915_p13)
}
  0x77   :  { %110 = dma.hbm_to_vmem [thread:$0]  %s10907_s8, 4096, %s105_s25, [#allocation15], %s8976_s13, %s8976_s13, %s8977_s14  }
  0x78   :  { %s8919_s17 = scalar_lea.hbm %s10909_s10, 2048 }
  0x79   :  { %p8920_p0 = scmp.ne.s32.totalorder %s10909_s10, %s8919_s17  ;;  %p8923_p1 = scmp.lt.u32.totalorder %s8919_s17, %s10909_s10 }
  0x7b   :  { %p8925_p2 = pnand %p8923_p1, %p8920_p0 }
  0x7d   :  { %8928 = shalt.err (!%p8925_p2)
}
  0x7e   :  { %s8929_s23 = scalar_lea.vmem %s9153_s28, 2048  ;;  %p8934_p4 = scmp.lt.s32.totalorder %s9153_s28, %s9153_s28 }
  0x7f   :  { %p8930_p3 = scmp.ne.s32.totalorder %s9153_s28, %s8929_s23  ;;  %p8935_p5 = scmp.lt.s32.totalorder %s8929_s23, %s8929_s23 }
  0x81   :  { %p8936_p6 = por %p8935_p5, %p8934_p4 }
  0x83   :  { %p8937_p7 = pnand %p8936_p6, %p8930_p3 }
  0x85   :  { %8940 = shalt.err (!%p8937_p7)
}
  0x86   :  { %s8987_s8 = smov 128   ;;  %s8988_s13 = smov 8  }
  0x87   :  { %124 = dma.hbm_to_vmem [thread:$0]  %s10909_s10, 2048, %s9153_s28, [#allocation18], %s8987_s8, %s8987_s8, %s8988_s13  }
  0x88   :  { %8963 = dma.done.wait [#allocation6], 512  }
  0x89   :  { %8964 = vsyncadd [#allocation6], 4294966784 }
  0x8a   :  { %8965 = dma.done.wait [#allocation9], 8192  }
  0x8b   :  { %8966 = vsyncadd [#allocation9], 4294959104 }
  0x8c   :  { %8967 = dma.done.wait [#allocation12], 8192  }
  0x8d   :  { %8968 = vsyncadd [#allocation12], 4294959104 }
  0x8e   :  { %8969 = dma.done.wait [#allocation15], 8192  }
  0x8f   :  { %8970 = vsyncadd [#allocation15], 4294959104 }
  0x90   :  { %8971 = dma.done.wait [#allocation18], 2048  }
  0x91   :  { %8972 = vsyncadd [#allocation18], 4294965248  ;;  %v10912_v0 = vmov 0   ;;  %v8103_v1 = vld [vmem:[#allocation8 + $0x4] ss:$16 sps:$4 sm:$0xff]   ;;  %v8164_v44 = vld [vmem:[#allocation5 + $0x8] sm:$0xff]  }
  0x92   :  { %430 = vmatprep.mubr.bf16.mxu0 %v10912_v0  ;;  %503 = vmatprep.mubr.bf16.mxu1 %v10912_v0  ;;  %v8105_v2 = vld [vmem:[#allocation8 + $0xc] ss:$16 sps:$4 sm:$0xff]   ;;  %v8107_v3 = vld [vmem:[#allocation8] ss:$16 sps:$4 sm:$0xff]   ;;  %v8108_v4 = vld [vmem:[#allocation8 + $0x8] ss:$16 sps:$4 sm:$0xff]  }
  0x93   :  { %398 = vmatprep.subr.bf16.mxu0 %v8103_v1  ;;  %471 = vmatprep.subr.bf16.mxu1 %v8105_v2  ;;  %v8109_v5 = vld [vmem:[#allocation8 + $0x24] ss:$16 sps:$4 sm:$0xff]   ;;  %v8111_v6 = vld [vmem:[#allocation8 + $0x2c] ss:$16 sps:$4 sm:$0xff]   ;;  %v8113_v7 = vld [vmem:[#allocation8 + $0x20] ss:$16 sps:$4 sm:$0xff]  }
  0x94   :  { %399 = vmatpush1.bf16.msra.mxu0 %v8107_v3  ;;  %472 = vmatpush1.bf16.msra.mxu1 %v8108_v4  ;;  %v8114_v8 = vld [vmem:[#allocation8 + $0x28] ss:$16 sps:$4 sm:$0xff]   ;;  %v8115_v9 = vld [vmem:[#allocation8 + $0x44] ss:$16 sps:$4 sm:$0xff]   ;;  %v8117_v10 = vld [vmem:[#allocation8 + $0x4c] ss:$16 sps:$4 sm:$0xff]  }
  0x95   :  { %400 = vmatprep.subr.bf16.mxu0 %v8109_v5  ;;  %473 = vmatprep.subr.bf16.mxu1 %v8111_v6  ;;  %v8119_v11 = vld [vmem:[#allocation8 + $0x40] ss:$16 sps:$4 sm:$0xff]   ;;  %v8120_v12 = vld [vmem:[#allocation8 + $0x48] ss:$16 sps:$4 sm:$0xff]   ;;  %v8121_v13 = vld [vmem:[#allocation8 + $0x64] ss:$16 sps:$4 sm:$0xff]   ;;  %v194_v6 = vlaneseq }
  0x96   :  { %v8123_v14 = vld [vmem:[#allocation8 + $0x6c] ss:$16 sps:$4 sm:$0xff]   ;;  %v8125_v15 = vld [vmem:[#allocation8 + $0x60] ss:$16 sps:$4 sm:$0xff]   ;;  %v8126_v16 = vld [vmem:[#allocation8 + $0x68] ss:$16 sps:$4 sm:$0xff]  }
  0x97   :  { %v8127_v17 = vld [vmem:[#allocation8 + $0x84] ss:$16 sps:$4 sm:$0xff]   ;;  %v8129_v18 = vld [vmem:[#allocation8 + $0x8c] ss:$16 sps:$4 sm:$0xff]   ;;  %v8131_v19 = vld [vmem:[#allocation8 + $0x80] ss:$16 sps:$4 sm:$0xff]  }
  0x98   :  { %401 = vmatpush1.bf16.msra.mxu0 %v8113_v7  ;;  %474 = vmatpush1.bf16.msra.mxu1 %v8114_v8  ;;  %v8132_v20 = vld [vmem:[#allocation8 + $0x88] ss:$16 sps:$4 sm:$0xff]   ;;  %v8133_v21 = vld [vmem:[#allocation8 + $0xa4] ss:$16 sps:$4 sm:$0xff]   ;;  %v8135_v22 = vld [vmem:[#allocation8 + $0xac] ss:$16 sps:$4 sm:$0xff]  }
  0x99   :  { %402 = vmatprep.subr.bf16.mxu0 %v8115_v9  ;;  %475 = vmatprep.subr.bf16.mxu1 %v8117_v10  ;;  %v8137_v23 = vld [vmem:[#allocation8 + $0xa0] ss:$16 sps:$4 sm:$0xff]   ;;  %v8138_v24 = vld [vmem:[#allocation8 + $0xa8] ss:$16 sps:$4 sm:$0xff]   ;;  %v8139_v25 = vld [vmem:[#allocation8 + $0xc4] ss:$16 sps:$4 sm:$0xff]  }
  0x9a   :  { %v8141_v26 = vld [vmem:[#allocation8 + $0xcc] ss:$16 sps:$4 sm:$0xff]   ;;  %v8143_v27 = vld [vmem:[#allocation8 + $0xc0] ss:$16 sps:$4 sm:$0xff]   ;;  %v8144_v28 = vld [vmem:[#allocation8 + $0xc8] ss:$16 sps:$4 sm:$0xff]  }
  0x9b   :  { %v8145_v29 = vld [vmem:[#allocation8 + $0xe4] ss:$16 sps:$4 sm:$0xff]   ;;  %v8147_v30 = vld [vmem:[#allocation8 + $0xec] ss:$16 sps:$4 sm:$0xff]   ;;  %v8149_v31 = vld [vmem:[#allocation8 + $0xe0] ss:$16 sps:$4 sm:$0xff]  }
  0x9c   :  { %403 = vmatpush1.bf16.msra.mxu0 %v8119_v11  ;;  %476 = vmatpush1.bf16.msra.mxu1 %v8120_v12  ;;  %v8150_v32 = vld [vmem:[#allocation8 + $0xe8] ss:$16 sps:$4 sm:$0xff]   ;;  %v9189_v33 = vld [vmem:[#allocation10 + $0x4] ss:$16 sps:$4 sm:$0xff]   ;;  %v9191_v34 = vld [vmem:[#allocation10 + $0xc] ss:$16 sps:$4 sm:$0xff]  }
  0x9d   :  { %404 = vmatprep.subr.bf16.mxu0 %v8121_v13  ;;  %477 = vmatprep.subr.bf16.mxu1 %v8123_v14  ;;  %v8151_v35 = vld [vmem:[#allocation5] sm:$0xff]   ;;  %v9195_v37 = vld [vmem:[#allocation10 + $0x8] ss:$16 sps:$4 sm:$0xff]   ;;  %v9201_v39 = vld [vmem:[#allocation10 + $0x2c] ss:$16 sps:$4 sm:$0xff]   ;;  %v195_v7 = vshrl.u32 %v194_v6, 7 }
  0x9e   :  { %v9193_v36 = vld [vmem:[#allocation10] ss:$16 sps:$4 sm:$0xff]   ;;  %v9199_v38 = vld [vmem:[#allocation10 + $0x24] ss:$16 sps:$4 sm:$0xff]   ;;  %v9207_v41 = vld [vmem:[#allocation10 + $0x28] ss:$16 sps:$4 sm:$0xff]  }
  0x9f   :  { %v9203_v40 = vld [vmem:[#allocation10 + $0x20] ss:$16 sps:$4 sm:$0xff]   ;;  %v9211_v42 = vld [vmem:[#allocation10 + $0x44] ss:$16 sps:$4 sm:$0xff]   ;;  %v9213_v43 = vld [vmem:[#allocation10 + $0x4c] ss:$16 sps:$4 sm:$0xff]  }
  0xa0   :  { %405 = vmatpush1.bf16.msra.mxu0 %v8125_v15  ;;  %478 = vmatpush1.bf16.msra.mxu1 %v8126_v16  ;;  %v9217_v45 = vld [vmem:[#allocation10 + $0x40] ss:$16 sps:$4 sm:$0xff]   ;;  %v9219_v46 = vld [vmem:[#allocation10 + $0x48] ss:$16 sps:$4 sm:$0xff]   ;;  %v9223_v47 = vld [vmem:[#allocation10 + $0x64] ss:$16 sps:$4 sm:$0xff]  }
  0xa1   :  { %406 = vmatprep.subr.bf16.mxu0 %v8127_v17  ;;  %479 = vmatprep.subr.bf16.mxu1 %v8129_v18  ;;  %v9227_v48 = vld [vmem:[#allocation10 + $0x6c] ss:$16 sps:$4 sm:$0xff]   ;;  %v9229_v49 = vld [vmem:[#allocation10 + $0x60] ss:$16 sps:$4 sm:$0xff]   ;;  %v9231_v50 = vld [vmem:[#allocation10 + $0x68] ss:$16 sps:$4 sm:$0xff]  }
  0xa2   :  { %v9235_v51 = vld [vmem:[#allocation10 + $0x84] ss:$16 sps:$4 sm:$0xff]   ;;  %v9239_v52 = vld [vmem:[#allocation10 + $0x8c] ss:$16 sps:$4 sm:$0xff]   ;;  %v9243_v54 = vld [vmem:[#allocation10 + $0x80] ss:$16 sps:$4 sm:$0xff]  }
  0xa3   :  { %v8177_v53 = vld [vmem:[#allocation5 + $0x10] sm:$0xff]   ;;  %v9245_v55 = vld [vmem:[#allocation10 + $0x88] ss:$16 sps:$4 sm:$0xff]   ;;  %v9249_v57 = vld [vmem:[#allocation10 + $0xac] ss:$16 sps:$4 sm:$0xff]   ;;  %v9331_v8 = vsub.s32 2, %v195_v7 }
  0xa4   :  { %407 = vmatpush1.bf16.msra.mxu0 %v8131_v19  ;;  %480 = vmatpush1.bf16.msra.mxu1 %v8132_v20  ;;  %v9247_v56 = vld [vmem:[#allocation10 + $0xa4] ss:$16 sps:$4 sm:$0xff]   ;;  %v9255_v58 = vld [vmem:[#allocation10 + $0xa0] ss:$16 sps:$4 sm:$0xff]   ;;  %v9257_v59 = vld [vmem:[#allocation10 + $0xa8] ss:$16 sps:$4 sm:$0xff]  }
  0xa5   :  { %408 = vmatprep.subr.bf16.mxu0 %v8133_v21  ;;  %481 = vmatprep.subr.bf16.mxu1 %v8135_v22  ;;  %v9259_v60 = vld [vmem:[#allocation10 + $0xc4] ss:$16 sps:$4 sm:$0xff]   ;;  %v9261_v61 = vld [vmem:[#allocation10 + $0xcc] ss:$16 sps:$4 sm:$0xff]   ;;  %v9269_v63 = vld [vmem:[#allocation10 + $0xc0] ss:$16 sps:$4 sm:$0xff]  }
  0xa6   :  { %v8190_v62 = vld [vmem:[#allocation5 + $0x18] sm:$0xff]   ;;  %v9273_v2 = vld [vmem:[#allocation10 + $0xe4] ss:$16 sps:$4 sm:$0xff]   ;;  %v9281_v4 = vld [vmem:[#allocation10 + $0xe0] ss:$16 sps:$4 sm:$0xff]   ;;  %10922 = vst [vmem:[#allocation26_spill] sm:$0xff] %v9331_v8 }
  0xa7   :  { %v9271_v1 = vld [vmem:[#allocation10 + $0xc8] ss:$16 sps:$4 sm:$0xff]   ;;  %v9275_v3 = vld [vmem:[#allocation10 + $0xec] ss:$16 sps:$4 sm:$0xff]   ;;  %v9333_v9 = vsub.s32 3, %v195_v7  ;;  %v9335_v10 = vsub.s32 0, %v195_v7 }
  0xa8   :  { %409 = vmatpush1.bf16.msra.mxu0 %v8137_v23  ;;  %482 = vmatpush1.bf16.msra.mxu1 %v8138_v24  ;;  %v9283_v5 = vld [vmem:[#allocation10 + $0xe8] ss:$16 sps:$4 sm:$0xff]   ;;  %v192_v11 = vld [vmem:[%s10902_s3] sm:$0xf]  ;;  %v9340_v12 = vsub.s32 1, %v195_v7  ;;  %vm8991_vm0 = vmmov 0  }
  0xa9   :  { %410 = vmatprep.subr.bf16.mxu0 %v8139_v25  ;;  %483 = vmatprep.subr.bf16.mxu1 %v8141_v26  ;;  %10923 = vst [vmem:[#allocation27_spill] sm:$0xff] %v9333_v9  ;;  %10924 = vst [vmem:[#allocation28_spill] sm:$0xff] %v9335_v10  ;;  %v9343_v13 = vrot.slane %v192_v11, %v9331_v8  ;;  %v9350_v16 = vrot.slane %v192_v11, %v9333_v9  ;;  %s8993_s22 = smov [#allocation19]  }
  0xaa   :  { %10925 = vst [vmem:[#allocation29_spill] sm:$0xff] %v9340_v12  ;;  %v197_v17 = vrot.slane %v192_v11, %v9335_v10  ;;  %v201_v20 = vrot.slane %v192_v11, %v9340_v12  ;;  %s7343_s29 = sshll.u32 %s8993_s22, 4  ;;  %s7344_s29 = int_to_ptr.vmem [resolvable:$true] %s7343_s29 }
  0xab   :  { %s8941_s0 = scalar_lea.vmem %s7344_s29, 128  ;;  %p8946_p9 = scmp.lt.s32.totalorder %s7344_s29, %s7344_s29 }
  0xac   :  { %411 = vmatpush1.bf16.msra.mxu0 %v8143_v27  ;;  %484 = vmatpush1.bf16.msra.mxu1 %v8144_v28  ;;  %p8942_p8 = scmp.ne.s32.totalorder %s7344_s29, %s8941_s0  ;;  %p8947_p10 = scmp.lt.s32.totalorder %s8941_s0, %s8941_s0 }
  0xad   :  { %412 = vmatprep.subr.bf16.mxu0 %v8145_v29  ;;  %485 = vmatprep.subr.bf16.mxu1 %v8147_v30 }
  0xae   :  { %p8948_p11 = por %p8947_p10, %p8946_p9 }
  0xb0   :  { %413 = vmatpush1.bf16.msra.mxu0 %v8149_v31  ;;  %486 = vmatpush1.bf16.msra.mxu1 %v8150_v32  ;;  %p8949_p12 = pnand %p8948_p11, %p8942_p8 }
  0xb1   :  { %775 = vmatprep.subr.bf16.mxu0 %v9189_v33  ;;  %816 = vmatprep.subr.bf16.mxu1 %v9191_v34 }
  0xb3   :  { %431 = vmatmul.mubr.bf16.vlgmr.msra.gmra.mrb[0].mxu0 %v8151_v35  ;;  %504 = vmatmul.mubr.bf16.vlgmr.msra.gmra.mrb[0].mxu1 %v8151_v35 }
  0xb4   :  { %776 = vmatpush1.bf16.msra.mxu0 %v9193_v36  ;;  %817 = vmatpush1.bf16.msra.mxu1 %v9195_v37 }
  0xb5   :  { %777 = vmatprep.subr.bf16.mxu0 %v9199_v38  ;;  %818 = vmatprep.subr.bf16.mxu1 %v9201_v39 }
  0xb6   :  { %440 = vmatprep.mubr.bf16.mxu0 %v10912_v0  ;;  %513 = vmatprep.mubr.bf16.mxu1 %v10912_v0 }
  0xb8   :  { %778 = vmatpush1.bf16.msra.mxu0 %v9203_v40  ;;  %819 = vmatpush1.bf16.msra.mxu1 %v9207_v41 }
  0xb9   :  { %779 = vmatprep.subr.bf16.mxu0 %v9211_v42  ;;  %820 = vmatprep.subr.bf16.mxu1 %v9213_v43 }
  0xbb   :  { %441 = vmatmul.mubr.bf16.gmra.mrb[4].mxu0 %v8164_v44  ;;  %514 = vmatmul.mubr.bf16.gmra.mrb[4].mxu1 %v8164_v44 }
  0xbc   :  { %780 = vmatpush1.bf16.msra.mxu0 %v9217_v45  ;;  %821 = vmatpush1.bf16.msra.mxu1 %v9219_v46 }
  0xbd   :  { %781 = vmatprep.subr.bf16.mxu0 %v9223_v47  ;;  %822 = vmatprep.subr.bf16.mxu1 %v9227_v48 }
  0xbe   :  { %450 = vmatprep.mubr.bf16.mxu0 %v10912_v0  ;;  %523 = vmatprep.mubr.bf16.mxu1 %v10912_v0 }
  0xc0   :  { %782 = vmatpush1.bf16.msra.mxu0 %v9229_v49  ;;  %823 = vmatpush1.bf16.msra.mxu1 %v9231_v50 }
  0xc1   :  { %783 = vmatprep.subr.bf16.mxu0 %v9235_v51  ;;  %824 = vmatprep.subr.bf16.mxu1 %v9239_v52 }
  0xc3   :  { %451 = vmatmul.mubr.bf16.gmra.mrb[8].mxu0 %v8177_v53  ;;  %524 = vmatmul.mubr.bf16.gmra.mrb[8].mxu1 %v8177_v53 }
  0xc4   :  { %784 = vmatpush1.bf16.msra.mxu0 %v9243_v54  ;;  %825 = vmatpush1.bf16.msra.mxu1 %v9245_v55 }
  0xc5   :  { %785 = vmatprep.subr.bf16.mxu0 %v9247_v56  ;;  %826 = vmatprep.subr.bf16.mxu1 %v9249_v57 }
  0xc6   :  { %460 = vmatprep.mubr.bf16.mxu0 %v10912_v0  ;;  %533 = vmatprep.mubr.bf16.mxu1 %v10912_v0 }
  0xc8   :  { %786 = vmatpush1.bf16.msra.mxu0 %v9255_v58  ;;  %827 = vmatpush1.bf16.msra.mxu1 %v9257_v59 }
  0xc9   :  { %787 = vmatprep.subr.bf16.mxu0 %v9259_v60  ;;  %828 = vmatprep.subr.bf16.mxu1 %v9261_v61 }
  0xcb   :  { %461 = vmatmul.mubr.bf16.gmra.mrb[12].mxu0 %v8190_v62  ;;  %534 = vmatmul.mubr.bf16.gmra.mrb[12].mxu1 %v8190_v62 }
  0xcc   :  { %788 = vmatpush1.bf16.msra.mxu0 %v9269_v63  ;;  %829 = vmatpush1.bf16.msra.mxu1 %v9271_v1 }
  0xcd   :  { %789 = vmatprep.subr.bf16.mxu0 %v9273_v2  ;;  %830 = vmatprep.subr.bf16.mxu1 %v9275_v3 }
  0xce   :  { %807 = vmatprep.mubr.bf16.mxu0 %v10912_v0  ;;  %848 = vmatprep.mubr.bf16.mxu1 %v10912_v0 }
  0xd0   :  { %790 = vmatpush1.bf16.msra.mxu0 %v9281_v4  ;;  %831 = vmatpush1.bf16.msra.mxu1 %v9283_v5 }
  0xd1   :  { %1077 = vmatprep.subr.bf16.mxu0 %v9189_v33  ;;  %1118 = vmatprep.subr.bf16.mxu1 %v9191_v34 }
  0xd3   :  { %808 = vmatmul.mubr.bf16.vlgmr.msra.gmra.mrb[16].mxu0 %v10912_v0  ;;  %849 = vmatmul.mubr.bf16.vlgmr.msra.gmra.mrb[16].mxu1 %v10912_v0 }
  0xd4   :  { %1078 = vmatpush1.bf16.msra.mxu0 %v9193_v36  ;;  %1119 = vmatpush1.bf16.msra.mxu1 %v9195_v37 }
  0xd5   :  { %1079 = vmatprep.subr.bf16.mxu0 %v9199_v38  ;;  %1120 = vmatprep.subr.bf16.mxu1 %v9201_v39 }
  0xd6   :  { %1109 = vmatprep.mubr.bf16.mxu0 %v10912_v0  ;;  %1150 = vmatprep.mubr.bf16.mxu1 %v10912_v0 }
  0xd8   :  { %1080 = vmatpush1.bf16.msra.mxu0 %v9203_v40  ;;  %1121 = vmatpush1.bf16.msra.mxu1 %v9207_v41 }
  0xd9   :  { %1081 = vmatprep.subr.bf16.mxu0 %v9211_v42  ;;  %1122 = vmatprep.subr.bf16.mxu1 %v9213_v43 }
  0xdc   :  { %1082 = vmatpush1.bf16.msra.mxu0 %v9217_v45  ;;  %1123 = vmatpush1.bf16.msra.mxu1 %v9219_v46 }
  0xdd   :  { %1083 = vmatprep.subr.bf16.mxu0 %v9223_v47  ;;  %1124 = vmatprep.subr.bf16.mxu1 %v9227_v48 }
  0xe0   :  { %1084 = vmatpush1.bf16.msra.mxu0 %v9229_v49  ;;  %1125 = vmatpush1.bf16.msra.mxu1 %v9231_v50 }
  0xe1   :  { %1085 = vmatprep.subr.bf16.mxu0 %v9235_v51  ;;  %1126 = vmatprep.subr.bf16.mxu1 %v9239_v52 }
  0xe4   :  { %1086 = vmatpush1.bf16.msra.mxu0 %v9243_v54  ;;  %1127 = vmatpush1.bf16.msra.mxu1 %v9245_v55 }
  0xe5   :  { %1087 = vmatprep.subr.bf16.mxu0 %v9247_v56  ;;  %1128 = vmatprep.subr.bf16.mxu1 %v9249_v57 }
  0xe8   :  { %1088 = vmatpush1.bf16.msra.mxu0 %v9255_v58  ;;  %1129 = vmatpush1.bf16.msra.mxu1 %v9257_v59 }
  0xe9   :  { %1089 = vmatprep.subr.bf16.mxu0 %v9259_v60  ;;  %1130 = vmatprep.subr.bf16.mxu1 %v9261_v61 }
  0xec   :  { %1090 = vmatpush1.bf16.msra.mxu0 %v9269_v63  ;;  %1131 = vmatpush1.bf16.msra.mxu1 %v9271_v1 }
  0xed   :  { %1091 = vmatprep.subr.bf16.mxu0 %v9273_v2  ;;  %1132 = vmatprep.subr.bf16.mxu1 %v9275_v3 }
  0xf0   :  { %1092 = vmatpush1.bf16.msra.mxu0 %v9281_v4  ;;  %1133 = vmatpush1.bf16.msra.mxu1 %v9283_v5 }
  0xf1   :  { %1380 = vmatprep.subr.bf16.mxu0 %v9189_v33  ;;  %1421 = vmatprep.subr.bf16.mxu1 %v9191_v34 }
 0x186   :  { %v9345_v14 = vpop.f32.mrb[0].mxu0  ;;  %v9347_v15 = vpop.f32.mrb[0].mxu1 }
 0x187   :  { %v434_v18 = vpop.f32.mrb[1].mxu0  ;;  %v507_v19 = vpop.f32.mrb[1].mxu1 }
 0x188   :  { %v436_v21 = vpop.f32.mrb[2].mxu0  ;;  %v509_v22 = vpop.f32.mrb[2].mxu1 }
 0x189   :  { %v9354_v23 = vadd.f32 %v436_v21, %v197_v17  ;;  %v438_v24 = vpop.f32.mrb[3].mxu0  ;;  %v9357_v25 = vadd.f32 %v509_v22, %v9343_v13  ;;  %v511_v26 = vpop.f32.mrb[3].mxu1 }
 0x18a   :  { %v9359_v27 = vadd.f32 %v438_v24, %v201_v20  ;;  %v9362_v28 = vadd.f32 %v511_v26, %v9350_v16 }
 0x18e   :  { %v442_v29 = vpop.f32.mrb[4].mxu0  ;;  %v515_v30 = vpop.f32.mrb[4].mxu1 }
 0x18f   :  { %v9364_v31 = vadd.f32 %v442_v29, %v197_v17  ;;  %v444_v32 = vpop.f32.mrb[5].mxu0  ;;  %v9367_v35 = vadd.f32 %v515_v30, %v9343_v13  ;;  %v517_v44 = vpop.f32.mrb[5].mxu1 }
 0x190   :  { %v9369_v53 = vadd.f32 %v444_v32, %v201_v20  ;;  %v446_v62 = vpop.f32.mrb[6].mxu0  ;;  %v9372_v6 = vadd.f32 %v517_v44, %v9350_v16  ;;  %v519_v7 = vpop.f32.mrb[6].mxu1 }
 0x191   :  { %v9374_v11 = vadd.f32 %v446_v62, %v197_v17  ;;  %v448_v21 = vpop.f32.mrb[7].mxu0  ;;  %v9377_v22 = vadd.f32 %v519_v7, %v9343_v13  ;;  %v521_v24 = vpop.f32.mrb[7].mxu1 }
 0x192   :  { %v9379_v26 = vadd.f32 %v448_v21, %v201_v20  ;;  %v9382_v29 = vadd.f32 %v521_v24, %v9350_v16 }
 0x193   :  { %10926 = vst [vmem:[#allocation30_spill] sm:$0xff] %v9374_v11  ;;  %10927 = vst [vmem:[#allocation31_spill] sm:$0xff] %v9377_v22 }
 0x194   :  { %10928 = vst [vmem:[#allocation32_spill] sm:$0xff] %v9379_v26  ;;  %10929 = vst [vmem:[#allocation33_spill] sm:$0xff] %v9382_v29 }
 0x196   :  { %v452_v30 = vpop.f32.mrb[8].mxu0  ;;  %v525_v32 = vpop.f32.mrb[8].mxu1 }
 0x197   :  { %v9384_v0 = vadd.f32 %v452_v30, %v197_v17  ;;  %v454_v9 = vpop.f32.mrb[9].mxu0  ;;  %v9387_v44 = vadd.f32 %v525_v32, %v9343_v13  ;;  %v527_v62 = vpop.f32.mrb[9].mxu1 }
 0x198   :  { %v9389_v12 = vadd.f32 %v454_v9, %v201_v20  ;;  %v456_v8 = vpop.f32.mrb[10].mxu0  ;;  %v9392_v7 = vadd.f32 %v527_v62, %v9350_v16  ;;  %v529_v21 = vpop.f32.mrb[10].mxu1 }
 0x199   :  { %10930 = vst [vmem:[#allocation34_spill] sm:$0xff] %v9384_v0  ;;  %10931 = vst [vmem:[#allocation35_spill] sm:$0xff] %v9387_v44  ;;  %v9394_v10 = vadd.f32 %v456_v8, %v197_v17  ;;  %v458_v24 = vpop.f32.mrb[11].mxu0  ;;  %v9397_v29 = vadd.f32 %v529_v21, %v9343_v13  ;;  %v531_v30 = vpop.f32.mrb[11].mxu1 }
 0x19a   :  { %10932 = vst [vmem:[#allocation36_spill] sm:$0xff] %v9389_v12  ;;  %10933 = vst [vmem:[#allocation37_spill] sm:$0xff] %v9392_v7  ;;  %v9399_v0 = vadd.f32 %v458_v24, %v201_v20  ;;  %v9402_v32 = vadd.f32 %v531_v30, %v9350_v16 }
 0x19b   :  { %10934 = vst [vmem:[#allocation38_spill] sm:$0xff] %v9394_v10  ;;  %10935 = vst [vmem:[#allocation39_spill] sm:$0xff] %v9397_v29 }
 0x19c   :  { %10936 = vst [vmem:[#allocation40_spill] sm:$0xff] %v9399_v0  ;;  %10937 = vst [vmem:[#allocation41_spill] sm:$0xff] %v9402_v32 }
 0x19e   :  { %v462_v44 = vpop.f32.mrb[12].mxu0  ;;  %v535_v9 = vpop.f32.mrb[12].mxu1 }
 0x19f   :  { %v9404_v12 = vadd.f32 %v462_v44, %v197_v17  ;;  %v464_v26 = vpop.f32.mrb[13].mxu0  ;;  %v9407_v62 = vadd.f32 %v535_v9, %v9343_v13  ;;  %v537_v8 = vpop.f32.mrb[13].mxu1 }
 0x1a0   :  { %v9409_v10 = vadd.f32 %v464_v26, %v201_v20  ;;  %v466_v7 = vpop.f32.mrb[14].mxu0  ;;  %v9412_v21 = vadd.f32 %v537_v8, %v9350_v16  ;;  %v539_v24 = vpop.f32.mrb[14].mxu1  ;;  %v433_v26 = vadd.f32 %v9345_v14, %v197_v17  ;;  %v435_v8 = vadd.f32 %v434_v18, %v201_v20 }
 0x1a1   :  { %10938 = vst [vmem:[#allocation42_spill] sm:$0xff] %v9404_v12  ;;  %10939 = vst [vmem:[#allocation43_spill] sm:$0xff] %v9407_v62  ;;  %v9414_v0 = vadd.f32 %v466_v7, %v197_v17  ;;  %v468_v30 = vpop.f32.mrb[15].mxu0  ;;  %v9417_v32 = vadd.f32 %v539_v24, %v9343_v13  ;;  %v541_v44 = vpop.f32.mrb[15].mxu1 }
 0x1a2   :  { %10940 = vst [vmem:[#allocation44_spill] sm:$0xff] %v9409_v10  ;;  %10941 = vst [vmem:[#allocation45_spill] sm:$0xff] %v9412_v21  ;;  %v9419_v12 = vadd.f32 %v468_v30, %v201_v20  ;;  %v9422_v9 = vadd.f32 %v541_v44, %v9350_v16  ;;  %v506_v10 = vadd.f32 %v9347_v15, %v9343_v13 }
 0x1a3   :  { %10942 = vst [vmem:[#allocation46_spill] sm:$0xff] %v9414_v0  ;;  %10943 = vst [vmem:[#allocation47_spill] sm:$0xff] %v9417_v32  ;;  %v508_v21 = vadd.f32 %v507_v19, %v9350_v16 }
 0x1a4   :  { %10944 = vst [vmem:[#allocation48_spill] sm:$0xff] %v9419_v12  ;;  %10945 = vst [vmem:[#allocation49_spill] sm:$0xff] %v9422_v9 }
 0x1a6   :  { %v809_v7 = vpop.f32.mrb[16].mxu0  ;;  %v850_v0 = vpop.f32.mrb[16].mxu1 }
 0x1a7   :  { %v857_v62 = vadd.f32 %v809_v7, %v433_v26  ;;  %v859_v29 = vadd.f32 %v850_v0, %v506_v10  ;;  %v811_v24 = vpop.f32.mrb[17].mxu0  ;;  %v852_v32 = vpop.f32.mrb[17].mxu1 }
 0x1a8   :  { %v858_v22 = vadd.f32 %v811_v24, %v435_v8  ;;  %v860_v30 = vadd.f32 %v852_v32, %v508_v21  ;;  %v813_v12 = vpop.f32.mrb[18].mxu0  ;;  %v854_v11 = vpop.f32.mrb[18].mxu1  ;;  %v10946_v21 = vmov 0  }
 0x1a9   :  { %8491 = vtanh.f32 %v857_v62  ;;  %v814_v44 = vpop.f32.mrb[19].mxu0  ;;  %v855_v9 = vpop.f32.mrb[19].mxu1 }
 0x1aa   :  { %8493 = vtanh.f32 %v858_v22 }
 0x1ab   :  { %8495 = vtanh.f32 %v859_v29 }
 0x1ac   :  { %8497 = vtanh.f32 %v860_v30 }
 0x1b3   :  { %v8492_v14 = vpop.eup %8491 }
 0x1b4   :  { %v865_v13 = vmul.f32 0.5, %v8492_v14  ;;  %v8494_v15 = vpop.eup %8493 }
 0x1b5   :  { %v867_v16 = vmul.f32 0.5, %v8494_v15  ;;  %v8496_v18 = vpop.eup %8495 }
 0x1b6   :  { %v866_v17 = vadd.f32 0.5, %v865_v13  ;;  %v8498_v12 = vpop.eup %8497 }
 0x1b7   :  { %v868_v19 = vadd.f32 0.5, %v867_v16  ;;  %v869_v11 = vmul.f32 0.5, %v8498_v12 }
 0x1b8   :  { %v872_v0 = vmul.f32 %v8496_v18, %v866_v17 }
 0x1b9   :  { %v871_v10 = vmul.f32 0.0, %v868_v19  ;;  %v870_v32 = vadd.f32 0.5, %v869_v11 }
 0x1bb   :  { %v9428_v20 = vadd.f32 %v872_v0, %v871_v10 }
 0x1bd   :  { %8499 = vtanh.f32 %v9428_v20 }
 0x1c7   :  { %v8500_v62 = vpop.eup %8499 }
 0x1c8   :  { %v9431_v22 = vmul.f32 %v8500_v62, %v870_v32 }
 0x1ca   :  { %v884_v29 = vpack.c.bf16 %v9431_v22, %v9431_v22 }
 0x1cc   :  { %1110 = vmatmul.mubr.bf16.vlgmr.msra.gmra.mrb[20].mxu0 %v884_v29  ;;  %1151 = vmatmul.mubr.bf16.vlgmr.msra.gmra.mrb[20].mxu1 %v884_v29  ;;  %v8731_v29 = vld [vmem:[#allocation10] ss:$16 sps:$4 sm:$0xff]  }
 0x1cd   :  { %1381 = vmatpush1.bf16.msra.mxu0 %v9193_v36  ;;  %1422 = vmatpush1.bf16.msra.mxu1 %v9195_v37 }
 0x1ce   :  { %1382 = vmatprep.subr.bf16.mxu0 %v9199_v38  ;;  %1423 = vmatprep.subr.bf16.mxu1 %v9201_v39 }
 0x1cf   :  { %1412 = vmatprep.mubr.bf16.mxu0 %v10946_v21  ;;  %1453 = vmatprep.mubr.bf16.mxu1 %v10946_v21 }
 0x1d1   :  { %1383 = vmatpush1.bf16.msra.mxu0 %v9203_v40  ;;  %1424 = vmatpush1.bf16.msra.mxu1 %v9207_v41 }
 0x1d2   :  { %1384 = vmatprep.subr.bf16.mxu0 %v9211_v42  ;;  %1425 = vmatprep.subr.bf16.mxu1 %v9213_v43 }
 0x1d5   :  { %1385 = vmatpush1.bf16.msra.mxu0 %v9217_v45  ;;  %1426 = vmatpush1.bf16.msra.mxu1 %v9219_v46 }
 0x1d6   :  { %1386 = vmatprep.subr.bf16.mxu0 %v9223_v47  ;;  %1427 = vmatprep.subr.bf16.mxu1 %v9227_v48 }
 0x1d9   :  { %1387 = vmatpush1.bf16.msra.mxu0 %v9229_v49  ;;  %1428 = vmatpush1.bf16.msra.mxu1 %v9231_v50 }
 0x1da   :  { %1388 = vmatprep.subr.bf16.mxu0 %v9235_v51  ;;  %1429 = vmatprep.subr.bf16.mxu1 %v9239_v52 }
 0x1dd   :  { %1389 = vmatpush1.bf16.msra.mxu0 %v9243_v54  ;;  %1430 = vmatpush1.bf16.msra.mxu1 %v9245_v55 }
 0x1de   :  { %1390 = vmatprep.subr.bf16.mxu0 %v9247_v56  ;;  %1431 = vmatprep.subr.bf16.mxu1 %v9249_v57 }
 0x1e1   :  { %1391 = vmatpush1.bf16.msra.mxu0 %v9255_v58  ;;  %1432 = vmatpush1.bf16.msra.mxu1 %v9257_v59 }
 0x1e2   :  { %1392 = vmatprep.subr.bf16.mxu0 %v9259_v60  ;;  %1433 = vmatprep.subr.bf16.mxu1 %v9261_v61 }
 0x1e5   :  { %1393 = vmatpush1.bf16.msra.mxu0 %v9269_v63  ;;  %1434 = vmatpush1.bf16.msra.mxu1 %v9271_v1 }
 0x1e6   :  { %1394 = vmatprep.subr.bf16.mxu0 %v9273_v2  ;;  %1435 = vmatprep.subr.bf16.mxu1 %v9275_v3 }
 0x1e9   :  { %1395 = vmatpush1.bf16.msra.mxu0 %v9281_v4  ;;  %1436 = vmatpush1.bf16.msra.mxu1 %v9283_v5 }
 0x1ea   :  { %1683 = vmatprep.subr.bf16.mxu0 %v9189_v33  ;;  %1724 = vmatprep.subr.bf16.mxu1 %v9191_v34 }
 0x29f   :  { %v1111_v36 = vpop.f32.mrb[20].mxu0  ;;  %v1152_v37 = vpop.f32.mrb[20].mxu1 }
 0x2a0   :  { %v1159_v9 = vadd.f32 %v1111_v36, %v9354_v23  ;;  %v1161_v26 = vadd.f32 %v1152_v37, %v9357_v25  ;;  %v1113_v8 = vpop.f32.mrb[21].mxu0  ;;  %v1154_v7 = vpop.f32.mrb[21].mxu1  ;;  %v8732_v36 = vld [vmem:[#allocation10 + $0x8] ss:$16 sps:$4 sm:$0xff]   ;;  %v9539_v37 = vld [vmem:[#allocation10 + $0x2c] ss:$16 sps:$4 sm:$0xff]  }
 0x2a1   :  { %v1160_v24 = vadd.f32 %v1113_v8, %v9359_v27  ;;  %v1162_v30 = vadd.f32 %v1154_v7, %v9362_v28  ;;  %v1115_v44 = vpop.f32.mrb[22].mxu0  ;;  %v1156_v14 = vpop.f32.mrb[22].mxu1  ;;  %v9549_v8 = vld [vmem:[#allocation10 + $0x44] ss:$16 sps:$4 sm:$0xff]   ;;  %v9551_v7 = vld [vmem:[#allocation10 + $0x4c] ss:$16 sps:$4 sm:$0xff]  }
 0x2a2   :  { %8501 = vtanh.f32 %v1159_v9  ;;  %v1116_v13 = vpop.f32.mrb[23].mxu0  ;;  %v1157_v15 = vpop.f32.mrb[23].mxu1  ;;  %v9541_v9 = vld [vmem:[#allocation10 + $0x20] ss:$16 sps:$4 sm:$0xff]   ;;  %v9561_v44 = vld [vmem:[#allocation10 + $0x64] ss:$16 sps:$4 sm:$0xff]  }
 0x2a3   :  { %8503 = vtanh.f32 %v1160_v24  ;;  %v9553_v24 = vld [vmem:[#allocation10 + $0x40] ss:$16 sps:$4 sm:$0xff]   ;;  %v9563_v14 = vld [vmem:[#allocation10 + $0x6c] ss:$16 sps:$4 sm:$0xff]   ;;  %v9567_v15 = vld [vmem:[#allocation10 + $0x68] ss:$16 sps:$4 sm:$0xff]  }
 0x2a4   :  { %8505 = vtanh.f32 %v1161_v26  ;;  %v9543_v26 = vld [vmem:[#allocation10 + $0x28] ss:$16 sps:$4 sm:$0xff]   ;;  %v9565_v13 = vld [vmem:[#allocation10 + $0x60] ss:$16 sps:$4 sm:$0xff]  }
 0x2a5   :  { %8507 = vtanh.f32 %v1162_v30  ;;  %v9555_v30 = vld [vmem:[#allocation10 + $0x48] ss:$16 sps:$4 sm:$0xff]  }
 0x2ac   :  { %v8502_v33 = vpop.eup %8501 }
 0x2ad   :  { %v1167_v34 = vmul.f32 0.5, %v8502_v33  ;;  %v8504_v17 = vpop.eup %8503  ;;  %v9573_v33 = vld [vmem:[#allocation10 + $0x84] ss:$16 sps:$4 sm:$0xff]  }
 0x2ae   :  { %v1169_v23 = vmul.f32 0.5, %v8504_v17  ;;  %v8506_v25 = vpop.eup %8505  ;;  %v9577_v17 = vld [vmem:[#allocation10 + $0x80] ss:$16 sps:$4 sm:$0xff]  }
 0x2af   :  { %v1168_v16 = vadd.f32 0.5, %v1167_v34  ;;  %v8508_v28 = vpop.eup %8507  ;;  %v9575_v34 = vld [vmem:[#allocation10 + $0x8c] ss:$16 sps:$4 sm:$0xff]  }
 0x2b0   :  { %v1170_v18 = vadd.f32 0.5, %v1169_v23  ;;  %v1171_v10 = vmul.f32 0.5, %v8508_v28  ;;  %v9585_v23 = vld [vmem:[#allocation10 + $0xa4] ss:$16 sps:$4 sm:$0xff]   ;;  %v9601_v28 = vld [vmem:[#allocation10 + $0xc0] ss:$16 sps:$4 sm:$0xff]  }
 0x2b1   :  { %v1174_v19 = vmul.f32 %v8506_v25, %v1168_v16  ;;  %v9579_v16 = vld [vmem:[#allocation10 + $0x88] ss:$16 sps:$4 sm:$0xff]   ;;  %v9587_v25 = vld [vmem:[#allocation10 + $0xac] ss:$16 sps:$4 sm:$0xff]  }
 0x2b2   :  { %v1173_v27 = vmul.f32 %v1170_v18, %v9428_v20  ;;  %v1172_v12 = vadd.f32 0.5, %v1171_v10  ;;  %v9537_v20 = vld [vmem:[#allocation10 + $0x24] ss:$16 sps:$4 sm:$0xff]   ;;  %v9589_v18 = vld [vmem:[#allocation10 + $0xa0] ss:$16 sps:$4 sm:$0xff]  }
 0x2b3   :  { %v9603_v10 = vld [vmem:[#allocation10 + $0xc8] ss:$16 sps:$4 sm:$0xff]  }
 0x2b4   :  { %v9474_v0 = vadd.f32 %v1174_v19, %v1173_v27  ;;  %v9591_v19 = vld [vmem:[#allocation10 + $0xa8] ss:$16 sps:$4 sm:$0xff]   ;;  %v9597_v27 = vld [vmem:[#allocation10 + $0xc4] ss:$16 sps:$4 sm:$0xff]  }
 0x2b6   :  { %8509 = vtanh.f32 %v9474_v0 }
 0x2c0   :  { %v8510_v11 = vpop.eup %8509 }
 0x2c1   :  { %v9477_v32 = vmul.f32 %v8510_v11, %v1172_v12  ;;  %v9609_v12 = vld [vmem:[#allocation10 + $0xe4] ss:$16 sps:$4 sm:$0xff]   ;;  %v9611_v11 = vld [vmem:[#allocation10 + $0xec] ss:$16 sps:$4 sm:$0xff]  }
 0x2c3   :  { %v1187_v62 = vpack.c.bf16 %v9477_v32, %v9477_v32 }
 0x2c5   :  { %1413 = vmatmul.mubr.bf16.vlgmr.msra.gmra.mrb[24].mxu0 %v1187_v62  ;;  %1454 = vmatmul.mubr.bf16.vlgmr.msra.gmra.mrb[24].mxu1 %v1187_v62  ;;  %v9613_v62 = vld [vmem:[#allocation10 + $0xe0] ss:$16 sps:$4 sm:$0xff]  }
 0x2c6   :  { %1684 = vmatpush1.bf16.msra.mxu0 %v8731_v29  ;;  %1725 = vmatpush1.bf16.msra.mxu1 %v8732_v36  ;;  %v9615_v29 = vld [vmem:[#allocation10 + $0xe8] ss:$16 sps:$4 sm:$0xff]  }
 0x2c7   :  { %1685 = vmatprep.subr.bf16.mxu0 %v9199_v38  ;;  %1726 = vmatprep.subr.bf16.mxu1 %v9201_v39 }
 0x2c8   :  { %1715 = vmatprep.mubr.bf16.mxu0 %v10946_v21  ;;  %1756 = vmatprep.mubr.bf16.mxu1 %v10946_v21 }
 0x2ca   :  { %1686 = vmatpush1.bf16.msra.mxu0 %v9203_v40  ;;  %1727 = vmatpush1.bf16.msra.mxu1 %v9207_v41 }
 0x2cb   :  { %1687 = vmatprep.subr.bf16.mxu0 %v9211_v42  ;;  %1728 = vmatprep.subr.bf16.mxu1 %v9213_v43 }
 0x2ce   :  { %1688 = vmatpush1.bf16.msra.mxu0 %v9217_v45  ;;  %1729 = vmatpush1.bf16.msra.mxu1 %v9219_v46 }
 0x2cf   :  { %1689 = vmatprep.subr.bf16.mxu0 %v9223_v47  ;;  %1730 = vmatprep.subr.bf16.mxu1 %v9227_v48 }
 0x2d2   :  { %1690 = vmatpush1.bf16.msra.mxu0 %v9229_v49  ;;  %1731 = vmatpush1.bf16.msra.mxu1 %v9231_v50 }
 0x2d3   :  { %1691 = vmatprep.subr.bf16.mxu0 %v9235_v51  ;;  %1732 = vmatprep.subr.bf16.mxu1 %v9239_v52 }
 0x2d6   :  { %1692 = vmatpush1.bf16.msra.mxu0 %v9243_v54  ;;  %1733 = vmatpush1.bf16.msra.mxu1 %v9245_v55 }
 0x2d7   :  { %1693 = vmatprep.subr.bf16.mxu0 %v9247_v56  ;;  %1734 = vmatprep.subr.bf16.mxu1 %v9249_v57 }
 0x2da   :  { %1694 = vmatpush1.bf16.msra.mxu0 %v9255_v58  ;;  %1735 = vmatpush1.bf16.msra.mxu1 %v9257_v59 }
 0x2db   :  { %1695 = vmatprep.subr.bf16.mxu0 %v9259_v60  ;;  %1736 = vmatprep.subr.bf16.mxu1 %v9261_v61 }
 0x2de   :  { %1696 = vmatpush1.bf16.msra.mxu0 %v9269_v63  ;;  %1737 = vmatpush1.bf16.msra.mxu1 %v9271_v1 }
 0x2df   :  { %1697 = vmatprep.subr.bf16.mxu0 %v9273_v2  ;;  %1738 = vmatprep.subr.bf16.mxu1 %v9275_v3 }
 0x2e2   :  { %1698 = vmatpush1.bf16.msra.mxu0 %v9281_v4  ;;  %1739 = vmatpush1.bf16.msra.mxu1 %v9283_v5 }
 0x398   :  { %v1414_v38 = vpop.f32.mrb[24].mxu0  ;;  %v1455_v39 = vpop.f32.mrb[24].mxu1 }
 0x399   :  { %v1462_v40 = vadd.f32 %v1414_v38, %v9364_v31  ;;  %v1464_v41 = vadd.f32 %v1455_v39, %v9367_v35  ;;  %v1416_v42 = vpop.f32.mrb[25].mxu0  ;;  %v1457_v43 = vpop.f32.mrb[25].mxu1  ;;  %v9525_v31 = vld [vmem:[#allocation10 + $0x4] ss:$16 sps:$4 sm:$0xff]   ;;  %v9527_v35 = vld [vmem:[#allocation10 + $0xc] ss:$16 sps:$4 sm:$0xff]  }
 0x39a   :  { %v1463_v45 = vadd.f32 %v1416_v42, %v9369_v53  ;;  %v1465_v46 = vadd.f32 %v1457_v43, %v9372_v6  ;;  %v1418_v47 = vpop.f32.mrb[26].mxu0  ;;  %v1459_v48 = vpop.f32.mrb[26].mxu1  ;;  %v9529_v53 = vld [vmem:[#allocation10] ss:$16 sps:$4 sm:$0xff]   ;;  %v9531_v6 = vld [vmem:[#allocation10 + $0x8] ss:$16 sps:$4 sm:$0xff]   ;;  %1986 = vmatprep.subr.bf16.mxu0 %v9525_v31  ;;  %2027 = vmatprep.subr.bf16.mxu1 %v9527_v35 }
 0x39b   :  { %8511 = vtanh.f32 %v1462_v40  ;;  %v1419_v49 = vpop.f32.mrb[27].mxu0  ;;  %v1460_v50 = vpop.f32.mrb[27].mxu1  ;;  %v10947_v39 = vld [vmem:[#allocation30_spill] sm:$0xff]  ;;  %v10950_v48 = vld [vmem:[#allocation33_spill] sm:$0xff] }
 0x39c   :  { %8513 = vtanh.f32 %v1463_v45 }
 0x39d   :  { %8515 = vtanh.f32 %v1464_v41  ;;  %v10948_v41 = vld [vmem:[#allocation31_spill] sm:$0xff] }
 0x39e   :  { %8517 = vtanh.f32 %v1465_v46  ;;  %v10949_v46 = vld [vmem:[#allocation32_spill] sm:$0xff] }
 0x3a5   :  { %v8512_v51 = vpop.eup %8511 }
 0x3a6   :  { %v1470_v52 = vmul.f32 0.5, %v8512_v51  ;;  %v8514_v54 = vpop.eup %8513 }
 0x3a7   :  { %v1472_v56 = vmul.f32 0.5, %v8514_v54  ;;  %v8516_v57 = vpop.eup %8515 }
 0x3a8   :  { %v1471_v55 = vadd.f32 0.5, %v1470_v52  ;;  %v8518_v63 = vpop.eup %8517 }
 0x3a9   :  { %v1473_v58 = vadd.f32 0.5, %v1472_v56  ;;  %v1474_v1 = vmul.f32 0.5, %v8518_v63 }
 0x3aa   :  { %v1477_v59 = vmul.f32 %v8516_v57, %v1471_v55 }
 0x3ab   :  { %v1476_v60 = vmul.f32 %v1473_v58, %v9474_v0  ;;  %v1475_v2 = vadd.f32 0.5, %v1474_v1  ;;  %v9599_v0 = vld [vmem:[#allocation10 + $0xcc] ss:$16 sps:$4 sm:$0xff]  }
 0x3ad   :  { %v9516_v61 = vadd.f32 %v1477_v59, %v1476_v60 }
 0x3af   :  { %8519 = vtanh.f32 %v9516_v61 }
 0x3b9   :  { %v8520_v3 = vpop.eup %8519 }
 0x3ba   :  { %v9519_v4 = vmul.f32 %v8520_v3, %v1475_v2 }
 0x3bc   :  { %v1490_v5 = vpack.c.bf16 %v9519_v4, %v9519_v4 }
 0x3be   :  { %1716 = vmatmul.mubr.bf16.vlgmr.msra.gmra.mrb[28].mxu0 %v1490_v5  ;;  %1757 = vmatmul.mubr.bf16.vlgmr.msra.gmra.mrb[28].mxu1 %v1490_v5 }
 0x3bf   :  { %2018 = vmatprep.mubr.bf16.mxu0 %v10946_v21  ;;  %2059 = vmatprep.mubr.bf16.mxu1 %v10946_v21 }
 0x3c0   :  { %1987 = vmatpush1.bf16.msra.mxu0 %v9529_v53  ;;  %2028 = vmatpush1.bf16.msra.mxu1 %v9531_v6 }
 0x3c1   :  { %1988 = vmatprep.subr.bf16.mxu0 %v9537_v20  ;;  %2029 = vmatprep.subr.bf16.mxu1 %v9539_v37 }
 0x3c4   :  { %1989 = vmatpush1.bf16.msra.mxu0 %v9541_v9  ;;  %2030 = vmatpush1.bf16.msra.mxu1 %v9543_v26 }
 0x3c5   :  { %1990 = vmatprep.subr.bf16.mxu0 %v9549_v8  ;;  %2031 = vmatprep.subr.bf16.mxu1 %v9551_v7 }
 0x3c8   :  { %1991 = vmatpush1.bf16.msra.mxu0 %v9553_v24  ;;  %2032 = vmatpush1.bf16.msra.mxu1 %v9555_v30 }
 0x3c9   :  { %1992 = vmatprep.subr.bf16.mxu0 %v9561_v44  ;;  %2033 = vmatprep.subr.bf16.mxu1 %v9563_v14 }
 0x3cc   :  { %1993 = vmatpush1.bf16.msra.mxu0 %v9565_v13  ;;  %2034 = vmatpush1.bf16.msra.mxu1 %v9567_v15 }
 0x3cd   :  { %1994 = vmatprep.subr.bf16.mxu0 %v9573_v33  ;;  %2035 = vmatprep.subr.bf16.mxu1 %v9575_v34 }
 0x3d0   :  { %1995 = vmatpush1.bf16.msra.mxu0 %v9577_v17  ;;  %2036 = vmatpush1.bf16.msra.mxu1 %v9579_v16 }
 0x3d1   :  { %1996 = vmatprep.subr.bf16.mxu0 %v9585_v23  ;;  %2037 = vmatprep.subr.bf16.mxu1 %v9587_v25 }
 0x3d4   :  { %1997 = vmatpush1.bf16.msra.mxu0 %v9589_v18  ;;  %2038 = vmatpush1.bf16.msra.mxu1 %v9591_v19 }
 0x3d5   :  { %1998 = vmatprep.subr.bf16.mxu0 %v9597_v27  ;;  %2039 = vmatprep.subr.bf16.mxu1 %v9599_v0 }
 0x3d8   :  { %1999 = vmatpush1.bf16.msra.mxu0 %v9601_v28  ;;  %2040 = vmatpush1.bf16.msra.mxu1 %v9603_v10 }
 0x3d9   :  { %2000 = vmatprep.subr.bf16.mxu0 %v9609_v12  ;;  %2041 = vmatprep.subr.bf16.mxu1 %v9611_v11 }
 0x3dc   :  { %2001 = vmatpush1.bf16.msra.mxu0 %v9613_v62  ;;  %2042 = vmatpush1.bf16.msra.mxu1 %v9615_v29 }
 0x3dd   :  { %2289 = vmatprep.subr.bf16.mxu0 %v9525_v31  ;;  %2330 = vmatprep.subr.bf16.mxu1 %v9527_v35 }
 0x491   :  { %v1717_v36 = vpop.f32.mrb[28].mxu0  ;;  %v1758_v38 = vpop.f32.mrb[28].mxu1 }
 0x492   :  { %v1765_v40 = vadd.f32 %v1717_v36, %v10947_v39  ;;  %v1767_v42 = vadd.f32 %v1758_v38, %v10948_v41  ;;  %v1719_v43 = vpop.f32.mrb[29].mxu0  ;;  %v1760_v45 = vpop.f32.mrb[29].mxu1 }
 0x493   :  { %v1766_v47 = vadd.f32 %v1719_v43, %v10949_v46  ;;  %v1768_v49 = vadd.f32 %v1760_v45, %v10950_v48  ;;  %v1721_v50 = vpop.f32.mrb[30].mxu0  ;;  %v1762_v51 = vpop.f32.mrb[30].mxu1  ;;  %v10951_v43 = vld [vmem:[#allocation34_spill] sm:$0xff]  ;;  %v10952_v46 = vld [vmem:[#allocation35_spill] sm:$0xff] }
 0x494   :  { %8521 = vtanh.f32 %v1765_v40  ;;  %v1722_v52 = vpop.f32.mrb[31].mxu0  ;;  %v1763_v54 = vpop.f32.mrb[31].mxu1  ;;  %v10953_v50 = vld [vmem:[#allocation36_spill] sm:$0xff] }
 0x495   :  { %8523 = vtanh.f32 %v1766_v47  ;;  %v10954_v52 = vld [vmem:[#allocation37_spill] sm:$0xff] }
 0x496   :  { %8525 = vtanh.f32 %v1767_v42 }
 0x497   :  { %8527 = vtanh.f32 %v1768_v49 }
 0x49e   :  { %v8522_v55 = vpop.eup %8521 }
 0x49f   :  { %v1773_v56 = vmul.f32 0.5, %v8522_v55  ;;  %v8524_v57 = vpop.eup %8523 }
 0x4a0   :  { %v1775_v59 = vmul.f32 0.5, %v8524_v57  ;;  %v8526_v60 = vpop.eup %8525 }
 0x4a1   :  { %v1774_v58 = vadd.f32 0.5, %v1773_v56  ;;  %v8528_v5 = vpop.eup %8527 }
 0x4a2   :  { %v1776_v63 = vadd.f32 0.5, %v1775_v59  ;;  %v1777_v36 = vmul.f32 0.5, %v8528_v5 }
 0x4a3   :  { %v1780_v1 = vmul.f32 %v8526_v60, %v1774_v58 }
 0x4a4   :  { %v1779_v2 = vmul.f32 %v1776_v63, %v9516_v61  ;;  %v1778_v38 = vadd.f32 0.5, %v1777_v36 }
 0x4a6   :  { %v9628_v3 = vadd.f32 %v1780_v1, %v1779_v2 }
 0x4a8   :  { %8529 = vtanh.f32 %v9628_v3 }
 0x4b2   :  { %v8530_v39 = vpop.eup %8529 }
 0x4b3   :  { %v9631_v40 = vmul.f32 %v8530_v39, %v1778_v38 }
 0x4b5   :  { %v1793_v41 = vpack.c.bf16 %v9631_v40, %v9631_v40 }
 0x4b7   :  { %2019 = vmatmul.mubr.bf16.vlgmr.msra.gmra.mrb[32].mxu0 %v1793_v41  ;;  %2060 = vmatmul.mubr.bf16.vlgmr.msra.gmra.mrb[32].mxu1 %v1793_v41 }
 0x4b8   :  { %2290 = vmatpush1.bf16.msra.mxu0 %v9529_v53  ;;  %2331 = vmatpush1.bf16.msra.mxu1 %v9531_v6 }
 0x4b9   :  { %2291 = vmatprep.subr.bf16.mxu0 %v9537_v20  ;;  %2332 = vmatprep.subr.bf16.mxu1 %v9539_v37 }
 0x4ba   :  { %2321 = vmatprep.mubr.bf16.mxu0 %v10946_v21  ;;  %2362 = vmatprep.mubr.bf16.mxu1 %v10946_v21 }
 0x4bc   :  { %2292 = vmatpush1.bf16.msra.mxu0 %v9541_v9  ;;  %2333 = vmatpush1.bf16.msra.mxu1 %v9543_v26 }
 0x4bd   :  { %2293 = vmatprep.subr.bf16.mxu0 %v9549_v8  ;;  %2334 = vmatprep.subr.bf16.mxu1 %v9551_v7 }
 0x4c0   :  { %2294 = vmatpush1.bf16.msra.mxu0 %v9553_v24  ;;  %2335 = vmatpush1.bf16.msra.mxu1 %v9555_v30 }
 0x4c1   :  { %2295 = vmatprep.subr.bf16.mxu0 %v9561_v44  ;;  %2336 = vmatprep.subr.bf16.mxu1 %v9563_v14 }
 0x4c4   :  { %2296 = vmatpush1.bf16.msra.mxu0 %v9565_v13  ;;  %2337 = vmatpush1.bf16.msra.mxu1 %v9567_v15 }
 0x4c5   :  { %2297 = vmatprep.subr.bf16.mxu0 %v9573_v33  ;;  %2338 = vmatprep.subr.bf16.mxu1 %v9575_v34 }
 0x4c8   :  { %2298 = vmatpush1.bf16.msra.mxu0 %v9577_v17  ;;  %2339 = vmatpush1.bf16.msra.mxu1 %v9579_v16 }
 0x4c9   :  { %2299 = vmatprep.subr.bf16.mxu0 %v9585_v23  ;;  %2340 = vmatprep.subr.bf16.mxu1 %v9587_v25 }
 0x4cc   :  { %2300 = vmatpush1.bf16.msra.mxu0 %v9589_v18  ;;  %2341 = vmatpush1.bf16.msra.mxu1 %v9591_v19 }
 0x4cd   :  { %2301 = vmatprep.subr.bf16.mxu0 %v9597_v27  ;;  %2342 = vmatprep.subr.bf16.mxu1 %v9599_v0 }
 0x4d0   :  { %2302 = vmatpush1.bf16.msra.mxu0 %v9601_v28  ;;  %2343 = vmatpush1.bf16.msra.mxu1 %v9603_v10 }
 0x4d1   :  { %2303 = vmatprep.subr.bf16.mxu0 %v9609_v12  ;;  %2344 = vmatprep.subr.bf16.mxu1 %v9611_v11 }
 0x4d4   :  { %2304 = vmatpush1.bf16.msra.mxu0 %v9613_v62  ;;  %2345 = vmatpush1.bf16.msra.mxu1 %v9615_v29 }
 0x4d5   :  { %2592 = vmatprep.subr.bf16.mxu0 %v9525_v31  ;;  %2633 = vmatprep.subr.bf16.mxu1 %v9527_v35 }
 0x58a   :  { %v2020_v61 = vpop.f32.mrb[32].mxu0  ;;  %v2061_v42 = vpop.f32.mrb[32].mxu1 }
 0x58b   :  { %v2068_v45 = vadd.f32 %v2020_v61, %v10951_v43  ;;  %v2070_v47 = vadd.f32 %v2061_v42, %v10952_v46  ;;  %v2022_v48 = vpop.f32.mrb[33].mxu0  ;;  %v2063_v49 = vpop.f32.mrb[33].mxu1 }
 0x58c   :  { %v2069_v51 = vadd.f32 %v2022_v48, %v10953_v50  ;;  %v2071_v54 = vadd.f32 %v2063_v49, %v10954_v52  ;;  %v2024_v55 = vpop.f32.mrb[34].mxu0  ;;  %v2065_v56 = vpop.f32.mrb[34].mxu1  ;;  %v10955_v49 = vld [vmem:[#allocation38_spill] sm:$0xff] }
 0x58d   :  { %8531 = vtanh.f32 %v2068_v45  ;;  %v2025_v57 = vpop.f32.mrb[35].mxu0  ;;  %v2066_v58 = vpop.f32.mrb[35].mxu1  ;;  %v10957_v56 = vld [vmem:[#allocation40_spill] sm:$0xff] }
 0x58e   :  { %8533 = vtanh.f32 %v2069_v51  ;;  %v10956_v51 = vld [vmem:[#allocation39_spill] sm:$0xff]  ;;  %v10958_v58 = vld [vmem:[#allocation41_spill] sm:$0xff] }
 0x58f   :  { %8535 = vtanh.f32 %v2070_v47 }
 0x590   :  { %8537 = vtanh.f32 %v2071_v54 }
 0x597   :  { %v8532_v59 = vpop.eup %8531 }
 0x598   :  { %v2076_v60 = vmul.f32 0.5, %v8532_v59  ;;  %v8534_v63 = vpop.eup %8533 }
 0x599   :  { %v2078_v2 = vmul.f32 0.5, %v8534_v63  ;;  %v8536_v5 = vpop.eup %8535 }
 0x59a   :  { %v2077_v1 = vadd.f32 0.5, %v2076_v60  ;;  %v8538_v61 = vpop.eup %8537 }
 0x59b   :  { %v2079_v36 = vadd.f32 0.5, %v2078_v2  ;;  %v2080_v42 = vmul.f32 0.5, %v8538_v61 }
 0x59c   :  { %v2083_v38 = vmul.f32 %v8536_v5, %v2077_v1 }
 0x59d   :  { %v2082_v39 = vmul.f32 %v2079_v36, %v9628_v3  ;;  %v2081_v43 = vadd.f32 0.5, %v2080_v42 }
 0x59f   :  { %v9674_v41 = vadd.f32 %v2083_v38, %v2082_v39 }
 0x5a1   :  { %8539 = vtanh.f32 %v9674_v41 }
 0x5ab   :  { %v8540_v45 = vpop.eup %8539 }
 0x5ac   :  { %v9677_v46 = vmul.f32 %v8540_v45, %v2081_v43 }
 0x5ae   :  { %v2096_v47 = vpack.c.bf16 %v9677_v46, %v9677_v46 }
 0x5b0   :  { %2322 = vmatmul.mubr.bf16.vlgmr.msra.gmra.mrb[36].mxu0 %v2096_v47  ;;  %2363 = vmatmul.mubr.bf16.vlgmr.msra.gmra.mrb[36].mxu1 %v2096_v47 }
 0x5b1   :  { %2593 = vmatpush1.bf16.msra.mxu0 %v9529_v53  ;;  %2634 = vmatpush1.bf16.msra.mxu1 %v9531_v6 }
 0x5b2   :  { %2594 = vmatprep.subr.bf16.mxu0 %v9537_v20  ;;  %2635 = vmatprep.subr.bf16.mxu1 %v9539_v37 }
 0x5b3   :  { %2624 = vmatprep.mubr.bf16.mxu0 %v10946_v21  ;;  %2665 = vmatprep.mubr.bf16.mxu1 %v10946_v21 }
 0x5b5   :  { %2595 = vmatpush1.bf16.msra.mxu0 %v9541_v9  ;;  %2636 = vmatpush1.bf16.msra.mxu1 %v9543_v26 }
 0x5b6   :  { %2596 = vmatprep.subr.bf16.mxu0 %v9549_v8  ;;  %2637 = vmatprep.subr.bf16.mxu1 %v9551_v7 }
 0x5b9   :  { %2597 = vmatpush1.bf16.msra.mxu0 %v9553_v24  ;;  %2638 = vmatpush1.bf16.msra.mxu1 %v9555_v30 }
 0x5ba   :  { %2598 = vmatprep.subr.bf16.mxu0 %v9561_v44  ;;  %2639 = vmatprep.subr.bf16.mxu1 %v9563_v14 }
 0x5bd   :  { %2599 = vmatpush1.bf16.msra.mxu0 %v9565_v13  ;;  %2640 = vmatpush1.bf16.msra.mxu1 %v9567_v15 }
 0x5be   :  { %2600 = vmatprep.subr.bf16.mxu0 %v9573_v33  ;;  %2641 = vmatprep.subr.bf16.mxu1 %v9575_v34 }
 0x5c1   :  { %2601 = vmatpush1.bf16.msra.mxu0 %v9577_v17  ;;  %2642 = vmatpush1.bf16.msra.mxu1 %v9579_v16 }
 0x5c2   :  { %2602 = vmatprep.subr.bf16.mxu0 %v9585_v23  ;;  %2643 = vmatprep.subr.bf16.mxu1 %v9587_v25 }
 0x5c5   :  { %2603 = vmatpush1.bf16.msra.mxu0 %v9589_v18  ;;  %2644 = vmatpush1.bf16.msra.mxu1 %v9591_v19 }
 0x5c6   :  { %2604 = vmatprep.subr.bf16.mxu0 %v9597_v27  ;;  %2645 = vmatprep.subr.bf16.mxu1 %v9599_v0 }
 0x5c9   :  { %2605 = vmatpush1.bf16.msra.mxu0 %v9601_v28  ;;  %2646 = vmatpush1.bf16.msra.mxu1 %v9603_v10 }
 0x5ca   :  { %2606 = vmatprep.subr.bf16.mxu0 %v9609_v12  ;;  %2647 = vmatprep.subr.bf16.mxu1 %v9611_v11 }
 0x5cd   :  { %2607 = vmatpush1.bf16.msra.mxu0 %v9613_v62  ;;  %2648 = vmatpush1.bf16.msra.mxu1 %v9615_v29 }
 0x5ce   :  { %2895 = vmatprep.subr.bf16.mxu0 %v9525_v31  ;;  %2936 = vmatprep.subr.bf16.mxu1 %v9527_v35 }
 0x683   :  { %v2323_v3 = vpop.f32.mrb[36].mxu0  ;;  %v2364_v48 = vpop.f32.mrb[36].mxu1 }
 0x684   :  { %v2371_v50 = vadd.f32 %v2323_v3, %v10955_v49  ;;  %v2373_v52 = vadd.f32 %v2364_v48, %v10956_v51  ;;  %v2325_v54 = vpop.f32.mrb[37].mxu0  ;;  %v2366_v55 = vpop.f32.mrb[37].mxu1 }
 0x685   :  { %v2372_v57 = vadd.f32 %v2325_v54, %v10957_v56  ;;  %v2374_v59 = vadd.f32 %v2366_v55, %v10958_v58  ;;  %v2327_v60 = vpop.f32.mrb[38].mxu0  ;;  %v2368_v63 = vpop.f32.mrb[38].mxu1  ;;  %v8251_v55 = vld [vmem:[#allocation11] ss:$16 sps:$4 sm:$0xff]   ;;  %v8254_v56 = vld [vmem:[#allocation11 + $0x8] ss:$16 sps:$4 sm:$0xff]  }
 0x686   :  { %8541 = vtanh.f32 %v2371_v50  ;;  %v2328_v1 = vpop.f32.mrb[39].mxu0  ;;  %v2369_v2 = vpop.f32.mrb[39].mxu1  ;;  %v8259_v58 = vld [vmem:[#allocation11 + $0x24] ss:$16 sps:$4 sm:$0xff]   ;;  %v8257_v60 = vld [vmem:[#allocation11 + $0x20] ss:$16 sps:$4 sm:$0xff]  }
 0x687   :  { %8543 = vtanh.f32 %v2372_v57  ;;  %v8260_v63 = vld [vmem:[#allocation11 + $0x28] ss:$16 sps:$4 sm:$0xff]   ;;  %v8265_v1 = vld [vmem:[#allocation11 + $0x44] ss:$16 sps:$4 sm:$0xff]   ;;  %v8268_v2 = vld [vmem:[#allocation11 + $0x4c] ss:$16 sps:$4 sm:$0xff]  }
 0x688   :  { %8545 = vtanh.f32 %v2373_v52 }
 0x689   :  { %8547 = vtanh.f32 %v2374_v59  ;;  %v8262_v59 = vld [vmem:[#allocation11 + $0x2c] ss:$16 sps:$4 sm:$0xff]  }
 0x690   :  { %v8542_v31 = vpop.eup %8541 }
 0x691   :  { %v2379_v35 = vmul.f32 0.5, %v8542_v31  ;;  %v8544_v5 = vpop.eup %8543  ;;  %v8263_v31 = vld [vmem:[#allocation11 + $0x40] ss:$16 sps:$4 sm:$0xff]  }
 0x692   :  { %v2381_v38 = vmul.f32 0.5, %v8544_v5  ;;  %v8546_v39 = vpop.eup %8545  ;;  %v8271_v5 = vld [vmem:[#allocation11 + $0x64] ss:$16 sps:$4 sm:$0xff]  }
 0x693   :  { %v2380_v36 = vadd.f32 0.5, %v2379_v35  ;;  %v8548_v47 = vpop.eup %8547  ;;  %v8266_v35 = vld [vmem:[#allocation11 + $0x48] ss:$16 sps:$4 sm:$0xff]  }
 0x694   :  { %v2382_v61 = vadd.f32 0.5, %v2381_v38  ;;  %v2383_v3 = vmul.f32 0.5, %v8548_v47  ;;  %v8269_v38 = vld [vmem:[#allocation11 + $0x60] ss:$16 sps:$4 sm:$0xff]   ;;  %v8283_v47 = vld [vmem:[#allocation11 + $0xa4] ss:$16 sps:$4 sm:$0xff]  }
 0x695   :  { %v2386_v42 = vmul.f32 %v8546_v39, %v2380_v36  ;;  %v8274_v36 = vld [vmem:[#allocation11 + $0x6c] ss:$16 sps:$4 sm:$0xff]   ;;  %v8272_v39 = vld [vmem:[#allocation11 + $0x68] ss:$16 sps:$4 sm:$0xff]  }
 0x696   :  { %v2385_v43 = vmul.f32 %v2382_v61, %v9674_v41  ;;  %v2384_v48 = vadd.f32 0.5, %v2383_v3  ;;  %v8277_v61 = vld [vmem:[#allocation11 + $0x84] ss:$16 sps:$4 sm:$0xff]   ;;  %v8286_v3 = vld [vmem:[#allocation11 + $0xac] ss:$16 sps:$4 sm:$0xff]  }
 0x698   :  { %v9720_v45 = vadd.f32 %v2386_v42, %v2385_v43  ;;  %v8280_v42 = vld [vmem:[#allocation11 + $0x8c] ss:$16 sps:$4 sm:$0xff]   ;;  %v8275_v43 = vld [vmem:[#allocation11 + $0x80] ss:$16 sps:$4 sm:$0xff]  }
 0x69a   :  { %8549 = vtanh.f32 %v9720_v45 }
 0x6a4   :  { %v8550_v49 = vpop.eup %8549 }
 0x6a5   :  { %v9723_v50 = vmul.f32 %v8550_v49, %v2384_v48  ;;  %v8281_v48 = vld [vmem:[#allocation11 + $0xa0] ss:$16 sps:$4 sm:$0xff]   ;;  %v8284_v49 = vld [vmem:[#allocation11 + $0xa8] ss:$16 sps:$4 sm:$0xff]  }
 0x6a7   :  { %v2399_v51 = vpack.c.bf16 %v9723_v50, %v9723_v50 }
 0x6a9   :  { %2625 = vmatmul.mubr.bf16.vlgmr.msra.gmra.mrb[40].mxu0 %v2399_v51  ;;  %2666 = vmatmul.mubr.bf16.vlgmr.msra.gmra.mrb[40].mxu1 %v2399_v51  ;;  %v8289_v51 = vld [vmem:[#allocation11 + $0xc4] ss:$16 sps:$4 sm:$0xff]  }
 0x6aa   :  { %2896 = vmatpush1.bf16.msra.mxu0 %v9529_v53  ;;  %2937 = vmatpush1.bf16.msra.mxu1 %v9531_v6  ;;  %v8253_v53 = vld [vmem:[#allocation11 + $0x4] ss:$16 sps:$4 sm:$0xff]   ;;  %v8256_v6 = vld [vmem:[#allocation11 + $0xc] ss:$16 sps:$4 sm:$0xff]  }
 0x6ab   :  { %2897 = vmatprep.subr.bf16.mxu0 %v9537_v20  ;;  %2938 = vmatprep.subr.bf16.mxu1 %v9539_v37 }
 0x6ac   :  { %2927 = vmatprep.mubr.bf16.mxu0 %v10946_v21  ;;  %2968 = vmatprep.mubr.bf16.mxu1 %v10946_v21 }
 0x6ae   :  { %2898 = vmatpush1.bf16.msra.mxu0 %v9541_v9  ;;  %2939 = vmatpush1.bf16.msra.mxu1 %v9543_v26  ;;  %v10959_v9 = vld [vmem:[#allocation42_spill] sm:$0xff] }
 0x6af   :  { %2899 = vmatprep.subr.bf16.mxu0 %v9549_v8  ;;  %2940 = vmatprep.subr.bf16.mxu1 %v9551_v7  ;;  %v10960_v8 = vld [vmem:[#allocation43_spill] sm:$0xff] }
 0x6b2   :  { %2900 = vmatpush1.bf16.msra.mxu0 %v9553_v24  ;;  %2941 = vmatpush1.bf16.msra.mxu1 %v9555_v30 }
 0x6b3   :  { %2901 = vmatprep.subr.bf16.mxu0 %v9561_v44  ;;  %2942 = vmatprep.subr.bf16.mxu1 %v9563_v14  ;;  %v10961_v44 = vld [vmem:[#allocation44_spill] sm:$0xff] }
 0x6b6   :  { %2902 = vmatpush1.bf16.msra.mxu0 %v9565_v13  ;;  %2943 = vmatpush1.bf16.msra.mxu1 %v9567_v15  ;;  %v10962_v13 = vld [vmem:[#allocation45_spill] sm:$0xff] }
 0x6b7   :  { %2903 = vmatprep.subr.bf16.mxu0 %v9573_v33  ;;  %2944 = vmatprep.subr.bf16.mxu1 %v9575_v34 }
 0x6ba   :  { %2904 = vmatpush1.bf16.msra.mxu0 %v9577_v17  ;;  %2945 = vmatpush1.bf16.msra.mxu1 %v9579_v16 }
 0x6bb   :  { %2905 = vmatprep.subr.bf16.mxu0 %v9585_v23  ;;  %2946 = vmatprep.subr.bf16.mxu1 %v9587_v25 }
 0x6be   :  { %2906 = vmatpush1.bf16.msra.mxu0 %v9589_v18  ;;  %2947 = vmatpush1.bf16.msra.mxu1 %v9591_v19 }
 0x6bf   :  { %2907 = vmatprep.subr.bf16.mxu0 %v9597_v27  ;;  %2948 = vmatprep.subr.bf16.mxu1 %v9599_v0 }
 0x6c2   :  { %2908 = vmatpush1.bf16.msra.mxu0 %v9601_v28  ;;  %2949 = vmatpush1.bf16.msra.mxu1 %v9603_v10 }
 0x6c3   :  { %2909 = vmatprep.subr.bf16.mxu0 %v9609_v12  ;;  %2950 = vmatprep.subr.bf16.mxu1 %v9611_v11 }
 0x6c6   :  { %2910 = vmatpush1.bf16.msra.mxu0 %v9613_v62  ;;  %2951 = vmatpush1.bf16.msra.mxu1 %v9615_v29 }
 0x6c7   :  { %3224 = vmatprep.subr.bf16.mxu0 %v8253_v53  ;;  %3297 = vmatprep.subr.bf16.mxu1 %v8256_v6  ;;  %v8292_v53 = vld [vmem:[#allocation11 + $0xcc] ss:$16 sps:$4 sm:$0xff]   ;;  %v8287_v6 = vld [vmem:[#allocation11 + $0xc0] ss:$16 sps:$4 sm:$0xff]  }
 0x77c   :  { %v2626_v20 = vpop.f32.mrb[40].mxu0  ;;  %v2667_v37 = vpop.f32.mrb[40].mxu1 }
 0x77d   :  { %v2674_v26 = vadd.f32 %v2626_v20, %v10959_v9  ;;  %v2676_v7 = vadd.f32 %v2667_v37, %v10960_v8  ;;  %v2628_v24 = vpop.f32.mrb[41].mxu0  ;;  %v2669_v30 = vpop.f32.mrb[41].mxu1  ;;  %v8290_v20 = vld [vmem:[#allocation11 + $0xc8] ss:$16 sps:$4 sm:$0xff]   ;;  %v8295_v37 = vld [vmem:[#allocation11 + $0xe4] ss:$16 sps:$4 sm:$0xff]  }
 0x77e   :  { %v2675_v14 = vadd.f32 %v2628_v24, %v10961_v44  ;;  %v2677_v15 = vadd.f32 %v2669_v30, %v10962_v13  ;;  %v2630_v33 = vpop.f32.mrb[42].mxu0  ;;  %v2671_v34 = vpop.f32.mrb[42].mxu1  ;;  %v8298_v9 = vld [vmem:[#allocation11 + $0xec] ss:$16 sps:$4 sm:$0xff]   ;;  %v8296_v8 = vld [vmem:[#allocation11 + $0xe8] ss:$16 sps:$4 sm:$0xff]   ;;  %v3007_v24 = vpack.c.bf16 %v9631_v40, %v9519_v4  ;;  %v3008_v30 = vpack.c.bf16 %v9723_v50, %v9677_v46 }
 0x77f   :  { %8551 = vtanh.f32 %v2674_v26  ;;  %v2631_v17 = vpop.f32.mrb[43].mxu0  ;;  %v2672_v16 = vpop.f32.mrb[43].mxu1  ;;  %v8293_v26 = vld [vmem:[#allocation11 + $0xe0] ss:$16 sps:$4 sm:$0xff]   ;;  %v9791_v40 = vld [vmem:[#allocation13 + $0x8] ss:$16 sps:$4 sm:$0xff]  }
 0x780   :  { %8553 = vtanh.f32 %v2675_v14  ;;  %v9789_v4 = vld [vmem:[#allocation13] ss:$16 sps:$4 sm:$0xff]   ;;  %v9797_v46 = vld [vmem:[#allocation13 + $0x24] ss:$16 sps:$4 sm:$0xff]   ;;  %v9799_v50 = vld [vmem:[#allocation13 + $0x2c] ss:$16 sps:$4 sm:$0xff]  }
 0x781   :  { %8555 = vtanh.f32 %v2676_v7  ;;  %v3006_v7 = vpack.c.bf16 %v9477_v32, %v9431_v22  ;;  %v9785_v22 = vld [vmem:[#allocation13 + $0x4] ss:$16 sps:$4 sm:$0xff]   ;;  %v9787_v32 = vld [vmem:[#allocation13 + $0xc] ss:$16 sps:$4 sm:$0xff]   ;;  %v9801_v44 = vld [vmem:[#allocation13 + $0x20] ss:$16 sps:$4 sm:$0xff]  }
 0x782   :  { %8557 = vtanh.f32 %v2677_v15  ;;  %v9803_v14 = vld [vmem:[#allocation13 + $0x28] ss:$16 sps:$4 sm:$0xff]   ;;  %v9809_v13 = vld [vmem:[#allocation13 + $0x44] ss:$16 sps:$4 sm:$0xff]   ;;  %v9811_v15 = vld [vmem:[#allocation13 + $0x4c] ss:$16 sps:$4 sm:$0xff]  }
 0x783   :  { %v9813_v33 = vld [vmem:[#allocation13 + $0x40] ss:$16 sps:$4 sm:$0xff]   ;;  %v9815_v34 = vld [vmem:[#allocation13 + $0x48] ss:$16 sps:$4 sm:$0xff]   ;;  %v9819_v17 = vld [vmem:[#allocation13 + $0x64] ss:$16 sps:$4 sm:$0xff]  }
 0x784   :  { %v9823_v16 = vld [vmem:[#allocation13 + $0x60] ss:$16 sps:$4 sm:$0xff]  }
 0x789   :  { %v8552_v23 = vpop.eup %8551 }
 0x78a   :  { %v2682_v25 = vmul.f32 0.5, %v8552_v23  ;;  %v8554_v18 = vpop.eup %8553  ;;  %v9825_v23 = vld [vmem:[#allocation13 + $0x68] ss:$16 sps:$4 sm:$0xff]  }
 0x78b   :  { %v2684_v27 = vmul.f32 0.5, %v8554_v18  ;;  %v8556_v0 = vpop.eup %8555  ;;  %v9830_v18 = vld [vmem:[#allocation13 + $0x84] ss:$16 sps:$4 sm:$0xff]  }
 0x78c   :  { %v2683_v19 = vadd.f32 0.5, %v2682_v25  ;;  %v8558_v62 = vpop.eup %8557  ;;  %v9827_v25 = vld [vmem:[#allocation13 + $0x6c] ss:$16 sps:$4 sm:$0xff]  }
 0x78d   :  { %v2685_v28 = vadd.f32 0.5, %v2684_v27  ;;  %v2686_v29 = vmul.f32 0.5, %v8558_v62  ;;  %v9837_v27 = vld [vmem:[#allocation13 + $0x80] ss:$16 sps:$4 sm:$0xff]   ;;  %v9851_v62 = vld [vmem:[#allocation13 + $0xa8] ss:$16 sps:$4 sm:$0xff]  }
 0x78e   :  { %v2689_v10 = vmul.f32 %v8556_v0, %v2683_v19  ;;  %v9832_v19 = vld [vmem:[#allocation13 + $0x8c] ss:$16 sps:$4 sm:$0xff]   ;;  %v9839_v0 = vld [vmem:[#allocation13 + $0x88] ss:$16 sps:$4 sm:$0xff]  }
 0x78f   :  { %v2688_v12 = vmul.f32 %v2685_v28, %v9720_v45  ;;  %v2687_v41 = vadd.f32 0.5, %v2686_v29  ;;  %v8278_v45 = vld [vmem:[#allocation11 + $0x88] ss:$16 sps:$4 sm:$0xff]   ;;  %v9845_v28 = vld [vmem:[#allocation13 + $0xa4] ss:$16 sps:$4 sm:$0xff]  }
 0x790   :  { %v9857_v29 = vld [vmem:[#allocation13 + $0xc4] ss:$16 sps:$4 sm:$0xff]  }
 0x791   :  { %v9764_v11 = vadd.f32 %v2689_v10, %v2688_v12  ;;  %v9847_v10 = vld [vmem:[#allocation13 + $0xac] ss:$16 sps:$4 sm:$0xff]   ;;  %v9849_v12 = vld [vmem:[#allocation13 + $0xa0] ss:$16 sps:$4 sm:$0xff]  }
 0x793   :  { %8559 = vtanh.f32 %v9764_v11 }
 0x79d   :  { %v8560_v52 = vpop.eup %8559 }
 0x79e   :  { %v9767_v54 = vmul.f32 %v8560_v52, %v2687_v41  ;;  %v9859_v41 = vld [vmem:[#allocation13 + $0xcc] ss:$16 sps:$4 sm:$0xff]   ;;  %v9861_v52 = vld [vmem:[#allocation13 + $0xc0] ss:$16 sps:$4 sm:$0xff]  }
 0x7a0   :  { %v2702_v57 = vpack.c.bf16 %v9767_v54, %v9767_v54 }
 0x7a2   :  { %2928 = vmatmul.mubr.bf16.vlgmr.msra.gmra.mrb[44].mxu0 %v2702_v57  ;;  %2969 = vmatmul.mubr.bf16.vlgmr.msra.gmra.mrb[44].mxu1 %v2702_v57  ;;  %v9871_v57 = vld [vmem:[#allocation13 + $0xec] ss:$16 sps:$4 sm:$0xff]  }
 0x7a3   :  { %3225 = vmatpush1.bf16.msra.mxu0 %v8251_v55  ;;  %3298 = vmatpush1.bf16.msra.mxu1 %v8254_v56  ;;  %v9863_v55 = vld [vmem:[#allocation13 + $0xc8] ss:$16 sps:$4 sm:$0xff]   ;;  %v9869_v56 = vld [vmem:[#allocation13 + $0xe4] ss:$16 sps:$4 sm:$0xff]  }
 0x7a4   :  { %3226 = vmatprep.subr.bf16.mxu0 %v8259_v58  ;;  %3299 = vmatprep.subr.bf16.mxu1 %v8262_v59  ;;  %v9873_v58 = vld [vmem:[#allocation13 + $0xe0] ss:$16 sps:$4 sm:$0xff]   ;;  %v9875_v59 = vld [vmem:[#allocation13 + $0xe8] ss:$16 sps:$4 sm:$0xff]  }
 0x7a5   :  { %3256 = vmatprep.mubr.bf16.mxu0 %v10946_v21  ;;  %3329 = vmatprep.mubr.bf16.mxu1 %v10946_v21 }
 0x7a7   :  { %3227 = vmatpush1.bf16.msra.mxu0 %v8257_v60  ;;  %3300 = vmatpush1.bf16.msra.mxu1 %v8260_v63 }
 0x7a8   :  { %3228 = vmatprep.subr.bf16.mxu0 %v8265_v1  ;;  %3301 = vmatprep.subr.bf16.mxu1 %v8268_v2  ;;  %v10963_v1 = vld [vmem:[#allocation46_spill] sm:$0xff] }
 0x7ab   :  { %3229 = vmatpush1.bf16.msra.mxu0 %v8263_v31  ;;  %3302 = vmatpush1.bf16.msra.mxu1 %v8266_v35  ;;  %v10964_v31 = vld [vmem:[#allocation47_spill] sm:$0xff] }
 0x7ac   :  { %3230 = vmatprep.subr.bf16.mxu0 %v8271_v5  ;;  %3303 = vmatprep.subr.bf16.mxu1 %v8274_v36 }
 0x7af   :  { %3231 = vmatpush1.bf16.msra.mxu0 %v8269_v38  ;;  %3304 = vmatpush1.bf16.msra.mxu1 %v8272_v39  ;;  %v10965_v38 = vld [vmem:[#allocation48_spill] sm:$0xff] }
 0x7b0   :  { %3232 = vmatprep.subr.bf16.mxu0 %v8277_v61  ;;  %3305 = vmatprep.subr.bf16.mxu1 %v8280_v42  ;;  %v10966_v61 = vld [vmem:[#allocation49_spill] sm:$0xff] }
 0x7b3   :  { %3233 = vmatpush1.bf16.msra.mxu0 %v8275_v43  ;;  %3306 = vmatpush1.bf16.msra.mxu1 %v8278_v45 }
 0x7b4   :  { %3234 = vmatprep.subr.bf16.mxu0 %v8283_v47  ;;  %3307 = vmatprep.subr.bf16.mxu1 %v8286_v3 }
 0x7b7   :  { %3235 = vmatpush1.bf16.msra.mxu0 %v8281_v48  ;;  %3308 = vmatpush1.bf16.msra.mxu1 %v8284_v49 }
 0x7b8   :  { %3236 = vmatprep.subr.bf16.mxu0 %v8289_v51  ;;  %3309 = vmatprep.subr.bf16.mxu1 %v8292_v53 }
 0x7bb   :  { %3237 = vmatpush1.bf16.msra.mxu0 %v8287_v6  ;;  %3310 = vmatpush1.bf16.msra.mxu1 %v8290_v20 }
 0x7bc   :  { %3238 = vmatprep.subr.bf16.mxu0 %v8295_v37  ;;  %3311 = vmatprep.subr.bf16.mxu1 %v8298_v9 }
 0x7bf   :  { %3239 = vmatpush1.bf16.msra.mxu0 %v8293_v26  ;;  %3312 = vmatpush1.bf16.msra.mxu1 %v8296_v8 }
 0x7c0   :  { %3598 = vmatprep.subr.bf16.mxu0 %v9785_v22  ;;  %3639 = vmatprep.subr.bf16.mxu1 %v9787_v32 }
 0x7c2   :  { %3257 = vmatmul.mubr.bf16.vlgmr.msra.gmra.mrb[48].mxu0 %v3006_v7  ;;  %3330 = vmatmul.mubr.bf16.vlgmr.msra.gmra.mrb[48].mxu1 %v3006_v7 }
 0x7c3   :  { %3266 = vmatprep.mubr.bf16.mxu0 %v10946_v21  ;;  %3339 = vmatprep.mubr.bf16.mxu1 %v10946_v21 }
 0x7c4   :  { %3599 = vmatpush1.bf16.msra.mxu0 %v9789_v4  ;;  %3640 = vmatpush1.bf16.msra.mxu1 %v9791_v40 }
 0x7c5   :  { %3600 = vmatprep.subr.bf16.mxu0 %v9797_v46  ;;  %3641 = vmatprep.subr.bf16.mxu1 %v9799_v50 }
 0x7c8   :  { %3601 = vmatpush1.bf16.msra.mxu0 %v9801_v44  ;;  %3642 = vmatpush1.bf16.msra.mxu1 %v9803_v14 }
 0x7c9   :  { %3602 = vmatprep.subr.bf16.mxu0 %v9809_v13  ;;  %3643 = vmatprep.subr.bf16.mxu1 %v9811_v15 }
 0x7ca   :  { %3267 = vmatmul.mubr.bf16.gmra.mrb[52].mxu0 %v3007_v24  ;;  %3340 = vmatmul.mubr.bf16.gmra.mrb[52].mxu1 %v3007_v24 }
 0x7cb   :  { %3276 = vmatprep.mubr.bf16.mxu0 %v10946_v21  ;;  %3349 = vmatprep.mubr.bf16.mxu1 %v10946_v21 }
 0x7cc   :  { %3603 = vmatpush1.bf16.msra.mxu0 %v9813_v33  ;;  %3644 = vmatpush1.bf16.msra.mxu1 %v9815_v34 }
 0x7cd   :  { %3604 = vmatprep.subr.bf16.mxu0 %v9819_v17  ;;  %3645 = vmatprep.subr.bf16.mxu1 %v9827_v25 }
 0x7d0   :  { %3605 = vmatpush1.bf16.msra.mxu0 %v9823_v16  ;;  %3646 = vmatpush1.bf16.msra.mxu1 %v9825_v23 }
 0x7d1   :  { %3606 = vmatprep.subr.bf16.mxu0 %v9830_v18  ;;  %3647 = vmatprep.subr.bf16.mxu1 %v9832_v19 }
 0x7d2   :  { %3277 = vmatmul.mubr.bf16.gmra.mrb[56].mxu0 %v3008_v30  ;;  %3350 = vmatmul.mubr.bf16.gmra.mrb[56].mxu1 %v3008_v30 }
 0x7d3   :  { %3286 = vmatprep.mubr.bf16.mxu0 %v10946_v21  ;;  %3359 = vmatprep.mubr.bf16.mxu1 %v10946_v21 }
 0x7d4   :  { %3607 = vmatpush1.bf16.msra.mxu0 %v9837_v27  ;;  %3648 = vmatpush1.bf16.msra.mxu1 %v9839_v0 }
 0x7d5   :  { %3608 = vmatprep.subr.bf16.mxu0 %v9845_v28  ;;  %3649 = vmatprep.subr.bf16.mxu1 %v9847_v10 }
 0x7d8   :  { %3609 = vmatpush1.bf16.msra.mxu0 %v9849_v12  ;;  %3650 = vmatpush1.bf16.msra.mxu1 %v9851_v62 }
 0x7d9   :  { %3610 = vmatprep.subr.bf16.mxu0 %v9857_v29  ;;  %3651 = vmatprep.subr.bf16.mxu1 %v9859_v41 }
 0x7dc   :  { %3611 = vmatpush1.bf16.msra.mxu0 %v9861_v52  ;;  %3652 = vmatpush1.bf16.msra.mxu1 %v9863_v55 }
 0x7dd   :  { %3612 = vmatprep.subr.bf16.mxu0 %v9869_v56  ;;  %3653 = vmatprep.subr.bf16.mxu1 %v9871_v57 }
 0x7e0   :  { %3613 = vmatpush1.bf16.msra.mxu0 %v9873_v58  ;;  %3654 = vmatpush1.bf16.msra.mxu1 %v9875_v59 }
 0x7e1   :  { %3897 = vmatprep.subr.bf16.mxu0 %v9785_v22  ;;  %3938 = vmatprep.subr.bf16.mxu1 %v9787_v32 }
 0x875   :  { %v2929_v60 = vpop.f32.mrb[44].mxu0  ;;  %v2970_v63 = vpop.f32.mrb[44].mxu1 }
 0x876   :  { %v2977_v2 = vadd.f32 %v2929_v60, %v10963_v1  ;;  %v2979_v35 = vadd.f32 %v2970_v63, %v10964_v31  ;;  %v2931_v5 = vpop.f32.mrb[45].mxu0  ;;  %v2972_v36 = vpop.f32.mrb[45].mxu1 }
 0x877   :  { %v2978_v39 = vadd.f32 %v2931_v5, %v10965_v38  ;;  %v2980_v42 = vadd.f32 %v2972_v36, %v10966_v61  ;;  %v2933_v43 = vpop.f32.mrb[46].mxu0  ;;  %v2974_v45 = vpop.f32.mrb[46].mxu1 }
 0x878   :  { %8561 = vtanh.f32 %v2977_v2  ;;  %v2934_v47 = vpop.f32.mrb[47].mxu0  ;;  %v2975_v3 = vpop.f32.mrb[47].mxu1 }
 0x879   :  { %8563 = vtanh.f32 %v2978_v39 }
 0x87a   :  { %8565 = vtanh.f32 %v2979_v35 }
 0x87b   :  { %8567 = vtanh.f32 %v2980_v42 }
 0x882   :  { %v8562_v48 = vpop.eup %8561 }
 0x883   :  { %v2985_v49 = vmul.f32 0.5, %v8562_v48  ;;  %v8564_v51 = vpop.eup %8563 }
 0x884   :  { %v2987_v6 = vmul.f32 0.5, %v8564_v51  ;;  %v8566_v20 = vpop.eup %8565 }
 0x885   :  { %v2986_v53 = vadd.f32 0.5, %v2985_v49  ;;  %v8568_v7 = vpop.eup %8567 }
 0x886   :  { %v2988_v37 = vadd.f32 0.5, %v2987_v6  ;;  %v2989_v24 = vmul.f32 0.5, %v8568_v7 }
 0x887   :  { %v2992_v9 = vmul.f32 %v8566_v20, %v2986_v53 }
 0x888   :  { %v2991_v26 = vmul.f32 %v2988_v37, %v9764_v11  ;;  %v2990_v63 = vadd.f32 0.5, %v2989_v24 }
 0x88a   :  { %v2993_v8 = vadd.f32 %v2992_v9, %v2991_v26 }
 0x88c   :  { %8569 = vtanh.f32 %v2993_v8  ;;  %v3042_v8 = vld [vmem:[%s10905_s6] sm:$0xf] }
 0x895   :  { %v9888_v30 = vpop.f32.mrb[48].mxu0  ;;  %v9890_v60 = vpop.f32.mrb[48].mxu1 }
 0x896   :  { %v9892_v1 = vpop.f32.mrb[49].mxu0  ;;  %v9894_v2 = vpop.f32.mrb[49].mxu1 }
 0x897   :  { %v8570_v31 = vpop.eup %8569  ;;  %v9896_v35 = vpop.f32.mrb[50].mxu0 }
 0x898   :  { %v9898_v5 = vpop.f32.mrb[50].mxu1  ;;  %v9900_v36 = vpop.f32.mrb[51].mxu0  ;;  %v2995_v38 = vmul.f32 %v8570_v31, %v2990_v63 }
 0x899   :  { %v9902_v11 = vpop.f32.mrb[51].mxu1 }
 0x89a   :  { %v3009_v39 = vpack.c.bf16 %v2995_v38, %v9767_v54 }
 0x89c   :  { %3287 = vmatmul.mubr.bf16.gmra.mrb[60].mxu0 %v3009_v39  ;;  %3360 = vmatmul.mubr.bf16.gmra.mrb[60].mxu1 %v3009_v39 }
 0x89d   :  { %v9905_v61 = vpop.f32.mrb[52].mxu0  ;;  %v9907_v42 = vpop.f32.mrb[52].mxu1  ;;  %3630 = vmatprep.mubr.bf16.mxu0 %v10946_v21  ;;  %3671 = vmatprep.mubr.bf16.mxu1 %v10946_v21 }
 0x89e   :  { %10967 = vst [vmem:[#allocation30_spill] sm:$0xff] %v9907_v42  ;;  %v9911_v43 = vpop.f32.mrb[53].mxu0  ;;  %v9913_v45 = vpop.f32.mrb[53].mxu1 }
 0x89f   :  { %10968 = vst [vmem:[#allocation31_spill] sm:$0xff] %v9911_v43  ;;  %10969 = vst [vmem:[#allocation32_spill] sm:$0xff] %v9913_v45  ;;  %v9915_v47 = vpop.f32.mrb[54].mxu0  ;;  %v9917_v3 = vpop.f32.mrb[54].mxu1 }
 0x8a0   :  { %10970 = vst [vmem:[#allocation33_spill] sm:$0xff] %v9915_v47  ;;  %10971 = vst [vmem:[#allocation34_spill] sm:$0xff] %v9917_v3  ;;  %v9919_v48 = vpop.f32.mrb[55].mxu0  ;;  %v9921_v54 = vpop.f32.mrb[55].mxu1 }
 0x8a1   :  { %10972 = vst [vmem:[#allocation35_spill] sm:$0xff] %v9919_v48  ;;  %10973 = vst [vmem:[#allocation36_spill] sm:$0xff] %v9921_v54 }
 0x8a4   :  { %3631 = vmatmul.mubr.bf16.vlgmr.msra.gmra.mrb[64].mxu0 %v10946_v21  ;;  %3672 = vmatmul.mubr.bf16.vlgmr.msra.gmra.mrb[64].mxu1 %v10946_v21 }
 0x8a5   :  { %v9925_v49 = vpop.f32.mrb[56].mxu0  ;;  %v9927_v51 = vpop.f32.mrb[56].mxu1  ;;  %3898 = vmatpush1.bf16.msra.mxu0 %v9789_v4  ;;  %3939 = vmatpush1.bf16.msra.mxu1 %v9791_v40 }
 0x8a6   :  { %10974 = vst [vmem:[#allocation37_spill] sm:$0xff] %v9925_v49  ;;  %10975 = vst [vmem:[#allocation38_spill] sm:$0xff] %v9927_v51  ;;  %v9931_v53 = vpop.f32.mrb[57].mxu0  ;;  %v9933_v6 = vpop.f32.mrb[57].mxu1  ;;  %3899 = vmatprep.subr.bf16.mxu0 %v9797_v46  ;;  %3940 = vmatprep.subr.bf16.mxu1 %v9799_v50 }
 0x8a7   :  { %10976 = vst [vmem:[#allocation39_spill] sm:$0xff] %v9931_v53  ;;  %10977 = vst [vmem:[#allocation40_spill] sm:$0xff] %v9933_v6  ;;  %v9937_v20 = vpop.f32.mrb[58].mxu0  ;;  %v9939_v37 = vpop.f32.mrb[58].mxu1  ;;  %3929 = vmatprep.mubr.bf16.mxu0 %v10946_v21  ;;  %3970 = vmatprep.mubr.bf16.mxu1 %v10946_v21 }
 0x8a8   :  { %10978 = vst [vmem:[#allocation41_spill] sm:$0xff] %v9937_v20  ;;  %10979 = vst [vmem:[#allocation42_spill] sm:$0xff] %v9939_v37  ;;  %v9943_v9 = vpop.f32.mrb[59].mxu0  ;;  %v9945_v26 = vpop.f32.mrb[59].mxu1  ;;  %v10989_v37 = vld [vmem:[#allocation26_spill] sm:$0xff] }
 0x8a9   :  { %10980 = vst [vmem:[#allocation43_spill] sm:$0xff] %v9943_v9  ;;  %10981 = vst [vmem:[#allocation44_spill] sm:$0xff] %v9945_v26  ;;  %3900 = vmatpush1.bf16.msra.mxu0 %v9801_v44  ;;  %3941 = vmatpush1.bf16.msra.mxu1 %v9803_v14  ;;  %v10988_v26 = vld [vmem:[#allocation28_spill] sm:$0xff]  ;;  %v9994_v20 = vrot.slane %v3042_v8, %v10989_v37 }
 0x8aa   :  { %3901 = vmatprep.subr.bf16.mxu0 %v9809_v13  ;;  %3942 = vmatprep.subr.bf16.mxu1 %v9811_v15  ;;  %v9991_v9 = vrot.slane %v3042_v8, %v10988_v26 }
 0x8ab   :  { %v3332_v26 = vadd.f32 %v9890_v60, %v9994_v20 }
 0x8ad   :  { %3902 = vmatpush1.bf16.msra.mxu0 %v9813_v33  ;;  %3943 = vmatpush1.bf16.msra.mxu1 %v9815_v34 }
 0x8ae   :  { %3903 = vmatprep.subr.bf16.mxu0 %v9819_v17  ;;  %3944 = vmatprep.subr.bf16.mxu1 %v9827_v25 }
 0x8b1   :  { %3904 = vmatpush1.bf16.msra.mxu0 %v9823_v16  ;;  %3945 = vmatpush1.bf16.msra.mxu1 %v9825_v23 }
 0x8b2   :  { %3905 = vmatprep.subr.bf16.mxu0 %v9830_v18  ;;  %3946 = vmatprep.subr.bf16.mxu1 %v9832_v19 }
 0x8b5   :  { %3906 = vmatpush1.bf16.msra.mxu0 %v9837_v27  ;;  %3947 = vmatpush1.bf16.msra.mxu1 %v9839_v0 }
 0x8b6   :  { %3907 = vmatprep.subr.bf16.mxu0 %v9845_v28  ;;  %3948 = vmatprep.subr.bf16.mxu1 %v9847_v10 }
 0x8b9   :  { %3908 = vmatpush1.bf16.msra.mxu0 %v9849_v12  ;;  %3949 = vmatpush1.bf16.msra.mxu1 %v9851_v62 }
 0x8ba   :  { %3909 = vmatprep.subr.bf16.mxu0 %v9857_v29  ;;  %3950 = vmatprep.subr.bf16.mxu1 %v9859_v41 }
 0x8bd   :  { %3910 = vmatpush1.bf16.msra.mxu0 %v9861_v52  ;;  %3951 = vmatpush1.bf16.msra.mxu1 %v9863_v55 }
 0x8be   :  { %3911 = vmatprep.subr.bf16.mxu0 %v9869_v56  ;;  %3952 = vmatprep.subr.bf16.mxu1 %v9871_v57 }
 0x8c1   :  { %3912 = vmatpush1.bf16.msra.mxu0 %v9873_v58  ;;  %3953 = vmatpush1.bf16.msra.mxu1 %v9875_v59 }
 0x8c2   :  { %4197 = vmatprep.subr.bf16.mxu0 %v9785_v22  ;;  %4238 = vmatprep.subr.bf16.mxu1 %v9787_v32 }
 0x96f   :  { %v9978_v7 = vpop.f32.mrb[60].mxu0  ;;  %v9980_v24 = vpop.f32.mrb[60].mxu1 }
 0x970   :  { %10982 = vst [vmem:[#allocation45_spill] sm:$0xff] %v9978_v7  ;;  %10983 = vst [vmem:[#allocation46_spill] sm:$0xff] %v9980_v24  ;;  %v9982_v63 = vpop.f32.mrb[61].mxu0  ;;  %v9984_v31 = vpop.f32.mrb[61].mxu1  ;;  %v10992_v7 = vld [vmem:[#allocation29_spill] sm:$0xff] }
 0x971   :  { %10984 = vst [vmem:[#allocation47_spill] sm:$0xff] %v9982_v63  ;;  %10985 = vst [vmem:[#allocation48_spill] sm:$0xff] %v9984_v31  ;;  %v9986_v38 = vpop.f32.mrb[62].mxu0  ;;  %v9988_v39 = vpop.f32.mrb[62].mxu1  ;;  %v10001_v24 = vrot.slane %v3042_v8, %v10992_v7  ;;  %v10993_v63 = vld [vmem:[#allocation27_spill] sm:$0xff] }
 0x972   :  { %10986 = vst [vmem:[#allocation49_spill] sm:$0xff] %v9986_v38  ;;  %10987 = vst [vmem:[#allocation50_spill] sm:$0xff] %v9988_v39  ;;  %v9996_v6 = vpop.f32.mrb[63].mxu0  ;;  %v9998_v53 = vpop.f32.mrb[63].mxu1  ;;  %v10004_v51 = vrot.slane %v3042_v8, %v10993_v63  ;;  %v3259_v38 = vadd.f32 %v9888_v30, %v9991_v9 }
 0x973   :  { %10990 = vst [vmem:[#allocation51_spill] sm:$0xff] %v9996_v6  ;;  %10991 = vst [vmem:[#allocation52_spill] sm:$0xff] %v9998_v53  ;;  %v3261_v37 = vadd.f32 %v9892_v1, %v10001_v24 }
 0x974   :  { %v3334_v6 = vadd.f32 %v9894_v2, %v10004_v51 }
 0x977   :  { %v3632_v39 = vpop.f32.mrb[64].mxu0  ;;  %v3673_v53 = vpop.f32.mrb[64].mxu1 }
 0x978   :  { %v3680_v31 = vadd.f32 %v3632_v39, %v3259_v38  ;;  %v3682_v7 = vadd.f32 %v3673_v53, %v3332_v26  ;;  %v3634_v49 = vpop.f32.mrb[65].mxu0  ;;  %v3675_v54 = vpop.f32.mrb[65].mxu1 }
 0x979   :  { %v3681_v8 = vadd.f32 %v3634_v49, %v3261_v37  ;;  %v3683_v63 = vadd.f32 %v3675_v54, %v3334_v6  ;;  %v3636_v48 = vpop.f32.mrb[66].mxu0  ;;  %v3677_v3 = vpop.f32.mrb[66].mxu1  ;;  %v3338_v37 = vadd.f32 %v9902_v11, %v10004_v51 }
 0x97a   :  { %8571 = vtanh.f32 %v3680_v31  ;;  %v3637_v30 = vpop.f32.mrb[67].mxu0  ;;  %v3678_v47 = vpop.f32.mrb[67].mxu1 }
 0x97b   :  { %8573 = vtanh.f32 %v3681_v8 }
 0x97c   :  { %8575 = vtanh.f32 %v3682_v7 }
 0x97d   :  { %8577 = vtanh.f32 %v3683_v63 }
 0x984   :  { %v8572_v60 = vpop.eup %8571 }
 0x985   :  { %v3688_v1 = vmul.f32 0.5, %v8572_v60  ;;  %v8574_v45 = vpop.eup %8573 }
 0x986   :  { %v3690_v2 = vmul.f32 0.5, %v8574_v45  ;;  %v8576_v42 = vpop.eup %8575  ;;  %v3265_v45 = vadd.f32 %v9900_v36, %v10001_v24 }
 0x987   :  { %v3689_v43 = vadd.f32 0.5, %v3688_v1  ;;  %v8578_v3 = vpop.eup %8577 }
 0x988   :  { %v3691_v38 = vadd.f32 0.5, %v3690_v2  ;;  %v3692_v48 = vmul.f32 0.5, %v8578_v3 }
 0x989   :  { %v3695_v53 = vmul.f32 %v8576_v42, %v3689_v43  ;;  %v3263_v42 = vadd.f32 %v9896_v35, %v9991_v9  ;;  %v3336_v43 = vadd.f32 %v9898_v5, %v9994_v20 }
 0x98a   :  { %v3694_v26 = vmul.f32 0.0, %v3691_v38  ;;  %v3693_v54 = vadd.f32 0.5, %v3692_v48 }
 0x98c   :  { %v10014_v39 = vadd.f32 %v3695_v53, %v3694_v26 }
 0x98e   :  { %8579 = vtanh.f32 %v10014_v39 }
 0x998   :  { %v8580_v47 = vpop.eup %8579 }
 0x999   :  { %v10017_v49 = vmul.f32 %v8580_v47, %v3693_v54 }
 0x99b   :  { %v3704_v6 = vpack.c.bf16 %v10017_v49, %v10017_v49 }
 0x99d   :  { %3930 = vmatmul.mubr.bf16.vlgmr.msra.gmra.mrb[68].mxu0 %v3704_v6  ;;  %3971 = vmatmul.mubr.bf16.vlgmr.msra.gmra.mrb[68].mxu1 %v3704_v6 }
 0x99e   :  { %4198 = vmatpush1.bf16.msra.mxu0 %v9789_v4  ;;  %4239 = vmatpush1.bf16.msra.mxu1 %v9791_v40 }
 0x99f   :  { %4199 = vmatprep.subr.bf16.mxu0 %v9797_v46  ;;  %4240 = vmatprep.subr.bf16.mxu1 %v9799_v50 }
 0x9a0   :  { %4229 = vmatprep.mubr.bf16.mxu0 %v10946_v21  ;;  %4270 = vmatprep.mubr.bf16.mxu1 %v10946_v21 }
 0x9a2   :  { %4200 = vmatpush1.bf16.msra.mxu0 %v9801_v44  ;;  %4241 = vmatpush1.bf16.msra.mxu1 %v9803_v14 }
 0x9a3   :  { %4201 = vmatprep.subr.bf16.mxu0 %v9809_v13  ;;  %4242 = vmatprep.subr.bf16.mxu1 %v9811_v15 }
 0x9a6   :  { %4202 = vmatpush1.bf16.msra.mxu0 %v9813_v33  ;;  %4243 = vmatpush1.bf16.msra.mxu1 %v9815_v34 }
 0x9a7   :  { %4203 = vmatprep.subr.bf16.mxu0 %v9819_v17  ;;  %4244 = vmatprep.subr.bf16.mxu1 %v9827_v25 }
 0x9aa   :  { %4204 = vmatpush1.bf16.msra.mxu0 %v9823_v16  ;;  %4245 = vmatpush1.bf16.msra.mxu1 %v9825_v23 }
 0x9ab   :  { %4205 = vmatprep.subr.bf16.mxu0 %v9830_v18  ;;  %4246 = vmatprep.subr.bf16.mxu1 %v9832_v19 }
 0x9ae   :  { %4206 = vmatpush1.bf16.msra.mxu0 %v9837_v27  ;;  %4247 = vmatpush1.bf16.msra.mxu1 %v9839_v0 }
 0x9af   :  { %4207 = vmatprep.subr.bf16.mxu0 %v9845_v28  ;;  %4248 = vmatprep.subr.bf16.mxu1 %v9847_v10 }
 0x9b2   :  { %4208 = vmatpush1.bf16.msra.mxu0 %v9849_v12  ;;  %4249 = vmatpush1.bf16.msra.mxu1 %v9851_v62 }
 0x9b3   :  { %4209 = vmatprep.subr.bf16.mxu0 %v9857_v29  ;;  %4250 = vmatprep.subr.bf16.mxu1 %v9859_v41 }
 0x9b6   :  { %4210 = vmatpush1.bf16.msra.mxu0 %v9861_v52  ;;  %4251 = vmatpush1.bf16.msra.mxu1 %v9863_v55 }
 0x9b7   :  { %4211 = vmatprep.subr.bf16.mxu0 %v9869_v56  ;;  %4252 = vmatprep.subr.bf16.mxu1 %v9871_v57 }
 0x9ba   :  { %4212 = vmatpush1.bf16.msra.mxu0 %v9873_v58  ;;  %4253 = vmatpush1.bf16.msra.mxu1 %v9875_v59 }
 0x9bb   :  { %4497 = vmatprep.subr.bf16.mxu0 %v9785_v22  ;;  %4538 = vmatprep.subr.bf16.mxu1 %v9787_v32 }
 0xa70   :  { %v3931_v7 = vpop.f32.mrb[68].mxu0  ;;  %v3972_v63 = vpop.f32.mrb[68].mxu1 }
 0xa71   :  { %v3979_v31 = vadd.f32 %v3931_v7, %v3263_v42  ;;  %v3981_v8 = vadd.f32 %v3972_v63, %v3336_v43  ;;  %v3933_v30 = vpop.f32.mrb[69].mxu0  ;;  %v3974_v22 = vpop.f32.mrb[69].mxu1 }
 0xa72   :  { %v3980_v60 = vadd.f32 %v3933_v30, %v3265_v45  ;;  %v3982_v32 = vadd.f32 %v3974_v22, %v3338_v37  ;;  %v3935_v1 = vpop.f32.mrb[70].mxu0  ;;  %v3976_v2 = vpop.f32.mrb[70].mxu1  ;;  %v10121_v22 = vld [vmem:[#allocation13 + $0x4] ss:$16 sps:$4 sm:$0xff]  }
 0xa73   :  { %8581 = vtanh.f32 %v3979_v31  ;;  %v3936_v35 = vpop.f32.mrb[71].mxu0  ;;  %v3977_v38 = vpop.f32.mrb[71].mxu1  ;;  %v10127_v1 = vld [vmem:[#allocation13 + $0x8] ss:$16 sps:$4 sm:$0xff]   ;;  %v10133_v2 = vld [vmem:[#allocation13 + $0x24] ss:$16 sps:$4 sm:$0xff]  }
 0xa74   :  { %8583 = vtanh.f32 %v3980_v60  ;;  %v10123_v60 = vld [vmem:[#allocation13 + $0xc] ss:$16 sps:$4 sm:$0xff]   ;;  %v10137_v38 = vld [vmem:[#allocation13 + $0x20] ss:$16 sps:$4 sm:$0xff]  }
 0xa75   :  { %8585 = vtanh.f32 %v3981_v8  ;;  %v10135_v35 = vld [vmem:[#allocation13 + $0x2c] ss:$16 sps:$4 sm:$0xff]  }
 0xa76   :  { %8587 = vtanh.f32 %v3982_v32  ;;  %v10125_v32 = vld [vmem:[#allocation13] ss:$16 sps:$4 sm:$0xff]  }
 0xa7d   :  { %v8582_v5 = vpop.eup %8581 }
 0xa7e   :  { %v3987_v36 = vmul.f32 0.5, %v8582_v5  ;;  %v8584_v53 = vpop.eup %8583  ;;  %v10139_v5 = vld [vmem:[#allocation13 + $0x28] ss:$16 sps:$4 sm:$0xff]  }
 0xa7f   :  { %v3989_v11 = vmul.f32 0.5, %v8584_v53  ;;  %v8586_v3 = vpop.eup %8585  ;;  %v10147_v53 = vld [vmem:[#allocation13 + $0x4c] ss:$16 sps:$4 sm:$0xff]  }
 0xa80   :  { %v3988_v26 = vadd.f32 0.5, %v3987_v36  ;;  %v8588_v42 = vpop.eup %8587  ;;  %v10145_v36 = vld [vmem:[#allocation13 + $0x44] ss:$16 sps:$4 sm:$0xff]  }
 0xa81   :  { %v3990_v48 = vadd.f32 0.5, %v3989_v11  ;;  %v3991_v43 = vmul.f32 0.5, %v8588_v42  ;;  %v10151_v11 = vld [vmem:[#allocation13 + $0x48] ss:$16 sps:$4 sm:$0xff]   ;;  %v10171_v42 = vld [vmem:[#allocation13 + $0x8c] ss:$16 sps:$4 sm:$0xff]  }
 0xa82   :  { %v3994_v54 = vmul.f32 %v8586_v3, %v3988_v26  ;;  %v10149_v26 = vld [vmem:[#allocation13 + $0x40] ss:$16 sps:$4 sm:$0xff]   ;;  %v10157_v3 = vld [vmem:[#allocation13 + $0x64] ss:$16 sps:$4 sm:$0xff]  }
 0xa83   :  { %v3993_v47 = vmul.f32 %v3990_v48, %v10014_v39  ;;  %v3992_v45 = vadd.f32 0.5, %v3991_v43  ;;  %v10159_v48 = vld [vmem:[#allocation13 + $0x6c] ss:$16 sps:$4 sm:$0xff]   ;;  %v10173_v43 = vld [vmem:[#allocation13 + $0x80] ss:$16 sps:$4 sm:$0xff]  }
 0xa85   :  { %v10064_v6 = vadd.f32 %v3994_v54, %v3993_v47  ;;  %v10161_v54 = vld [vmem:[#allocation13 + $0x60] ss:$16 sps:$4 sm:$0xff]   ;;  %v10163_v47 = vld [vmem:[#allocation13 + $0x68] ss:$16 sps:$4 sm:$0xff]  }
 0xa87   :  { %8589 = vtanh.f32 %v10064_v6 }
 0xa91   :  { %v8590_v37 = vpop.eup %8589 }
 0xa92   :  { %v10067_v7 = vmul.f32 %v8590_v37, %v3992_v45  ;;  %v10175_v45 = vld [vmem:[#allocation13 + $0x88] ss:$16 sps:$4 sm:$0xff]   ;;  %v10181_v37 = vld [vmem:[#allocation13 + $0xa4] ss:$16 sps:$4 sm:$0xff]  }
 0xa94   :  { %v4004_v63 = vpack.c.bf16 %v10067_v7, %v10067_v7 }
 0xa96   :  { %4230 = vmatmul.mubr.bf16.vlgmr.msra.gmra.mrb[72].mxu0 %v4004_v63  ;;  %4271 = vmatmul.mubr.bf16.vlgmr.msra.gmra.mrb[72].mxu1 %v4004_v63  ;;  %v10183_v63 = vld [vmem:[#allocation13 + $0xac] ss:$16 sps:$4 sm:$0xff]  }
 0xa97   :  { %4498 = vmatpush1.bf16.msra.mxu0 %v9789_v4  ;;  %4539 = vmatpush1.bf16.msra.mxu1 %v9791_v40  ;;  %v3269_v4 = vadd.f32 %v9905_v61, %v9991_v9  ;;  %v10994_v40 = vld [vmem:[#allocation30_spill] sm:$0xff] }
 0xa98   :  { %4499 = vmatprep.subr.bf16.mxu0 %v9797_v46  ;;  %4540 = vmatprep.subr.bf16.mxu1 %v9799_v50  ;;  %v3342_v46 = vadd.f32 %v10994_v40, %v9994_v20  ;;  %v10995_v50 = vld [vmem:[#allocation31_spill] sm:$0xff]  ;;  %v10187_v40 = vld [vmem:[#allocation13 + $0xa8] ss:$16 sps:$4 sm:$0xff]  }
 0xa99   :  { %4529 = vmatprep.mubr.bf16.mxu0 %v10946_v21  ;;  %4570 = vmatprep.mubr.bf16.mxu1 %v10946_v21 }
 0xa9b   :  { %4500 = vmatpush1.bf16.msra.mxu0 %v9801_v44  ;;  %4541 = vmatpush1.bf16.msra.mxu1 %v9803_v14  ;;  %v3271_v44 = vadd.f32 %v10995_v50, %v10001_v24  ;;  %v10996_v14 = vld [vmem:[#allocation32_spill] sm:$0xff] }
 0xa9c   :  { %4501 = vmatprep.subr.bf16.mxu0 %v9809_v13  ;;  %4542 = vmatprep.subr.bf16.mxu1 %v9811_v15  ;;  %v3344_v13 = vadd.f32 %v10996_v14, %v10004_v51  ;;  %v10195_v50 = vld [vmem:[#allocation13 + $0xcc] ss:$16 sps:$4 sm:$0xff]   ;;  %v10199_v14 = vld [vmem:[#allocation13 + $0xc8] ss:$16 sps:$4 sm:$0xff]  }
 0xa9f   :  { %4502 = vmatpush1.bf16.msra.mxu0 %v9813_v33  ;;  %4543 = vmatpush1.bf16.msra.mxu1 %v9815_v34 }
 0xaa0   :  { %4503 = vmatprep.subr.bf16.mxu0 %v9819_v17  ;;  %4544 = vmatprep.subr.bf16.mxu1 %v9827_v25 }
 0xaa3   :  { %4504 = vmatpush1.bf16.msra.mxu0 %v9823_v16  ;;  %4545 = vmatpush1.bf16.msra.mxu1 %v9825_v23 }
 0xaa4   :  { %4505 = vmatprep.subr.bf16.mxu0 %v9830_v18  ;;  %4546 = vmatprep.subr.bf16.mxu1 %v9832_v19 }
 0xaa7   :  { %4506 = vmatpush1.bf16.msra.mxu0 %v9837_v27  ;;  %4547 = vmatpush1.bf16.msra.mxu1 %v9839_v0 }
 0xaa8   :  { %4507 = vmatprep.subr.bf16.mxu0 %v9845_v28  ;;  %4548 = vmatprep.subr.bf16.mxu1 %v9847_v10 }
 0xaab   :  { %4508 = vmatpush1.bf16.msra.mxu0 %v9849_v12  ;;  %4549 = vmatpush1.bf16.msra.mxu1 %v9851_v62 }
 0xaac   :  { %4509 = vmatprep.subr.bf16.mxu0 %v9857_v29  ;;  %4550 = vmatprep.subr.bf16.mxu1 %v9859_v41 }
 0xaaf   :  { %4510 = vmatpush1.bf16.msra.mxu0 %v9861_v52  ;;  %4551 = vmatpush1.bf16.msra.mxu1 %v9863_v55 }
 0xab0   :  { %4511 = vmatprep.subr.bf16.mxu0 %v9869_v56  ;;  %4552 = vmatprep.subr.bf16.mxu1 %v9871_v57 }
 0xab3   :  { %4512 = vmatpush1.bf16.msra.mxu0 %v9873_v58  ;;  %4553 = vmatpush1.bf16.msra.mxu1 %v9875_v59 }
 0xab4   :  { %4797 = vmatprep.subr.bf16.mxu0 %v10121_v22  ;;  %4838 = vmatprep.subr.bf16.mxu1 %v10123_v60 }
 0xb69   :  { %v4231_v15 = vpop.f32.mrb[72].mxu0  ;;  %v4272_v33 = vpop.f32.mrb[72].mxu1 }
 0xb6a   :  { %v4279_v34 = vadd.f32 %v4231_v15, %v3269_v4  ;;  %v4281_v17 = vadd.f32 %v4272_v33, %v3342_v46  ;;  %v4233_v16 = vpop.f32.mrb[73].mxu0  ;;  %v4274_v23 = vpop.f32.mrb[73].mxu1  ;;  %v10185_v4 = vld [vmem:[#allocation13 + $0xa0] ss:$16 sps:$4 sm:$0xff]   ;;  %v10193_v46 = vld [vmem:[#allocation13 + $0xc4] ss:$16 sps:$4 sm:$0xff]  }
 0xb6b   :  { %v4280_v25 = vadd.f32 %v4233_v16, %v3271_v44  ;;  %v4282_v18 = vadd.f32 %v4274_v23, %v3344_v13  ;;  %v4235_v19 = vpop.f32.mrb[74].mxu0  ;;  %v4276_v27 = vpop.f32.mrb[74].mxu1  ;;  %v10197_v44 = vld [vmem:[#allocation13 + $0xc0] ss:$16 sps:$4 sm:$0xff]   ;;  %v10205_v13 = vld [vmem:[#allocation13 + $0xe4] ss:$16 sps:$4 sm:$0xff]  }
 0xb6c   :  { %8591 = vtanh.f32 %v4279_v34  ;;  %v4236_v0 = vpop.f32.mrb[75].mxu0  ;;  %v4277_v28 = vpop.f32.mrb[75].mxu1  ;;  %v10207_v15 = vld [vmem:[#allocation13 + $0xec] ss:$16 sps:$4 sm:$0xff]   ;;  %v10209_v33 = vld [vmem:[#allocation13 + $0xe0] ss:$16 sps:$4 sm:$0xff]  }
 0xb6d   :  { %8593 = vtanh.f32 %v4280_v25  ;;  %v10211_v34 = vld [vmem:[#allocation13 + $0xe8] ss:$16 sps:$4 sm:$0xff]  }
 0xb6e   :  { %8595 = vtanh.f32 %v4281_v17  ;;  %v10997_v17 = vld [vmem:[#allocation33_spill] sm:$0xff]  ;;  %v10998_v23 = vld [vmem:[#allocation34_spill] sm:$0xff]  ;;  %v11000_v27 = vld [vmem:[#allocation36_spill] sm:$0xff] }
 0xb6f   :  { %8597 = vtanh.f32 %v4282_v18  ;;  %v3273_v16 = vadd.f32 %v10997_v17, %v9991_v9  ;;  %v3346_v25 = vadd.f32 %v10998_v23, %v9994_v20  ;;  %v10999_v18 = vld [vmem:[#allocation35_spill] sm:$0xff]  ;;  %v3348_v0 = vadd.f32 %v11000_v27, %v10004_v51 }
 0xb70   :  { %v3275_v19 = vadd.f32 %v10999_v18, %v10001_v24 }
 0xb76   :  { %v8592_v10 = vpop.eup %8591 }
 0xb77   :  { %v4287_v12 = vmul.f32 0.5, %v8592_v10  ;;  %v8594_v62 = vpop.eup %8593 }
 0xb78   :  { %v4289_v41 = vmul.f32 0.5, %v8594_v62  ;;  %v8596_v52 = vpop.eup %8595 }
 0xb79   :  { %v4288_v29 = vadd.f32 0.5, %v4287_v12  ;;  %v8598_v59 = vpop.eup %8597 }
 0xb7a   :  { %v4290_v55 = vadd.f32 0.5, %v4289_v41  ;;  %v4291_v61 = vmul.f32 0.5, %v8598_v59 }
 0xb7b   :  { %v4294_v56 = vmul.f32 %v8596_v52, %v4288_v29 }
 0xb7c   :  { %v4293_v57 = vmul.f32 %v4290_v55, %v10064_v6  ;;  %v4292_v39 = vadd.f32 0.5, %v4291_v61  ;;  %v10169_v6 = vld [vmem:[#allocation13 + $0x84] ss:$16 sps:$4 sm:$0xff]  }
 0xb7e   :  { %v10112_v58 = vadd.f32 %v4294_v56, %v4293_v57 }
 0xb80   :  { %8599 = vtanh.f32 %v10112_v58 }
 0xb8a   :  { %v8600_v31 = vpop.eup %8599 }
 0xb8b   :  { %v10115_v8 = vmul.f32 %v8600_v31, %v4292_v39 }
 0xb8d   :  { %v4304_v30 = vpack.c.bf16 %v10115_v8, %v10115_v8 }
 0xb8f   :  { %4530 = vmatmul.mubr.bf16.vlgmr.msra.gmra.mrb[76].mxu0 %v4304_v30  ;;  %4571 = vmatmul.mubr.bf16.vlgmr.msra.gmra.mrb[76].mxu1 %v4304_v30 }
 0xb90   :  { %4829 = vmatprep.mubr.bf16.mxu0 %v10946_v21  ;;  %4870 = vmatprep.mubr.bf16.mxu1 %v10946_v21 }
 0xb91   :  { %4798 = vmatpush1.bf16.msra.mxu0 %v10125_v32  ;;  %4839 = vmatpush1.bf16.msra.mxu1 %v10127_v1 }
 0xb92   :  { %4799 = vmatprep.subr.bf16.mxu0 %v10133_v2  ;;  %4840 = vmatprep.subr.bf16.mxu1 %v10135_v35 }
 0xb95   :  { %4800 = vmatpush1.bf16.msra.mxu0 %v10137_v38  ;;  %4841 = vmatpush1.bf16.msra.mxu1 %v10139_v5 }
 0xb96   :  { %4801 = vmatprep.subr.bf16.mxu0 %v10145_v36  ;;  %4842 = vmatprep.subr.bf16.mxu1 %v10147_v53 }
 0xb99   :  { %4802 = vmatpush1.bf16.msra.mxu0 %v10149_v26  ;;  %4843 = vmatpush1.bf16.msra.mxu1 %v10151_v11 }
 0xb9a   :  { %4803 = vmatprep.subr.bf16.mxu0 %v10157_v3  ;;  %4844 = vmatprep.subr.bf16.mxu1 %v10159_v48 }
 0xb9d   :  { %4804 = vmatpush1.bf16.msra.mxu0 %v10161_v54  ;;  %4845 = vmatpush1.bf16.msra.mxu1 %v10163_v47 }
 0xb9e   :  { %4805 = vmatprep.subr.bf16.mxu0 %v10169_v6  ;;  %4846 = vmatprep.subr.bf16.mxu1 %v10171_v42 }
 0xba1   :  { %4806 = vmatpush1.bf16.msra.mxu0 %v10173_v43  ;;  %4847 = vmatpush1.bf16.msra.mxu1 %v10175_v45 }
 0xba2   :  { %4807 = vmatprep.subr.bf16.mxu0 %v10181_v37  ;;  %4848 = vmatprep.subr.bf16.mxu1 %v10183_v63 }
 0xba5   :  { %4808 = vmatpush1.bf16.msra.mxu0 %v10185_v4  ;;  %4849 = vmatpush1.bf16.msra.mxu1 %v10187_v40 }
 0xba6   :  { %4809 = vmatprep.subr.bf16.mxu0 %v10193_v46  ;;  %4850 = vmatprep.subr.bf16.mxu1 %v10195_v50 }
 0xba9   :  { %4810 = vmatpush1.bf16.msra.mxu0 %v10197_v44  ;;  %4851 = vmatpush1.bf16.msra.mxu1 %v10199_v14 }
 0xbaa   :  { %4811 = vmatprep.subr.bf16.mxu0 %v10205_v13  ;;  %4852 = vmatprep.subr.bf16.mxu1 %v10207_v15 }
 0xbad   :  { %4812 = vmatpush1.bf16.msra.mxu0 %v10209_v33  ;;  %4853 = vmatpush1.bf16.msra.mxu1 %v10211_v34 }
 0xbae   :  { %5097 = vmatprep.subr.bf16.mxu0 %v10121_v22  ;;  %5138 = vmatprep.subr.bf16.mxu1 %v10123_v60 }
 0xc62   :  { %v4531_v28 = vpop.f32.mrb[76].mxu0  ;;  %v4572_v10 = vpop.f32.mrb[76].mxu1 }
 0xc63   :  { %v4579_v12 = vadd.f32 %v4531_v28, %v3273_v16  ;;  %v4581_v62 = vadd.f32 %v4572_v10, %v3346_v25  ;;  %v4533_v29 = vpop.f32.mrb[77].mxu0  ;;  %v4574_v41 = vpop.f32.mrb[77].mxu1 }
 0xc64   :  { %v4580_v52 = vadd.f32 %v4533_v29, %v3275_v19  ;;  %v4582_v55 = vadd.f32 %v4574_v41, %v3348_v0  ;;  %v4535_v56 = vpop.f32.mrb[78].mxu0  ;;  %v4576_v57 = vpop.f32.mrb[78].mxu1 }
 0xc65   :  { %8601 = vtanh.f32 %v4579_v12  ;;  %v4536_v59 = vpop.f32.mrb[79].mxu0  ;;  %v4577_v61 = vpop.f32.mrb[79].mxu1  ;;  %v11003_v56 = vld [vmem:[#allocation39_spill] sm:$0xff] }
 0xc66   :  { %8603 = vtanh.f32 %v4580_v52  ;;  %v11002_v52 = vld [vmem:[#allocation38_spill] sm:$0xff]  ;;  %v3281_v57 = vadd.f32 %v11003_v56, %v10001_v24  ;;  %v11004_v59 = vld [vmem:[#allocation40_spill] sm:$0xff] }
 0xc67   :  { %8605 = vtanh.f32 %v4581_v62  ;;  %v3354_v61 = vadd.f32 %v11004_v59, %v10004_v51 }
 0xc68   :  { %8607 = vtanh.f32 %v4582_v55  ;;  %v3352_v55 = vadd.f32 %v11002_v52, %v9994_v20 }
 0xc6f   :  { %v8602_v39 = vpop.eup %8601 }
 0xc70   :  { %v4587_v31 = vmul.f32 0.5, %v8602_v39  ;;  %v8604_v30 = vpop.eup %8603 }
 0xc71   :  { %v4589_v23 = vmul.f32 0.5, %v8604_v30  ;;  %v8606_v18 = vpop.eup %8605 }
 0xc72   :  { %v4588_v17 = vadd.f32 0.5, %v4587_v31  ;;  %v8608_v0 = vpop.eup %8607 }
 0xc73   :  { %v4590_v16 = vadd.f32 0.5, %v4589_v23  ;;  %v4591_v28 = vmul.f32 0.5, %v8608_v0 }
 0xc74   :  { %v4594_v25 = vmul.f32 %v8606_v18, %v4588_v17 }
 0xc75   :  { %v4593_v27 = vmul.f32 %v4590_v16, %v10112_v58  ;;  %v4592_v10 = vadd.f32 0.5, %v4591_v28  ;;  %v11001_v58 = vld [vmem:[#allocation37_spill] sm:$0xff] }
 0xc76   :  { %v3279_v41 = vadd.f32 %v11001_v58, %v9991_v9 }
 0xc77   :  { %v10228_v19 = vadd.f32 %v4594_v25, %v4593_v27 }
 0xc79   :  { %8609 = vtanh.f32 %v10228_v19 }
 0xc83   :  { %v8610_v12 = vpop.eup %8609 }
 0xc84   :  { %v10231_v62 = vmul.f32 %v8610_v12, %v4592_v10 }
 0xc86   :  { %v4604_v29 = vpack.c.bf16 %v10231_v62, %v10231_v62 }
 0xc88   :  { %4830 = vmatmul.mubr.bf16.vlgmr.msra.gmra.mrb[80].mxu0 %v4604_v29  ;;  %4871 = vmatmul.mubr.bf16.vlgmr.msra.gmra.mrb[80].mxu1 %v4604_v29 }
 0xc89   :  { %5098 = vmatpush1.bf16.msra.mxu0 %v10125_v32  ;;  %5139 = vmatpush1.bf16.msra.mxu1 %v10127_v1 }
 0xc8a   :  { %5099 = vmatprep.subr.bf16.mxu0 %v10133_v2  ;;  %5140 = vmatprep.subr.bf16.mxu1 %v10135_v35 }
 0xc8b   :  { %5129 = vmatprep.mubr.bf16.mxu0 %v10946_v21  ;;  %5170 = vmatprep.mubr.bf16.mxu1 %v10946_v21 }
 0xc8d   :  { %5100 = vmatpush1.bf16.msra.mxu0 %v10137_v38  ;;  %5141 = vmatpush1.bf16.msra.mxu1 %v10139_v5 }
 0xc8e   :  { %5101 = vmatprep.subr.bf16.mxu0 %v10145_v36  ;;  %5142 = vmatprep.subr.bf16.mxu1 %v10147_v53 }
 0xc91   :  { %5102 = vmatpush1.bf16.msra.mxu0 %v10149_v26  ;;  %5143 = vmatpush1.bf16.msra.mxu1 %v10151_v11 }
 0xc92   :  { %5103 = vmatprep.subr.bf16.mxu0 %v10157_v3  ;;  %5144 = vmatprep.subr.bf16.mxu1 %v10159_v48 }
 0xc95   :  { %5104 = vmatpush1.bf16.msra.mxu0 %v10161_v54  ;;  %5145 = vmatpush1.bf16.msra.mxu1 %v10163_v47 }
 0xc96   :  { %5105 = vmatprep.subr.bf16.mxu0 %v10169_v6  ;;  %5146 = vmatprep.subr.bf16.mxu1 %v10171_v42 }
 0xc99   :  { %5106 = vmatpush1.bf16.msra.mxu0 %v10173_v43  ;;  %5147 = vmatpush1.bf16.msra.mxu1 %v10175_v45 }
 0xc9a   :  { %5107 = vmatprep.subr.bf16.mxu0 %v10181_v37  ;;  %5148 = vmatprep.subr.bf16.mxu1 %v10183_v63 }
 0xc9d   :  { %5108 = vmatpush1.bf16.msra.mxu0 %v10185_v4  ;;  %5149 = vmatpush1.bf16.msra.mxu1 %v10187_v40 }
 0xc9e   :  { %5109 = vmatprep.subr.bf16.mxu0 %v10193_v46  ;;  %5150 = vmatprep.subr.bf16.mxu1 %v10195_v50 }
 0xca1   :  { %5110 = vmatpush1.bf16.msra.mxu0 %v10197_v44  ;;  %5151 = vmatpush1.bf16.msra.mxu1 %v10199_v14 }
 0xca2   :  { %5111 = vmatprep.subr.bf16.mxu0 %v10205_v13  ;;  %5152 = vmatprep.subr.bf16.mxu1 %v10207_v15 }
 0xca5   :  { %5112 = vmatpush1.bf16.msra.mxu0 %v10209_v33  ;;  %5153 = vmatpush1.bf16.msra.mxu1 %v10211_v34 }
 0xca6   :  { %5397 = vmatprep.subr.bf16.mxu0 %v10121_v22  ;;  %5438 = vmatprep.subr.bf16.mxu1 %v10123_v60 }
 0xd5b   :  { %v4831_v39 = vpop.f32.mrb[80].mxu0  ;;  %v4872_v31 = vpop.f32.mrb[80].mxu1 }
 0xd5c   :  { %v4879_v30 = vadd.f32 %v4831_v39, %v3279_v41  ;;  %v4881_v17 = vadd.f32 %v4872_v31, %v3352_v55  ;;  %v4833_v23 = vpop.f32.mrb[81].mxu0  ;;  %v4874_v18 = vpop.f32.mrb[81].mxu1 }
 0xd5d   :  { %v4880_v16 = vadd.f32 %v4833_v23, %v3281_v57  ;;  %v4882_v25 = vadd.f32 %v4874_v18, %v3354_v61  ;;  %v4835_v27 = vpop.f32.mrb[82].mxu0  ;;  %v4876_v0 = vpop.f32.mrb[82].mxu1 }
 0xd5e   :  { %8611 = vtanh.f32 %v4879_v30  ;;  %v4836_v28 = vpop.f32.mrb[83].mxu0  ;;  %v4877_v10 = vpop.f32.mrb[83].mxu1  ;;  %v11007_v0 = vld [vmem:[#allocation43_spill] sm:$0xff] }
 0xd5f   :  { %8613 = vtanh.f32 %v4880_v16  ;;  %v3285_v28 = vadd.f32 %v11007_v0, %v10001_v24  ;;  %v11008_v10 = vld [vmem:[#allocation44_spill] sm:$0xff] }
 0xd60   :  { %8615 = vtanh.f32 %v4881_v17 }
 0xd61   :  { %8617 = vtanh.f32 %v4882_v25  ;;  %v11006_v25 = vld [vmem:[#allocation42_spill] sm:$0xff] }
 0xd62   :  { %v3356_v27 = vadd.f32 %v11006_v25, %v9994_v20 }
 0xd68   :  { %v8612_v12 = vpop.eup %8611 }
 0xd69   :  { %v4887_v29 = vmul.f32 0.5, %v8612_v12  ;;  %v8614_v58 = vpop.eup %8613  ;;  %v3358_v12 = vadd.f32 %v11008_v10, %v10004_v51 }
 0xd6a   :  { %v4889_v56 = vmul.f32 0.5, %v8614_v58  ;;  %v8616_v59 = vpop.eup %8615 }
 0xd6b   :  { %v4888_v52 = vadd.f32 0.5, %v4887_v29  ;;  %v8618_v61 = vpop.eup %8617 }
 0xd6c   :  { %v4890_v41 = vadd.f32 0.5, %v4889_v56  ;;  %v4891_v31 = vmul.f32 0.5, %v8618_v61 }
 0xd6d   :  { %v4894_v55 = vmul.f32 %v8616_v59, %v4888_v52 }
 0xd6e   :  { %v4893_v39 = vmul.f32 %v4890_v41, %v10228_v19  ;;  %v4892_v30 = vadd.f32 0.5, %v4891_v31  ;;  %v11005_v19 = vld [vmem:[#allocation41_spill] sm:$0xff] }
 0xd6f   :  { %v3283_v16 = vadd.f32 %v11005_v19, %v9991_v9 }
 0xd70   :  { %v10278_v57 = vadd.f32 %v4894_v55, %v4893_v39 }
 0xd72   :  { %8619 = vtanh.f32 %v10278_v57 }
 0xd7c   :  { %v8620_v23 = vpop.eup %8619 }
 0xd7d   :  { %v10281_v17 = vmul.f32 %v8620_v23, %v4892_v30 }
 0xd7f   :  { %v4904_v18 = vpack.c.bf16 %v10281_v17, %v10281_v17 }
 0xd81   :  { %5130 = vmatmul.mubr.bf16.vlgmr.msra.gmra.mrb[84].mxu0 %v4904_v18  ;;  %5171 = vmatmul.mubr.bf16.vlgmr.msra.gmra.mrb[84].mxu1 %v4904_v18 }
 0xd82   :  { %5398 = vmatpush1.bf16.msra.mxu0 %v10125_v32  ;;  %5439 = vmatpush1.bf16.msra.mxu1 %v10127_v1 }
 0xd83   :  { %5399 = vmatprep.subr.bf16.mxu0 %v10133_v2  ;;  %5440 = vmatprep.subr.bf16.mxu1 %v10135_v35 }
 0xd84   :  { %5429 = vmatprep.mubr.bf16.mxu0 %v10946_v21  ;;  %5470 = vmatprep.mubr.bf16.mxu1 %v10946_v21 }
 0xd86   :  { %5400 = vmatpush1.bf16.msra.mxu0 %v10137_v38  ;;  %5441 = vmatpush1.bf16.msra.mxu1 %v10139_v5 }
 0xd87   :  { %5401 = vmatprep.subr.bf16.mxu0 %v10145_v36  ;;  %5442 = vmatprep.subr.bf16.mxu1 %v10147_v53 }
 0xd8a   :  { %5402 = vmatpush1.bf16.msra.mxu0 %v10149_v26  ;;  %5443 = vmatpush1.bf16.msra.mxu1 %v10151_v11 }
 0xd8b   :  { %5403 = vmatprep.subr.bf16.mxu0 %v10157_v3  ;;  %5444 = vmatprep.subr.bf16.mxu1 %v10159_v48 }
 0xd8e   :  { %5404 = vmatpush1.bf16.msra.mxu0 %v10161_v54  ;;  %5445 = vmatpush1.bf16.msra.mxu1 %v10163_v47 }
 0xd8f   :  { %5405 = vmatprep.subr.bf16.mxu0 %v10169_v6  ;;  %5446 = vmatprep.subr.bf16.mxu1 %v10171_v42 }
 0xd92   :  { %5406 = vmatpush1.bf16.msra.mxu0 %v10173_v43  ;;  %5447 = vmatpush1.bf16.msra.mxu1 %v10175_v45 }
 0xd93   :  { %5407 = vmatprep.subr.bf16.mxu0 %v10181_v37  ;;  %5448 = vmatprep.subr.bf16.mxu1 %v10183_v63 }
 0xd96   :  { %5408 = vmatpush1.bf16.msra.mxu0 %v10185_v4  ;;  %5449 = vmatpush1.bf16.msra.mxu1 %v10187_v40 }
 0xd97   :  { %5409 = vmatprep.subr.bf16.mxu0 %v10193_v46  ;;  %5450 = vmatprep.subr.bf16.mxu1 %v10195_v50 }
 0xd9a   :  { %5410 = vmatpush1.bf16.msra.mxu0 %v10197_v44  ;;  %5451 = vmatpush1.bf16.msra.mxu1 %v10199_v14 }
 0xd9b   :  { %5411 = vmatprep.subr.bf16.mxu0 %v10205_v13  ;;  %5452 = vmatprep.subr.bf16.mxu1 %v10207_v15 }
 0xd9e   :  { %5412 = vmatpush1.bf16.msra.mxu0 %v10209_v33  ;;  %5453 = vmatpush1.bf16.msra.mxu1 %v10211_v34 }
 0xd9f   :  { %5697 = vmatprep.subr.bf16.mxu0 %v10121_v22  ;;  %5738 = vmatprep.subr.bf16.mxu1 %v10123_v60 }
 0xe54   :  { %v5131_v29 = vpop.f32.mrb[84].mxu0  ;;  %v5172_v58 = vpop.f32.mrb[84].mxu1 }
 0xe55   :  { %v5179_v52 = vadd.f32 %v5131_v29, %v3283_v16  ;;  %v5181_v56 = vadd.f32 %v5172_v58, %v3356_v27  ;;  %v5133_v59 = vpop.f32.mrb[85].mxu0  ;;  %v5174_v22 = vpop.f32.mrb[85].mxu1 }
 0xe56   :  { %v5180_v41 = vadd.f32 %v5133_v59, %v3285_v28  ;;  %v5182_v60 = vadd.f32 %v5174_v22, %v3358_v12  ;;  %v5135_v55 = vpop.f32.mrb[86].mxu0  ;;  %v5176_v39 = vpop.f32.mrb[86].mxu1 }
 0xe57   :  { %8621 = vtanh.f32 %v5179_v52  ;;  %v5136_v61 = vpop.f32.mrb[87].mxu0  ;;  %v5177_v31 = vpop.f32.mrb[87].mxu1 }
 0xe58   :  { %8623 = vtanh.f32 %v5180_v41  ;;  %v8395_v31 = vld [vmem:[#allocation14] ss:$16 sps:$4 sm:$0xff]  }
 0xe59   :  { %8625 = vtanh.f32 %v5181_v56 }
 0xe5a   :  { %8627 = vtanh.f32 %v5182_v60 }
 0xe61   :  { %v8622_v30 = vpop.eup %8621 }
 0xe62   :  { %v5187_v23 = vmul.f32 0.5, %v8622_v30  ;;  %v8624_v18 = vpop.eup %8623  ;;  %v8398_v30 = vld [vmem:[#allocation14 + $0x8] ss:$16 sps:$4 sm:$0xff]  }
 0xe63   :  { %v5189_v25 = vmul.f32 0.5, %v8624_v18  ;;  %v8626_v0 = vpop.eup %8625  ;;  %v8403_v18 = vld [vmem:[#allocation14 + $0x24] ss:$16 sps:$4 sm:$0xff]  }
 0xe64   :  { %v5188_v19 = vadd.f32 0.5, %v5187_v23  ;;  %v8628_v12 = vpop.eup %8627 }
 0xe65   :  { %v5190_v16 = vadd.f32 0.5, %v5189_v25  ;;  %v5191_v29 = vmul.f32 0.5, %v8628_v12  ;;  %v8401_v25 = vld [vmem:[#allocation14 + $0x20] ss:$16 sps:$4 sm:$0xff]   ;;  %v8415_v12 = vld [vmem:[#allocation14 + $0x64] ss:$16 sps:$4 sm:$0xff]  }
 0xe66   :  { %v5194_v27 = vmul.f32 %v8626_v0, %v5188_v19  ;;  %v8406_v19 = vld [vmem:[#allocation14 + $0x2c] ss:$16 sps:$4 sm:$0xff]   ;;  %v8404_v0 = vld [vmem:[#allocation14 + $0x28] ss:$16 sps:$4 sm:$0xff]  }
 0xe67   :  { %v5193_v10 = vmul.f32 %v5190_v16, %v10278_v57  ;;  %v5192_v58 = vadd.f32 0.5, %v5191_v29  ;;  %v8409_v16 = vld [vmem:[#allocation14 + $0x44] ss:$16 sps:$4 sm:$0xff]   ;;  %v8418_v29 = vld [vmem:[#allocation14 + $0x6c] ss:$16 sps:$4 sm:$0xff]  }
 0xe69   :  { %v10328_v28 = vadd.f32 %v5194_v27, %v5193_v10  ;;  %v8412_v27 = vld [vmem:[#allocation14 + $0x4c] ss:$16 sps:$4 sm:$0xff]   ;;  %v8407_v10 = vld [vmem:[#allocation14 + $0x40] ss:$16 sps:$4 sm:$0xff]  }
 0xe6b   :  { %8629 = vtanh.f32 %v10328_v28 }
 0xe75   :  { %v8630_v52 = vpop.eup %8629 }
 0xe76   :  { %v10331_v56 = vmul.f32 %v8630_v52, %v5192_v58  ;;  %v8413_v58 = vld [vmem:[#allocation14 + $0x60] ss:$16 sps:$4 sm:$0xff]   ;;  %v8416_v52 = vld [vmem:[#allocation14 + $0x68] ss:$16 sps:$4 sm:$0xff]  }
 0xe78   :  { %v5204_v59 = vpack.c.bf16 %v10331_v56, %v10331_v56 }
 0xe7a   :  { %5430 = vmatmul.mubr.bf16.vlgmr.msra.gmra.mrb[88].mxu0 %v5204_v59  ;;  %5471 = vmatmul.mubr.bf16.vlgmr.msra.gmra.mrb[88].mxu1 %v5204_v59  ;;  %v8421_v59 = vld [vmem:[#allocation14 + $0x84] ss:$16 sps:$4 sm:$0xff]  }
 0xe7b   :  { %5698 = vmatpush1.bf16.msra.mxu0 %v10125_v32  ;;  %5739 = vmatpush1.bf16.msra.mxu1 %v10127_v1  ;;  %v8397_v32 = vld [vmem:[#allocation14 + $0x4] ss:$16 sps:$4 sm:$0xff]   ;;  %v8400_v1 = vld [vmem:[#allocation14 + $0xc] ss:$16 sps:$4 sm:$0xff]  }
 0xe7c   :  { %5699 = vmatprep.subr.bf16.mxu0 %v10133_v2  ;;  %5740 = vmatprep.subr.bf16.mxu1 %v10135_v35  ;;  %v11009_v2 = vld [vmem:[#allocation45_spill] sm:$0xff] }
 0xe7d   :  { %5729 = vmatprep.mubr.bf16.mxu0 %v10946_v21  ;;  %5770 = vmatprep.mubr.bf16.mxu1 %v10946_v21  ;;  %v3289_v35 = vadd.f32 %v11009_v2, %v9991_v9  ;;  %v8422_v2 = vld [vmem:[#allocation14 + $0x88] ss:$16 sps:$4 sm:$0xff]  }
 0xe7f   :  { %5700 = vmatpush1.bf16.msra.mxu0 %v10137_v38  ;;  %5741 = vmatpush1.bf16.msra.mxu1 %v10139_v5  ;;  %v11010_v38 = vld [vmem:[#allocation46_spill] sm:$0xff] }
 0xe80   :  { %5701 = vmatprep.subr.bf16.mxu0 %v10145_v36  ;;  %5742 = vmatprep.subr.bf16.mxu1 %v10147_v53  ;;  %v3362_v5 = vadd.f32 %v11010_v38, %v9994_v20  ;;  %v11011_v36 = vld [vmem:[#allocation47_spill] sm:$0xff]  ;;  %v8430_v38 = vld [vmem:[#allocation14 + $0xac] ss:$16 sps:$4 sm:$0xff]  }
 0xe81   :  { %v3291_v53 = vadd.f32 %v11011_v36, %v10001_v24  ;;  %v8428_v36 = vld [vmem:[#allocation14 + $0xa8] ss:$16 sps:$4 sm:$0xff]  }
 0xe83   :  { %5702 = vmatpush1.bf16.msra.mxu0 %v10149_v26  ;;  %5743 = vmatpush1.bf16.msra.mxu1 %v10151_v11  ;;  %v11012_v26 = vld [vmem:[#allocation48_spill] sm:$0xff] }
 0xe84   :  { %5703 = vmatprep.subr.bf16.mxu0 %v10157_v3  ;;  %5744 = vmatprep.subr.bf16.mxu1 %v10159_v48  ;;  %v3364_v11 = vadd.f32 %v11012_v26, %v10004_v51  ;;  %v8436_v26 = vld [vmem:[#allocation14 + $0xcc] ss:$16 sps:$4 sm:$0xff]  }
 0xe87   :  { %5704 = vmatpush1.bf16.msra.mxu0 %v10161_v54  ;;  %5745 = vmatpush1.bf16.msra.mxu1 %v10163_v47 }
 0xe88   :  { %5705 = vmatprep.subr.bf16.mxu0 %v10169_v6  ;;  %5746 = vmatprep.subr.bf16.mxu1 %v10171_v42 }
 0xe8b   :  { %5706 = vmatpush1.bf16.msra.mxu0 %v10173_v43  ;;  %5747 = vmatpush1.bf16.msra.mxu1 %v10175_v45 }
 0xe8c   :  { %5707 = vmatprep.subr.bf16.mxu0 %v10181_v37  ;;  %5748 = vmatprep.subr.bf16.mxu1 %v10183_v63 }
 0xe8f   :  { %5708 = vmatpush1.bf16.msra.mxu0 %v10185_v4  ;;  %5749 = vmatpush1.bf16.msra.mxu1 %v10187_v40 }
 0xe90   :  { %5709 = vmatprep.subr.bf16.mxu0 %v10193_v46  ;;  %5750 = vmatprep.subr.bf16.mxu1 %v10195_v50 }
 0xe93   :  { %5710 = vmatpush1.bf16.msra.mxu0 %v10197_v44  ;;  %5751 = vmatpush1.bf16.msra.mxu1 %v10199_v14 }
 0xe94   :  { %5711 = vmatprep.subr.bf16.mxu0 %v10205_v13  ;;  %5752 = vmatprep.subr.bf16.mxu1 %v10207_v15 }
 0xe97   :  { %5712 = vmatpush1.bf16.msra.mxu0 %v10209_v33  ;;  %5753 = vmatpush1.bf16.msra.mxu1 %v10211_v34 }
 0xe98   :  { %6026 = vmatprep.subr.bf16.mxu0 %v8397_v32  ;;  %6099 = vmatprep.subr.bf16.mxu1 %v8400_v1  ;;  %v8424_v32 = vld [vmem:[#allocation14 + $0x8c] ss:$16 sps:$4 sm:$0xff]   ;;  %v8419_v1 = vld [vmem:[#allocation14 + $0x80] ss:$16 sps:$4 sm:$0xff]  }
 0xf4d   :  { %v5431_v3 = vpop.f32.mrb[88].mxu0  ;;  %v5472_v48 = vpop.f32.mrb[88].mxu1 }
 0xf4e   :  { %v5479_v54 = vadd.f32 %v5431_v3, %v3289_v35  ;;  %v5481_v47 = vadd.f32 %v5472_v48, %v3362_v5  ;;  %v5433_v6 = vpop.f32.mrb[89].mxu0  ;;  %v5474_v42 = vpop.f32.mrb[89].mxu1  ;;  %v8427_v35 = vld [vmem:[#allocation14 + $0xa4] ss:$16 sps:$4 sm:$0xff]   ;;  %v8425_v5 = vld [vmem:[#allocation14 + $0xa0] ss:$16 sps:$4 sm:$0xff]  }
 0xf4f   :  { %v5480_v43 = vadd.f32 %v5433_v6, %v3291_v53  ;;  %v5482_v45 = vadd.f32 %v5474_v42, %v3364_v11  ;;  %v5435_v37 = vpop.f32.mrb[90].mxu0  ;;  %v5476_v63 = vpop.f32.mrb[90].mxu1  ;;  %v8433_v53 = vld [vmem:[#allocation14 + $0xc4] ss:$16 sps:$4 sm:$0xff]   ;;  %v8431_v11 = vld [vmem:[#allocation14 + $0xc0] ss:$16 sps:$4 sm:$0xff]   ;;  %v5808_v42 = vpack.c.bf16 %v10067_v7, %v10017_v49 }
 0xf50   :  { %8631 = vtanh.f32 %v5479_v54  ;;  %v5436_v4 = vpop.f32.mrb[91].mxu0  ;;  %v5477_v40 = vpop.f32.mrb[91].mxu1  ;;  %v8434_v3 = vld [vmem:[#allocation14 + $0xc8] ss:$16 sps:$4 sm:$0xff]   ;;  %v8439_v48 = vld [vmem:[#allocation14 + $0xe4] ss:$16 sps:$4 sm:$0xff]  }
 0xf51   :  { %8633 = vtanh.f32 %v5480_v43  ;;  %v8442_v54 = vld [vmem:[#allocation14 + $0xec] ss:$16 sps:$4 sm:$0xff]   ;;  %v8440_v6 = vld [vmem:[#allocation14 + $0xe8] ss:$16 sps:$4 sm:$0xff]   ;;  %v5809_v43 = vpack.c.bf16 %v10231_v62, %v10115_v8  ;;  %v10397_v49 = vld [vmem:[#allocation16 + $0x4] ss:$16 sps:$4 sm:$0xff]  }
 0xf52   :  { %8635 = vtanh.f32 %v5481_v47  ;;  %v8437_v47 = vld [vmem:[#allocation14 + $0xe0] ss:$16 sps:$4 sm:$0xff]   ;;  %v10399_v7 = vld [vmem:[#allocation16 + $0xc] ss:$16 sps:$4 sm:$0xff]   ;;  %v10403_v62 = vld [vmem:[#allocation16 + $0x8] ss:$16 sps:$4 sm:$0xff]  }
 0xf53   :  { %8637 = vtanh.f32 %v5482_v45  ;;  %v5810_v45 = vpack.c.bf16 %v10331_v56, %v10281_v17  ;;  %v10401_v8 = vld [vmem:[#allocation16] ss:$16 sps:$4 sm:$0xff]   ;;  %v10409_v17 = vld [vmem:[#allocation16 + $0x24] ss:$16 sps:$4 sm:$0xff]   ;;  %v10411_v56 = vld [vmem:[#allocation16 + $0x2c] ss:$16 sps:$4 sm:$0xff]  }
 0xf54   :  { %v10413_v37 = vld [vmem:[#allocation16 + $0x20] ss:$16 sps:$4 sm:$0xff]   ;;  %v10415_v63 = vld [vmem:[#allocation16 + $0x28] ss:$16 sps:$4 sm:$0xff]   ;;  %v10421_v4 = vld [vmem:[#allocation16 + $0x44] ss:$16 sps:$4 sm:$0xff]  }
 0xf55   :  { %v10423_v40 = vld [vmem:[#allocation16 + $0x4c] ss:$16 sps:$4 sm:$0xff]  }
 0xf5a   :  { %v8632_v46 = vpop.eup %8631 }
 0xf5b   :  { %v5487_v50 = vmul.f32 0.5, %v8632_v46  ;;  %v8634_v44 = vpop.eup %8633  ;;  %v10425_v46 = vld [vmem:[#allocation16 + $0x40] ss:$16 sps:$4 sm:$0xff]  }
 0xf5c   :  { %v5489_v13 = vmul.f32 0.5, %v8634_v44  ;;  %v8636_v15 = vpop.eup %8635  ;;  %v10431_v44 = vld [vmem:[#allocation16 + $0x64] ss:$16 sps:$4 sm:$0xff]  }
 0xf5d   :  { %v5488_v14 = vadd.f32 0.5, %v5487_v50  ;;  %v8638_v41 = vpop.eup %8637  ;;  %v10427_v50 = vld [vmem:[#allocation16 + $0x48] ss:$16 sps:$4 sm:$0xff]  }
 0xf5e   :  { %v5490_v33 = vadd.f32 0.5, %v5489_v13  ;;  %v5491_v60 = vmul.f32 0.5, %v8638_v41  ;;  %v10437_v13 = vld [vmem:[#allocation16 + $0x60] ss:$16 sps:$4 sm:$0xff]   ;;  %v10453_v41 = vld [vmem:[#allocation16 + $0x88] ss:$16 sps:$4 sm:$0xff]  }
 0xf5f   :  { %v5494_v34 = vmul.f32 %v8636_v15, %v5488_v14  ;;  %v10433_v14 = vld [vmem:[#allocation16 + $0x6c] ss:$16 sps:$4 sm:$0xff]   ;;  %v10439_v15 = vld [vmem:[#allocation16 + $0x68] ss:$16 sps:$4 sm:$0xff]  }
 0xf60   :  { %v5493_v57 = vmul.f32 %v5490_v33, %v10328_v28  ;;  %v5492_v55 = vadd.f32 0.5, %v5491_v60  ;;  %v8410_v28 = vld [vmem:[#allocation14 + $0x48] ss:$16 sps:$4 sm:$0xff]   ;;  %v10443_v33 = vld [vmem:[#allocation16 + $0x84] ss:$16 sps:$4 sm:$0xff]  }
 0xf61   :  { %v10457_v60 = vld [vmem:[#allocation16 + $0xa4] ss:$16 sps:$4 sm:$0xff]  }
 0xf62   :  { %v10376_v22 = vadd.f32 %v5494_v34, %v5493_v57  ;;  %v10445_v34 = vld [vmem:[#allocation16 + $0x8c] ss:$16 sps:$4 sm:$0xff]   ;;  %v10451_v57 = vld [vmem:[#allocation16 + $0x80] ss:$16 sps:$4 sm:$0xff]  }
 0xf64   :  { %8639 = vtanh.f32 %v10376_v22 }
 0xf6e   :  { %v8640_v39 = vpop.eup %8639 }
 0xf6f   :  { %v10379_v61 = vmul.f32 %v8640_v39, %v5492_v55  ;;  %v10459_v55 = vld [vmem:[#allocation16 + $0xac] ss:$16 sps:$4 sm:$0xff]   ;;  %v10461_v39 = vld [vmem:[#allocation16 + $0xa0] ss:$16 sps:$4 sm:$0xff]  }
 0xf71   :  { %v5504_v23 = vpack.c.bf16 %v10379_v61, %v10379_v61 }
 0xf73   :  { %5730 = vmatmul.mubr.bf16.vlgmr.msra.gmra.mrb[92].mxu0 %v5504_v23  ;;  %5771 = vmatmul.mubr.bf16.vlgmr.msra.gmra.mrb[92].mxu1 %v5504_v23  ;;  %v10471_v23 = vld [vmem:[#allocation16 + $0xcc] ss:$16 sps:$4 sm:$0xff]  }
 0xf74   :  { %6027 = vmatpush1.bf16.msra.mxu0 %v8395_v31  ;;  %6100 = vmatpush1.bf16.msra.mxu1 %v8398_v30  ;;  %v10463_v31 = vld [vmem:[#allocation16 + $0xa8] ss:$16 sps:$4 sm:$0xff]   ;;  %v10469_v30 = vld [vmem:[#allocation16 + $0xc4] ss:$16 sps:$4 sm:$0xff]  }
 0xf75   :  { %6028 = vmatprep.subr.bf16.mxu0 %v8403_v18  ;;  %6101 = vmatprep.subr.bf16.mxu1 %v8406_v19  ;;  %v10473_v18 = vld [vmem:[#allocation16 + $0xc0] ss:$16 sps:$4 sm:$0xff]   ;;  %v10475_v19 = vld [vmem:[#allocation16 + $0xc8] ss:$16 sps:$4 sm:$0xff]  }
 0xf76   :  { %6058 = vmatprep.mubr.bf16.mxu0 %v10946_v21  ;;  %6131 = vmatprep.mubr.bf16.mxu1 %v10946_v21 }
 0xf78   :  { %6029 = vmatpush1.bf16.msra.mxu0 %v8401_v25  ;;  %6102 = vmatpush1.bf16.msra.mxu1 %v8404_v0  ;;  %v10481_v25 = vld [vmem:[#allocation16 + $0xe4] ss:$16 sps:$4 sm:$0xff]   ;;  %v10483_v0 = vld [vmem:[#allocation16 + $0xec] ss:$16 sps:$4 sm:$0xff]  }
 0xf79   :  { %6030 = vmatprep.subr.bf16.mxu0 %v8409_v16  ;;  %6103 = vmatprep.subr.bf16.mxu1 %v8412_v27  ;;  %v10485_v16 = vld [vmem:[#allocation16 + $0xe0] ss:$16 sps:$4 sm:$0xff]   ;;  %v10487_v27 = vld [vmem:[#allocation16 + $0xe8] ss:$16 sps:$4 sm:$0xff]  }
 0xf7c   :  { %6031 = vmatpush1.bf16.msra.mxu0 %v8407_v10  ;;  %6104 = vmatpush1.bf16.msra.mxu1 %v8410_v28  ;;  %v11013_v10 = vld [vmem:[#allocation49_spill] sm:$0xff] }
 0xf7d   :  { %6032 = vmatprep.subr.bf16.mxu0 %v8415_v12  ;;  %6105 = vmatprep.subr.bf16.mxu1 %v8418_v29  ;;  %v3293_v28 = vadd.f32 %v11013_v10, %v9991_v9  ;;  %v11014_v12 = vld [vmem:[#allocation50_spill] sm:$0xff] }
 0xf7e   :  { %v3366_v29 = vadd.f32 %v11014_v12, %v9994_v20 }
 0xf80   :  { %6033 = vmatpush1.bf16.msra.mxu0 %v8413_v58  ;;  %6106 = vmatpush1.bf16.msra.mxu1 %v8416_v52  ;;  %v11015_v58 = vld [vmem:[#allocation51_spill] sm:$0xff] }
 0xf81   :  { %6034 = vmatprep.subr.bf16.mxu0 %v8421_v59  ;;  %6107 = vmatprep.subr.bf16.mxu1 %v8424_v32  ;;  %v3295_v52 = vadd.f32 %v11015_v58, %v10001_v24  ;;  %v11016_v59 = vld [vmem:[#allocation52_spill] sm:$0xff] }
 0xf82   :  { %v3368_v32 = vadd.f32 %v11016_v59, %v10004_v51 }
 0xf84   :  { %6035 = vmatpush1.bf16.msra.mxu0 %v8419_v1  ;;  %6108 = vmatpush1.bf16.msra.mxu1 %v8422_v2 }
 0xf85   :  { %6036 = vmatprep.subr.bf16.mxu0 %v8427_v35  ;;  %6109 = vmatprep.subr.bf16.mxu1 %v8430_v38 }
 0xf88   :  { %6037 = vmatpush1.bf16.msra.mxu0 %v8425_v5  ;;  %6110 = vmatpush1.bf16.msra.mxu1 %v8428_v36 }
 0xf89   :  { %6038 = vmatprep.subr.bf16.mxu0 %v8433_v53  ;;  %6111 = vmatprep.subr.bf16.mxu1 %v8436_v26 }
 0xf8c   :  { %6039 = vmatpush1.bf16.msra.mxu0 %v8431_v11  ;;  %6112 = vmatpush1.bf16.msra.mxu1 %v8434_v3 }
 0xf8d   :  { %6040 = vmatprep.subr.bf16.mxu0 %v8439_v48  ;;  %6113 = vmatprep.subr.bf16.mxu1 %v8442_v54 }
 0xf90   :  { %6041 = vmatpush1.bf16.msra.mxu0 %v8437_v47  ;;  %6114 = vmatpush1.bf16.msra.mxu1 %v8440_v6 }
 0xf91   :  { %6400 = vmatprep.subr.bf16.mxu0 %v10397_v49  ;;  %6441 = vmatprep.subr.bf16.mxu1 %v10399_v7 }
 0xf93   :  { %6059 = vmatmul.mubr.bf16.vlgmr.msra.gmra.mrb[96].mxu0 %v5808_v42  ;;  %6132 = vmatmul.mubr.bf16.vlgmr.msra.gmra.mrb[96].mxu1 %v5808_v42 }
 0xf94   :  { %6068 = vmatprep.mubr.bf16.mxu0 %v10946_v21  ;;  %6141 = vmatprep.mubr.bf16.mxu1 %v10946_v21 }
 0xf95   :  { %6401 = vmatpush1.bf16.msra.mxu0 %v10401_v8  ;;  %6442 = vmatpush1.bf16.msra.mxu1 %v10403_v62 }
 0xf96   :  { %6402 = vmatprep.subr.bf16.mxu0 %v10409_v17  ;;  %6443 = vmatprep.subr.bf16.mxu1 %v10411_v56 }
 0xf99   :  { %6403 = vmatpush1.bf16.msra.mxu0 %v10413_v37  ;;  %6444 = vmatpush1.bf16.msra.mxu1 %v10415_v63 }
 0xf9a   :  { %6404 = vmatprep.subr.bf16.mxu0 %v10421_v4  ;;  %6445 = vmatprep.subr.bf16.mxu1 %v10423_v40 }
 0xf9b   :  { %6069 = vmatmul.mubr.bf16.gmra.mrb[100].mxu0 %v5809_v43  ;;  %6142 = vmatmul.mubr.bf16.gmra.mrb[100].mxu1 %v5809_v43 }
 0xf9c   :  { %6078 = vmatprep.mubr.bf16.mxu0 %v10946_v21  ;;  %6151 = vmatprep.mubr.bf16.mxu1 %v10946_v21 }
 0xf9d   :  { %6405 = vmatpush1.bf16.msra.mxu0 %v10425_v46  ;;  %6446 = vmatpush1.bf16.msra.mxu1 %v10427_v50 }
 0xf9e   :  { %6406 = vmatprep.subr.bf16.mxu0 %v10431_v44  ;;  %6447 = vmatprep.subr.bf16.mxu1 %v10433_v14 }
 0xfa1   :  { %6407 = vmatpush1.bf16.msra.mxu0 %v10437_v13  ;;  %6448 = vmatpush1.bf16.msra.mxu1 %v10439_v15 }
 0xfa2   :  { %6408 = vmatprep.subr.bf16.mxu0 %v10443_v33  ;;  %6449 = vmatprep.subr.bf16.mxu1 %v10445_v34 }
 0xfa3   :  { %6079 = vmatmul.mubr.bf16.gmra.mrb[104].mxu0 %v5810_v45  ;;  %6152 = vmatmul.mubr.bf16.gmra.mrb[104].mxu1 %v5810_v45 }
 0xfa4   :  { %6088 = vmatprep.mubr.bf16.mxu0 %v10946_v21  ;;  %6161 = vmatprep.mubr.bf16.mxu1 %v10946_v21 }
 0xfa5   :  { %6409 = vmatpush1.bf16.msra.mxu0 %v10451_v57  ;;  %6450 = vmatpush1.bf16.msra.mxu1 %v10453_v41 }
 0xfa6   :  { %6410 = vmatprep.subr.bf16.mxu0 %v10457_v60  ;;  %6451 = vmatprep.subr.bf16.mxu1 %v10459_v55 }
 0xfa9   :  { %6411 = vmatpush1.bf16.msra.mxu0 %v10461_v39  ;;  %6452 = vmatpush1.bf16.msra.mxu1 %v10463_v31 }
 0xfaa   :  { %6412 = vmatprep.subr.bf16.mxu0 %v10469_v30  ;;  %6453 = vmatprep.subr.bf16.mxu1 %v10471_v23 }
 0xfad   :  { %6413 = vmatpush1.bf16.msra.mxu0 %v10473_v18  ;;  %6454 = vmatpush1.bf16.msra.mxu1 %v10475_v19 }
 0xfae   :  { %6414 = vmatprep.subr.bf16.mxu0 %v10481_v25  ;;  %6455 = vmatprep.subr.bf16.mxu1 %v10483_v0 }
 0xfb1   :  { %6415 = vmatpush1.bf16.msra.mxu0 %v10485_v16  ;;  %6456 = vmatpush1.bf16.msra.mxu1 %v10487_v27 }
 0xfb2   :  { %6506 = vmatprep.subr.bf16.mxu0 %v10397_v49  ;;  %6547 = vmatprep.subr.bf16.mxu1 %v10399_v7 }
0x1046   :  { %v5731_v1 = vpop.f32.mrb[92].mxu0  ;;  %v5772_v2 = vpop.f32.mrb[92].mxu1 }
0x1047   :  { %v5779_v35 = vadd.f32 %v5731_v1, %v3293_v28  ;;  %v5781_v38 = vadd.f32 %v5772_v2, %v3366_v29  ;;  %v5733_v5 = vpop.f32.mrb[93].mxu0  ;;  %v5774_v36 = vpop.f32.mrb[93].mxu1 }
0x1048   :  { %v5780_v53 = vadd.f32 %v5733_v5, %v3295_v52  ;;  %v5782_v26 = vadd.f32 %v5774_v36, %v3368_v32  ;;  %v5735_v11 = vpop.f32.mrb[94].mxu0  ;;  %v5776_v3 = vpop.f32.mrb[94].mxu1 }
0x1049   :  { %8641 = vtanh.f32 %v5779_v35  ;;  %v5736_v9 = vpop.f32.mrb[95].mxu0  ;;  %v5777_v48 = vpop.f32.mrb[95].mxu1 }
0x104a   :  { %8643 = vtanh.f32 %v5780_v53 }
0x104b   :  { %8645 = vtanh.f32 %v5781_v38 }
0x104c   :  { %8647 = vtanh.f32 %v5782_v26 }
0x1053   :  { %v8642_v20 = vpop.eup %8641 }
0x1054   :  { %v5787_v24 = vmul.f32 0.5, %v8642_v20  ;;  %v8644_v54 = vpop.eup %8643 }
0x1055   :  { %v5789_v51 = vmul.f32 0.5, %v8644_v54  ;;  %v8646_v6 = vpop.eup %8645 }
0x1056   :  { %v5788_v47 = vadd.f32 0.5, %v5787_v24  ;;  %v8648_v28 = vpop.eup %8647 }
0x1057   :  { %v5790_v42 = vadd.f32 0.5, %v5789_v51  ;;  %v5791_v12 = vmul.f32 0.5, %v8648_v28 }
0x1058   :  { %v5794_v43 = vmul.f32 %v8646_v6, %v5788_v47 }
0x1059   :  { %v5793_v45 = vmul.f32 %v5790_v42, %v10376_v22  ;;  %v5792_v52 = vadd.f32 0.5, %v5791_v12 }
0x105b   :  { %v5795_v10 = vadd.f32 %v5794_v43, %v5793_v45 }
0x105d   :  { %8649 = vtanh.f32 %v5795_v10  ;;  %v5844_v10 = vld [vmem:[%s10908_s9] sm:$0xf] }
0x1066   :  { %v10504_v29 = vpop.f32.mrb[96].mxu0  ;;  %v10506_v58 = vpop.f32.mrb[96].mxu1 }
0x1067   :  { %v10508_v59 = vpop.f32.mrb[97].mxu0  ;;  %v10510_v32 = vpop.f32.mrb[97].mxu1 }
0x1068   :  { %v8650_v1 = vpop.eup %8649  ;;  %v10512_v2 = vpop.f32.mrb[98].mxu0 }
0x1069   :  { %v10514_v35 = vpop.f32.mrb[98].mxu1  ;;  %v10516_v38 = vpop.f32.mrb[99].mxu0  ;;  %v5797_v5 = vmul.f32 %v8650_v1, %v5792_v52 }
0x106a   :  { %v10518_v22 = vpop.f32.mrb[99].mxu1 }
0x106b   :  { %v5811_v36 = vpack.c.bf16 %v5797_v5, %v10379_v61 }
0x106d   :  { %6089 = vmatmul.mubr.bf16.gmra.mrb[108].mxu0 %v5811_v36  ;;  %6162 = vmatmul.mubr.bf16.gmra.mrb[108].mxu1 %v5811_v36 }
0x106e   :  { %v10521_v53 = vpop.f32.mrb[100].mxu0  ;;  %v10523_v26 = vpop.f32.mrb[100].mxu1  ;;  %6432 = vmatprep.mubr.bf16.mxu0 %v10946_v21  ;;  %6473 = vmatprep.mubr.bf16.mxu1 %v10946_v21 }
0x106f   :  { %11017 = vst [vmem:[#allocation30_spill] sm:$0xff] %v10523_v26  ;;  %v10527_v11 = vpop.f32.mrb[101].mxu0  ;;  %v10529_v3 = vpop.f32.mrb[101].mxu1 }
0x1070   :  { %11018 = vst [vmem:[#allocation31_spill] sm:$0xff] %v10527_v11  ;;  %11019 = vst [vmem:[#allocation32_spill] sm:$0xff] %v10529_v3  ;;  %v10531_v9 = vpop.f32.mrb[102].mxu0  ;;  %v10533_v48 = vpop.f32.mrb[102].mxu1 }
0x1071   :  { %11020 = vst [vmem:[#allocation33_spill] sm:$0xff] %v10531_v9  ;;  %11021 = vst [vmem:[#allocation34_spill] sm:$0xff] %v10533_v48  ;;  %v10535_v20 = vpop.f32.mrb[103].mxu0  ;;  %v10537_v61 = vpop.f32.mrb[103].mxu1 }
0x1072   :  { %11022 = vst [vmem:[#allocation35_spill] sm:$0xff] %v10535_v20  ;;  %11023 = vst [vmem:[#allocation36_spill] sm:$0xff] %v10537_v61 }
0x1075   :  { %6433 = vmatmul.mubr.bf16.vlgmr.msra.gmra.mrb[112].mxu0 %v10946_v21  ;;  %6474 = vmatmul.mubr.bf16.vlgmr.msra.gmra.mrb[112].mxu1 %v10946_v21 }
0x1076   :  { %v10541_v24 = vpop.f32.mrb[104].mxu0  ;;  %v10543_v54 = vpop.f32.mrb[104].mxu1  ;;  %6507 = vmatpush1.bf16.msra.mxu0 %v10401_v8  ;;  %6548 = vmatpush1.bf16.msra.mxu1 %v10403_v62 }
0x1077   :  { %11024 = vst [vmem:[#allocation37_spill] sm:$0xff] %v10541_v24  ;;  %11025 = vst [vmem:[#allocation38_spill] sm:$0xff] %v10543_v54  ;;  %v10547_v47 = vpop.f32.mrb[105].mxu0  ;;  %v10549_v51 = vpop.f32.mrb[105].mxu1  ;;  %6508 = vmatprep.subr.bf16.mxu0 %v10409_v17  ;;  %6549 = vmatprep.subr.bf16.mxu1 %v10411_v56 }
0x1078   :  { %11026 = vst [vmem:[#allocation39_spill] sm:$0xff] %v10547_v47  ;;  %11027 = vst [vmem:[#allocation40_spill] sm:$0xff] %v10549_v51  ;;  %v10553_v6 = vpop.f32.mrb[106].mxu0  ;;  %v10555_v42 = vpop.f32.mrb[106].mxu1  ;;  %6538 = vmatprep.mubr.bf16.mxu0 %v10946_v21  ;;  %6579 = vmatprep.mubr.bf16.mxu1 %v10946_v21 }
0x1079   :  { %11028 = vst [vmem:[#allocation41_spill] sm:$0xff] %v10553_v6  ;;  %11029 = vst [vmem:[#allocation42_spill] sm:$0xff] %v10555_v42  ;;  %v10559_v43 = vpop.f32.mrb[107].mxu0  ;;  %v10561_v45 = vpop.f32.mrb[107].mxu1  ;;  %v11039_v42 = vld [vmem:[#allocation26_spill] sm:$0xff] }
0x107a   :  { %11030 = vst [vmem:[#allocation43_spill] sm:$0xff] %v10559_v43  ;;  %11031 = vst [vmem:[#allocation44_spill] sm:$0xff] %v10561_v45  ;;  %6509 = vmatpush1.bf16.msra.mxu0 %v10413_v37  ;;  %6550 = vmatpush1.bf16.msra.mxu1 %v10415_v63  ;;  %v11038_v45 = vld [vmem:[#allocation28_spill] sm:$0xff]  ;;  %v10610_v6 = vrot.slane %v5844_v10, %v11039_v42 }
0x107b   :  { %6510 = vmatprep.subr.bf16.mxu0 %v10421_v4  ;;  %6551 = vmatprep.subr.bf16.mxu1 %v10423_v40  ;;  %v10607_v43 = vrot.slane %v5844_v10, %v11038_v45 }
0x107c   :  { %v6134_v45 = vadd.f32 %v10506_v58, %v10610_v6 }
0x107e   :  { %6511 = vmatpush1.bf16.msra.mxu0 %v10425_v46  ;;  %6552 = vmatpush1.bf16.msra.mxu1 %v10427_v50 }
0x107f   :  { %6512 = vmatprep.subr.bf16.mxu0 %v10431_v44  ;;  %6553 = vmatprep.subr.bf16.mxu1 %v10433_v14 }
0x1082   :  { %6513 = vmatpush1.bf16.msra.mxu0 %v10437_v13  ;;  %6554 = vmatpush1.bf16.msra.mxu1 %v10439_v15 }
0x1083   :  { %6514 = vmatprep.subr.bf16.mxu0 %v10443_v33  ;;  %6555 = vmatprep.subr.bf16.mxu1 %v10445_v34 }
0x1086   :  { %6515 = vmatpush1.bf16.msra.mxu0 %v10451_v57  ;;  %6556 = vmatpush1.bf16.msra.mxu1 %v10453_v41 }
0x1087   :  { %6516 = vmatprep.subr.bf16.mxu0 %v10457_v60  ;;  %6557 = vmatprep.subr.bf16.mxu1 %v10459_v55 }
0x108a   :  { %6517 = vmatpush1.bf16.msra.mxu0 %v10461_v39  ;;  %6558 = vmatpush1.bf16.msra.mxu1 %v10463_v31 }
0x108b   :  { %6518 = vmatprep.subr.bf16.mxu0 %v10469_v30  ;;  %6559 = vmatprep.subr.bf16.mxu1 %v10471_v23 }
0x108e   :  { %6519 = vmatpush1.bf16.msra.mxu0 %v10473_v18  ;;  %6560 = vmatpush1.bf16.msra.mxu1 %v10475_v19 }
0x108f   :  { %6520 = vmatprep.subr.bf16.mxu0 %v10481_v25  ;;  %6561 = vmatprep.subr.bf16.mxu1 %v10483_v0 }
0x1092   :  { %6521 = vmatpush1.bf16.msra.mxu0 %v10485_v16  ;;  %6562 = vmatpush1.bf16.msra.mxu1 %v10487_v27 }
0x1093   :  { %6612 = vmatprep.subr.bf16.mxu0 %v10397_v49  ;;  %6653 = vmatprep.subr.bf16.mxu1 %v10399_v7 }
0x1140   :  { %v10594_v28 = vpop.f32.mrb[108].mxu0  ;;  %v10596_v12 = vpop.f32.mrb[108].mxu1 }
0x1141   :  { %11032 = vst [vmem:[#allocation45_spill] sm:$0xff] %v10594_v28  ;;  %11033 = vst [vmem:[#allocation46_spill] sm:$0xff] %v10596_v12  ;;  %v10598_v52 = vpop.f32.mrb[109].mxu0  ;;  %v10600_v1 = vpop.f32.mrb[109].mxu1  ;;  %v11042_v28 = vld [vmem:[#allocation29_spill] sm:$0xff] }
0x1142   :  { %11034 = vst [vmem:[#allocation47_spill] sm:$0xff] %v10598_v52  ;;  %11035 = vst [vmem:[#allocation48_spill] sm:$0xff] %v10600_v1  ;;  %v10602_v5 = vpop.f32.mrb[110].mxu0  ;;  %v10604_v36 = vpop.f32.mrb[110].mxu1  ;;  %v10617_v12 = vrot.slane %v5844_v10, %v11042_v28  ;;  %v11043_v52 = vld [vmem:[#allocation27_spill] sm:$0xff] }
0x1143   :  { %11036 = vst [vmem:[#allocation49_spill] sm:$0xff] %v10602_v5  ;;  %11037 = vst [vmem:[#allocation50_spill] sm:$0xff] %v10604_v36  ;;  %v10612_v51 = vpop.f32.mrb[111].mxu0  ;;  %v10614_v47 = vpop.f32.mrb[111].mxu1  ;;  %v10620_v54 = vrot.slane %v5844_v10, %v11043_v52  ;;  %v6061_v5 = vadd.f32 %v10504_v29, %v10607_v43 }
0x1144   :  { %11040 = vst [vmem:[#allocation51_spill] sm:$0xff] %v10612_v51  ;;  %11041 = vst [vmem:[#allocation52_spill] sm:$0xff] %v10614_v47  ;;  %v6063_v42 = vadd.f32 %v10508_v59, %v10617_v12 }
0x1145   :  { %v6136_v51 = vadd.f32 %v10510_v32, %v10620_v54 }
0x1148   :  { %v6434_v36 = vpop.f32.mrb[112].mxu0  ;;  %v6475_v47 = vpop.f32.mrb[112].mxu1 }
0x1149   :  { %v6482_v1 = vadd.f32 %v6434_v36, %v6061_v5  ;;  %v6484_v28 = vadd.f32 %v6475_v47, %v6134_v45  ;;  %v6436_v24 = vpop.f32.mrb[113].mxu0  ;;  %v6477_v61 = vpop.f32.mrb[113].mxu1 }
0x114a   :  { %v6483_v10 = vadd.f32 %v6436_v24, %v6063_v42  ;;  %v6485_v52 = vadd.f32 %v6477_v61, %v6136_v51  ;;  %v6438_v20 = vpop.f32.mrb[114].mxu0  ;;  %v6479_v48 = vpop.f32.mrb[114].mxu1 }
0x114b   :  { %8651 = vtanh.f32 %v6482_v1  ;;  %v6439_v29 = vpop.f32.mrb[115].mxu0  ;;  %v6480_v9 = vpop.f32.mrb[115].mxu1  ;;  %v6140_v1 = vadd.f32 %v10518_v22, %v10620_v54 }
0x114c   :  { %8653 = vtanh.f32 %v6483_v10 }
0x114d   :  { %8655 = vtanh.f32 %v6484_v28 }
0x114e   :  { %8657 = vtanh.f32 %v6485_v52 }
0x1155   :  { %v8652_v58 = vpop.eup %8651 }
0x1156   :  { %v6490_v59 = vmul.f32 0.5, %v8652_v58  ;;  %v8654_v3 = vpop.eup %8653 }
0x1157   :  { %v6492_v32 = vmul.f32 0.5, %v8654_v3  ;;  %v8656_v26 = vpop.eup %8655  ;;  %v6067_v3 = vadd.f32 %v10516_v38, %v10617_v12 }
0x1158   :  { %v6491_v11 = vadd.f32 0.5, %v6490_v59  ;;  %v8658_v48 = vpop.eup %8657 }
0x1159   :  { %v6493_v5 = vadd.f32 0.5, %v6492_v32  ;;  %v6494_v20 = vmul.f32 0.5, %v8658_v48 }
0x115a   :  { %v6497_v47 = vmul.f32 %v8656_v26, %v6491_v11  ;;  %v6065_v26 = vadd.f32 %v10512_v2, %v10607_v43  ;;  %v6138_v11 = vadd.f32 %v10514_v35, %v10610_v6 }
0x115b   :  { %v6496_v36 = vmul.f32 0.0, %v6493_v5  ;;  %v6495_v61 = vadd.f32 0.5, %v6494_v20 }
0x115d   :  { %v10630_v45 = vadd.f32 %v6497_v47, %v6496_v36 }
0x115f   :  { %8659 = vtanh.f32 %v10630_v45 }
0x1169   :  { %v8660_v9 = vpop.eup %8659 }
0x116a   :  { %v6500_v24 = vmul.f32 %v8660_v9, %v6495_v61 }
0x116c   :  { %v6505_v51 = vpack.c.bf16 %v6500_v24, %v6500_v24 }
0x116e   :  { %6539 = vmatmul.mubr.bf16.vlgmr.msra.gmra.mrb[116].mxu0 %v6505_v51  ;;  %6580 = vmatmul.mubr.bf16.vlgmr.msra.gmra.mrb[116].mxu1 %v6505_v51 }
0x116f   :  { %6613 = vmatpush1.bf16.msra.mxu0 %v10401_v8  ;;  %6654 = vmatpush1.bf16.msra.mxu1 %v10403_v62 }
0x1170   :  { %6614 = vmatprep.subr.bf16.mxu0 %v10409_v17  ;;  %6655 = vmatprep.subr.bf16.mxu1 %v10411_v56 }
0x1171   :  { %6644 = vmatprep.mubr.bf16.mxu0 %v10946_v21  ;;  %6685 = vmatprep.mubr.bf16.mxu1 %v10946_v21 }
0x1173   :  { %6615 = vmatpush1.bf16.msra.mxu0 %v10413_v37  ;;  %6656 = vmatpush1.bf16.msra.mxu1 %v10415_v63 }
0x1174   :  { %6616 = vmatprep.subr.bf16.mxu0 %v10421_v4  ;;  %6657 = vmatprep.subr.bf16.mxu1 %v10423_v40 }
0x1177   :  { %6617 = vmatpush1.bf16.msra.mxu0 %v10425_v46  ;;  %6658 = vmatpush1.bf16.msra.mxu1 %v10427_v50 }
0x1178   :  { %6618 = vmatprep.subr.bf16.mxu0 %v10431_v44  ;;  %6659 = vmatprep.subr.bf16.mxu1 %v10433_v14 }
0x117b   :  { %6619 = vmatpush1.bf16.msra.mxu0 %v10437_v13  ;;  %6660 = vmatpush1.bf16.msra.mxu1 %v10439_v15 }
0x117c   :  { %6620 = vmatprep.subr.bf16.mxu0 %v10443_v33  ;;  %6661 = vmatprep.subr.bf16.mxu1 %v10445_v34 }
0x117f   :  { %6621 = vmatpush1.bf16.msra.mxu0 %v10451_v57  ;;  %6662 = vmatpush1.bf16.msra.mxu1 %v10453_v41 }
0x1180   :  { %6622 = vmatprep.subr.bf16.mxu0 %v10457_v60  ;;  %6663 = vmatprep.subr.bf16.mxu1 %v10459_v55 }
0x1183   :  { %6623 = vmatpush1.bf16.msra.mxu0 %v10461_v39  ;;  %6664 = vmatpush1.bf16.msra.mxu1 %v10463_v31 }
0x1184   :  { %6624 = vmatprep.subr.bf16.mxu0 %v10469_v30  ;;  %6665 = vmatprep.subr.bf16.mxu1 %v10471_v23 }
0x1187   :  { %6625 = vmatpush1.bf16.msra.mxu0 %v10473_v18  ;;  %6666 = vmatpush1.bf16.msra.mxu1 %v10475_v19 }
0x1188   :  { %6626 = vmatprep.subr.bf16.mxu0 %v10481_v25  ;;  %6667 = vmatprep.subr.bf16.mxu1 %v10483_v0 }
0x118b   :  { %6627 = vmatpush1.bf16.msra.mxu0 %v10485_v16  ;;  %6668 = vmatpush1.bf16.msra.mxu1 %v10487_v27 }
0x118c   :  { %6718 = vmatprep.subr.bf16.mxu0 %v10397_v49  ;;  %6759 = vmatprep.subr.bf16.mxu1 %v10399_v7 }
0x1241   :  { %v6540_v42 = vpop.f32.mrb[116].mxu0  ;;  %v6581_v28 = vpop.f32.mrb[116].mxu1 }
0x1242   :  { %v6588_v10 = vadd.f32 %v6540_v42, %v6065_v26  ;;  %v6590_v52 = vadd.f32 %v6581_v28, %v6138_v11  ;;  %v6542_v29 = vpop.f32.mrb[117].mxu0  ;;  %v6583_v58 = vpop.f32.mrb[117].mxu1 }
0x1243   :  { %v6589_v59 = vadd.f32 %v6542_v29, %v6067_v3  ;;  %v6591_v32 = vadd.f32 %v6583_v58, %v6140_v1  ;;  %v6544_v5 = vpop.f32.mrb[118].mxu0  ;;  %v6585_v47 = vpop.f32.mrb[118].mxu1  ;;  %v11045_v58 = vld [vmem:[#allocation31_spill] sm:$0xff] }
0x1244   :  { %8661 = vtanh.f32 %v6588_v10  ;;  %v6545_v2 = vpop.f32.mrb[119].mxu0  ;;  %v6586_v36 = vpop.f32.mrb[119].mxu1 }
0x1245   :  { %8663 = vtanh.f32 %v6589_v59  ;;  %v6073_v59 = vadd.f32 %v11045_v58, %v10617_v12 }
0x1246   :  { %8665 = vtanh.f32 %v6590_v52  ;;  %v11044_v52 = vld [vmem:[#allocation30_spill] sm:$0xff] }
0x1247   :  { %8667 = vtanh.f32 %v6591_v32  ;;  %v6144_v29 = vadd.f32 %v11044_v52, %v10610_v6  ;;  %v11046_v32 = vld [vmem:[#allocation32_spill] sm:$0xff] }
0x1248   :  { %v6146_v5 = vadd.f32 %v11046_v32, %v10620_v54 }
0x124e   :  { %v8662_v35 = vpop.eup %8661 }
0x124f   :  { %v6596_v38 = vmul.f32 0.5, %v8662_v35  ;;  %v8664_v48 = vpop.eup %8663 }
0x1250   :  { %v6598_v22 = vmul.f32 0.5, %v8664_v48  ;;  %v8666_v61 = vpop.eup %8665 }
0x1251   :  { %v6597_v20 = vadd.f32 0.5, %v6596_v38  ;;  %v8668_v11 = vpop.eup %8667 }
0x1252   :  { %v6599_v9 = vadd.f32 0.5, %v6598_v22  ;;  %v6600_v3 = vmul.f32 0.5, %v8668_v11 }
0x1253   :  { %v6603_v24 = vmul.f32 %v8666_v61, %v6597_v20 }
0x1254   :  { %v6602_v51 = vmul.f32 %v6599_v9, %v10630_v45  ;;  %v6601_v1 = vadd.f32 0.5, %v6600_v3  ;;  %v6071_v45 = vadd.f32 %v10521_v53, %v10607_v43 }
0x1256   :  { %v10676_v26 = vadd.f32 %v6603_v24, %v6602_v51 }
0x1258   :  { %8669 = vtanh.f32 %v10676_v26 }
0x1262   :  { %v8670_v42 = vpop.eup %8669 }
0x1263   :  { %v6606_v28 = vmul.f32 %v8670_v42, %v6601_v1 }
0x1265   :  { %v6611_v10 = vpack.c.bf16 %v6606_v28, %v6606_v28 }
0x1267   :  { %6645 = vmatmul.mubr.bf16.vlgmr.msra.gmra.mrb[120].mxu0 %v6611_v10  ;;  %6686 = vmatmul.mubr.bf16.vlgmr.msra.gmra.mrb[120].mxu1 %v6611_v10 }
0x1268   :  { %6719 = vmatpush1.bf16.msra.mxu0 %v10401_v8  ;;  %6760 = vmatpush1.bf16.msra.mxu1 %v10403_v62 }
0x1269   :  { %6720 = vmatprep.subr.bf16.mxu0 %v10409_v17  ;;  %6761 = vmatprep.subr.bf16.mxu1 %v10411_v56 }
0x126a   :  { %6750 = vmatprep.mubr.bf16.mxu0 %v10946_v21  ;;  %6791 = vmatprep.mubr.bf16.mxu1 %v10946_v21 }
0x126c   :  { %6721 = vmatpush1.bf16.msra.mxu0 %v10413_v37  ;;  %6762 = vmatpush1.bf16.msra.mxu1 %v10415_v63 }
0x126d   :  { %6722 = vmatprep.subr.bf16.mxu0 %v10421_v4  ;;  %6763 = vmatprep.subr.bf16.mxu1 %v10423_v40 }
0x1270   :  { %6723 = vmatpush1.bf16.msra.mxu0 %v10425_v46  ;;  %6764 = vmatpush1.bf16.msra.mxu1 %v10427_v50 }
0x1271   :  { %6724 = vmatprep.subr.bf16.mxu0 %v10431_v44  ;;  %6765 = vmatprep.subr.bf16.mxu1 %v10433_v14 }
0x1274   :  { %6725 = vmatpush1.bf16.msra.mxu0 %v10437_v13  ;;  %6766 = vmatpush1.bf16.msra.mxu1 %v10439_v15 }
0x1275   :  { %6726 = vmatprep.subr.bf16.mxu0 %v10443_v33  ;;  %6767 = vmatprep.subr.bf16.mxu1 %v10445_v34 }
0x1278   :  { %6727 = vmatpush1.bf16.msra.mxu0 %v10451_v57  ;;  %6768 = vmatpush1.bf16.msra.mxu1 %v10453_v41 }
0x1279   :  { %6728 = vmatprep.subr.bf16.mxu0 %v10457_v60  ;;  %6769 = vmatprep.subr.bf16.mxu1 %v10459_v55 }
0x127c   :  { %6729 = vmatpush1.bf16.msra.mxu0 %v10461_v39  ;;  %6770 = vmatpush1.bf16.msra.mxu1 %v10463_v31 }
0x127d   :  { %6730 = vmatprep.subr.bf16.mxu0 %v10469_v30  ;;  %6771 = vmatprep.subr.bf16.mxu1 %v10471_v23 }
0x1280   :  { %6731 = vmatpush1.bf16.msra.mxu0 %v10473_v18  ;;  %6772 = vmatpush1.bf16.msra.mxu1 %v10475_v19 }
0x1281   :  { %6732 = vmatprep.subr.bf16.mxu0 %v10481_v25  ;;  %6773 = vmatprep.subr.bf16.mxu1 %v10483_v0 }
0x1284   :  { %6733 = vmatpush1.bf16.msra.mxu0 %v10485_v16  ;;  %6774 = vmatpush1.bf16.msra.mxu1 %v10487_v27 }
0x1285   :  { %6824 = vmatprep.subr.bf16.mxu0 %v10397_v49  ;;  %6865 = vmatprep.subr.bf16.mxu1 %v10399_v7 }
0x133a   :  { %v6646_v47 = vpop.f32.mrb[120].mxu0  ;;  %v6687_v2 = vpop.f32.mrb[120].mxu1 }
0x133b   :  { %v6694_v36 = vadd.f32 %v6646_v47, %v6071_v45  ;;  %v6696_v35 = vadd.f32 %v6687_v2, %v6144_v29  ;;  %v6648_v38 = vpop.f32.mrb[121].mxu0  ;;  %v6689_v48 = vpop.f32.mrb[121].mxu1 }
0x133c   :  { %v6695_v20 = vadd.f32 %v6648_v38, %v6073_v59  ;;  %v6697_v22 = vadd.f32 %v6689_v48, %v6146_v5  ;;  %v6650_v61 = vpop.f32.mrb[122].mxu0  ;;  %v6691_v9 = vpop.f32.mrb[122].mxu1  ;;  %v11049_v48 = vld [vmem:[#allocation35_spill] sm:$0xff] }
0x133d   :  { %8671 = vtanh.f32 %v6694_v36  ;;  %v6651_v53 = vpop.f32.mrb[123].mxu0  ;;  %v6692_v24 = vpop.f32.mrb[123].mxu1 }
0x133e   :  { %8673 = vtanh.f32 %v6695_v20  ;;  %v6077_v20 = vadd.f32 %v11049_v48, %v10617_v12 }
0x133f   :  { %8675 = vtanh.f32 %v6696_v35  ;;  %v11048_v35 = vld [vmem:[#allocation34_spill] sm:$0xff] }
0x1340   :  { %8677 = vtanh.f32 %v6697_v22  ;;  %v6148_v38 = vadd.f32 %v11048_v35, %v10610_v6  ;;  %v11050_v22 = vld [vmem:[#allocation36_spill] sm:$0xff] }
0x1341   :  { %v6150_v61 = vadd.f32 %v11050_v22, %v10620_v54 }
0x1347   :  { %v8672_v51 = vpop.eup %8671 }
0x1348   :  { %v6702_v11 = vmul.f32 0.5, %v8672_v51  ;;  %v8674_v3 = vpop.eup %8673 }
0x1349   :  { %v6704_v42 = vmul.f32 0.5, %v8674_v3  ;;  %v8676_v28 = vpop.eup %8675 }
0x134a   :  { %v6703_v1 = vadd.f32 0.5, %v6702_v11  ;;  %v8678_v58 = vpop.eup %8677 }
0x134b   :  { %v6705_v10 = vadd.f32 0.5, %v6704_v42  ;;  %v6706_v59 = vmul.f32 0.5, %v8678_v58 }
0x134c   :  { %v6709_v45 = vmul.f32 %v8676_v28, %v6703_v1 }
0x134d   :  { %v6708_v52 = vmul.f32 %v6705_v10, %v10676_v26  ;;  %v6707_v32 = vadd.f32 0.5, %v6706_v59  ;;  %v11047_v26 = vld [vmem:[#allocation33_spill] sm:$0xff] }
0x134e   :  { %v6075_v36 = vadd.f32 %v11047_v26, %v10607_v43 }
0x134f   :  { %v10722_v29 = vadd.f32 %v6709_v45, %v6708_v52 }
0x1351   :  { %8679 = vtanh.f32 %v10722_v29 }
0x135b   :  { %v8680_v5 = vpop.eup %8679 }
0x135c   :  { %v6712_v47 = vmul.f32 %v8680_v5, %v6707_v32 }
0x135e   :  { %v6717_v2 = vpack.c.bf16 %v6712_v47, %v6712_v47 }
0x1360   :  { %6751 = vmatmul.mubr.bf16.vlgmr.msra.gmra.mrb[124].mxu0 %v6717_v2  ;;  %6792 = vmatmul.mubr.bf16.vlgmr.msra.gmra.mrb[124].mxu1 %v6717_v2 }
0x1361   :  { %6825 = vmatpush1.bf16.msra.mxu0 %v10401_v8  ;;  %6866 = vmatpush1.bf16.msra.mxu1 %v10403_v62 }
0x1362   :  { %6826 = vmatprep.subr.bf16.mxu0 %v10409_v17  ;;  %6867 = vmatprep.subr.bf16.mxu1 %v10411_v56 }
0x1363   :  { %6856 = vmatprep.mubr.bf16.mxu0 %v10946_v21  ;;  %6897 = vmatprep.mubr.bf16.mxu1 %v10946_v21 }
0x1365   :  { %6827 = vmatpush1.bf16.msra.mxu0 %v10413_v37  ;;  %6868 = vmatpush1.bf16.msra.mxu1 %v10415_v63 }
0x1366   :  { %6828 = vmatprep.subr.bf16.mxu0 %v10421_v4  ;;  %6869 = vmatprep.subr.bf16.mxu1 %v10423_v40 }
0x1369   :  { %6829 = vmatpush1.bf16.msra.mxu0 %v10425_v46  ;;  %6870 = vmatpush1.bf16.msra.mxu1 %v10427_v50 }
0x136a   :  { %6830 = vmatprep.subr.bf16.mxu0 %v10431_v44  ;;  %6871 = vmatprep.subr.bf16.mxu1 %v10433_v14 }
0x136d   :  { %6831 = vmatpush1.bf16.msra.mxu0 %v10437_v13  ;;  %6872 = vmatpush1.bf16.msra.mxu1 %v10439_v15 }
0x136e   :  { %6832 = vmatprep.subr.bf16.mxu0 %v10443_v33  ;;  %6873 = vmatprep.subr.bf16.mxu1 %v10445_v34 }
0x1371   :  { %6833 = vmatpush1.bf16.msra.mxu0 %v10451_v57  ;;  %6874 = vmatpush1.bf16.msra.mxu1 %v10453_v41 }
0x1372   :  { %6834 = vmatprep.subr.bf16.mxu0 %v10457_v60  ;;  %6875 = vmatprep.subr.bf16.mxu1 %v10459_v55 }
0x1375   :  { %6835 = vmatpush1.bf16.msra.mxu0 %v10461_v39  ;;  %6876 = vmatpush1.bf16.msra.mxu1 %v10463_v31 }
0x1376   :  { %6836 = vmatprep.subr.bf16.mxu0 %v10469_v30  ;;  %6877 = vmatprep.subr.bf16.mxu1 %v10471_v23 }
0x1379   :  { %6837 = vmatpush1.bf16.msra.mxu0 %v10473_v18  ;;  %6878 = vmatpush1.bf16.msra.mxu1 %v10475_v19 }
0x137a   :  { %6838 = vmatprep.subr.bf16.mxu0 %v10481_v25  ;;  %6879 = vmatprep.subr.bf16.mxu1 %v10483_v0 }
0x137d   :  { %6839 = vmatpush1.bf16.msra.mxu0 %v10485_v16  ;;  %6880 = vmatpush1.bf16.msra.mxu1 %v10487_v27 }
0x137e   :  { %6930 = vmatprep.subr.bf16.mxu0 %v10397_v49  ;;  %6971 = vmatprep.subr.bf16.mxu1 %v10399_v7 }
0x1433   :  { %v6752_v9 = vpop.f32.mrb[124].mxu0  ;;  %v6793_v53 = vpop.f32.mrb[124].mxu1 }
0x1434   :  { %v6800_v24 = vadd.f32 %v6752_v9, %v6075_v36  ;;  %v6802_v51 = vadd.f32 %v6793_v53, %v6148_v38  ;;  %v6754_v11 = vpop.f32.mrb[125].mxu0  ;;  %v6795_v3 = vpop.f32.mrb[125].mxu1 }
0x1435   :  { %v6801_v1 = vadd.f32 %v6754_v11, %v6077_v20  ;;  %v6803_v42 = vadd.f32 %v6795_v3, %v6150_v61  ;;  %v6756_v28 = vpop.f32.mrb[126].mxu0  ;;  %v6797_v10 = vpop.f32.mrb[126].mxu1  ;;  %v11053_v3 = vld [vmem:[#allocation39_spill] sm:$0xff] }
0x1436   :  { %8681 = vtanh.f32 %v6800_v24  ;;  %v6757_v45 = vpop.f32.mrb[127].mxu0  ;;  %v6798_v52 = vpop.f32.mrb[127].mxu1 }
0x1437   :  { %8683 = vtanh.f32 %v6801_v1  ;;  %v6083_v1 = vadd.f32 %v11053_v3, %v10617_v12 }
0x1438   :  { %8685 = vtanh.f32 %v6802_v51  ;;  %v11052_v51 = vld [vmem:[#allocation38_spill] sm:$0xff] }
0x1439   :  { %8687 = vtanh.f32 %v6803_v42  ;;  %v6154_v11 = vadd.f32 %v11052_v51, %v10610_v6  ;;  %v11054_v42 = vld [vmem:[#allocation40_spill] sm:$0xff] }
0x143a   :  { %v6156_v28 = vadd.f32 %v11054_v42, %v10620_v54 }
0x1440   :  { %v8682_v58 = vpop.eup %8681 }
0x1441   :  { %v6808_v59 = vmul.f32 0.5, %v8682_v58  ;;  %v8684_v32 = vpop.eup %8683 }
0x1442   :  { %v6810_v47 = vmul.f32 0.5, %v8684_v32  ;;  %v8686_v2 = vpop.eup %8685 }
0x1443   :  { %v6809_v5 = vadd.f32 0.5, %v6808_v59  ;;  %v8688_v48 = vpop.eup %8687 }
0x1444   :  { %v6811_v26 = vadd.f32 0.5, %v6810_v47  ;;  %v6812_v20 = vmul.f32 0.5, %v8688_v48 }
0x1445   :  { %v6815_v36 = vmul.f32 %v8686_v2, %v6809_v5 }
0x1446   :  { %v6814_v35 = vmul.f32 %v6811_v26, %v10722_v29  ;;  %v6813_v22 = vadd.f32 0.5, %v6812_v20  ;;  %v11051_v29 = vld [vmem:[#allocation37_spill] sm:$0xff] }
0x1447   :  { %v6081_v24 = vadd.f32 %v11051_v29, %v10607_v43 }
0x1448   :  { %v10768_v38 = vadd.f32 %v6815_v36, %v6814_v35 }
0x144a   :  { %8689 = vtanh.f32 %v10768_v38 }
0x1454   :  { %v8690_v61 = vpop.eup %8689 }
0x1455   :  { %v6818_v9 = vmul.f32 %v8690_v61, %v6813_v22 }
0x1457   :  { %v6823_v53 = vpack.c.bf16 %v6818_v9, %v6818_v9 }
0x1459   :  { %6857 = vmatmul.mubr.bf16.vlgmr.msra.gmra.mrb[128].mxu0 %v6823_v53  ;;  %6898 = vmatmul.mubr.bf16.vlgmr.msra.gmra.mrb[128].mxu1 %v6823_v53 }
0x145a   :  { %6931 = vmatpush1.bf16.msra.mxu0 %v10401_v8  ;;  %6972 = vmatpush1.bf16.msra.mxu1 %v10403_v62 }
0x145b   :  { %6932 = vmatprep.subr.bf16.mxu0 %v10409_v17  ;;  %6973 = vmatprep.subr.bf16.mxu1 %v10411_v56 }
0x145c   :  { %6962 = vmatprep.mubr.bf16.mxu0 %v10946_v21  ;;  %7003 = vmatprep.mubr.bf16.mxu1 %v10946_v21 }
0x145e   :  { %6933 = vmatpush1.bf16.msra.mxu0 %v10413_v37  ;;  %6974 = vmatpush1.bf16.msra.mxu1 %v10415_v63 }
0x145f   :  { %6934 = vmatprep.subr.bf16.mxu0 %v10421_v4  ;;  %6975 = vmatprep.subr.bf16.mxu1 %v10423_v40 }
0x1462   :  { %6935 = vmatpush1.bf16.msra.mxu0 %v10425_v46  ;;  %6976 = vmatpush1.bf16.msra.mxu1 %v10427_v50 }
0x1463   :  { %6936 = vmatprep.subr.bf16.mxu0 %v10431_v44  ;;  %6977 = vmatprep.subr.bf16.mxu1 %v10433_v14 }
0x1466   :  { %6937 = vmatpush1.bf16.msra.mxu0 %v10437_v13  ;;  %6978 = vmatpush1.bf16.msra.mxu1 %v10439_v15 }
0x1467   :  { %6938 = vmatprep.subr.bf16.mxu0 %v10443_v33  ;;  %6979 = vmatprep.subr.bf16.mxu1 %v10445_v34 }
0x146a   :  { %6939 = vmatpush1.bf16.msra.mxu0 %v10451_v57  ;;  %6980 = vmatpush1.bf16.msra.mxu1 %v10453_v41 }
0x146b   :  { %6940 = vmatprep.subr.bf16.mxu0 %v10457_v60  ;;  %6981 = vmatprep.subr.bf16.mxu1 %v10459_v55 }
0x146e   :  { %6941 = vmatpush1.bf16.msra.mxu0 %v10461_v39  ;;  %6982 = vmatpush1.bf16.msra.mxu1 %v10463_v31 }
0x146f   :  { %6942 = vmatprep.subr.bf16.mxu0 %v10469_v30  ;;  %6983 = vmatprep.subr.bf16.mxu1 %v10471_v23 }
0x1472   :  { %6943 = vmatpush1.bf16.msra.mxu0 %v10473_v18  ;;  %6984 = vmatpush1.bf16.msra.mxu1 %v10475_v19 }
0x1473   :  { %6944 = vmatprep.subr.bf16.mxu0 %v10481_v25  ;;  %6985 = vmatprep.subr.bf16.mxu1 %v10483_v0 }
0x1476   :  { %6945 = vmatpush1.bf16.msra.mxu0 %v10485_v16  ;;  %6986 = vmatpush1.bf16.msra.mxu1 %v10487_v27 }
0x1477   :  { %7036 = vmatprep.subr.bf16.mxu0 %v10397_v49  ;;  %7077 = vmatprep.subr.bf16.mxu1 %v10399_v7 }
0x152c   :  { %v6858_v10 = vpop.f32.mrb[128].mxu0  ;;  %v6899_v45 = vpop.f32.mrb[128].mxu1 }
0x152d   :  { %v6906_v52 = vadd.f32 %v6858_v10, %v6081_v24  ;;  %v6908_v58 = vadd.f32 %v6899_v45, %v6154_v11  ;;  %v6860_v59 = vpop.f32.mrb[129].mxu0  ;;  %v6901_v49 = vpop.f32.mrb[129].mxu1 }
0x152e   :  { %v6907_v32 = vadd.f32 %v6860_v59, %v6083_v1  ;;  %v6909_v7 = vadd.f32 %v6901_v49, %v6156_v28  ;;  %v6862_v5 = vpop.f32.mrb[130].mxu0  ;;  %v6903_v47 = vpop.f32.mrb[130].mxu1 }
0x152f   :  { %8691 = vtanh.f32 %v6906_v52  ;;  %v6863_v2 = vpop.f32.mrb[131].mxu0  ;;  %v6904_v26 = vpop.f32.mrb[131].mxu1  ;;  %v8736_v5 = vld [vmem:[#allocation16 + $0x8] ss:$16 sps:$4 sm:$0xff]   ;;  %v8737_v47 = vld [vmem:[#allocation16 + $0x24] ss:$16 sps:$4 sm:$0xff]  }
0x1530   :  { %8693 = vtanh.f32 %v6907_v32  ;;  %v8738_v2 = vld [vmem:[#allocation16 + $0x2c] ss:$16 sps:$4 sm:$0xff]   ;;  %v8739_v26 = vld [vmem:[#allocation16 + $0x20] ss:$16 sps:$4 sm:$0xff]  }
0x1531   :  { %8695 = vtanh.f32 %v6908_v58 }
0x1532   :  { %8697 = vtanh.f32 %v6909_v7  ;;  %v8735_v7 = vld [vmem:[#allocation16] ss:$16 sps:$4 sm:$0xff]  }
0x1539   :  { %v8692_v36 = vpop.eup %8691 }
0x153a   :  { %v6914_v35 = vmul.f32 0.5, %v8692_v36  ;;  %v8694_v48 = vpop.eup %8693  ;;  %v8740_v36 = vld [vmem:[#allocation16 + $0x28] ss:$16 sps:$4 sm:$0xff]  }
0x153b   :  { %v6916_v22 = vmul.f32 0.5, %v8694_v48  ;;  %v8696_v61 = vpop.eup %8695  ;;  %v8742_v48 = vld [vmem:[#allocation16 + $0x4c] ss:$16 sps:$4 sm:$0xff]  }
0x153c   :  { %v6915_v20 = vadd.f32 0.5, %v6914_v35  ;;  %v8698_v51 = vpop.eup %8697  ;;  %v8741_v35 = vld [vmem:[#allocation16 + $0x44] ss:$16 sps:$4 sm:$0xff]  }
0x153d   :  { %v6917_v9 = vadd.f32 0.5, %v6916_v22  ;;  %v6918_v11 = vmul.f32 0.5, %v8698_v51  ;;  %v8744_v22 = vld [vmem:[#allocation16 + $0x48] ss:$16 sps:$4 sm:$0xff]   ;;  %v8751_v51 = vld [vmem:[#allocation16 + $0x80] ss:$16 sps:$4 sm:$0xff]  }
0x153e   :  { %v6921_v53 = vmul.f32 %v8696_v61, %v6915_v20  ;;  %v8743_v20 = vld [vmem:[#allocation16 + $0x40] ss:$16 sps:$4 sm:$0xff]   ;;  %v8745_v61 = vld [vmem:[#allocation16 + $0x64] ss:$16 sps:$4 sm:$0xff]  }
0x153f   :  { %v6920_v29 = vmul.f32 %v6917_v9, %v10768_v38  ;;  %v6919_v3 = vadd.f32 0.5, %v6918_v11  ;;  %v8746_v9 = vld [vmem:[#allocation16 + $0x6c] ss:$16 sps:$4 sm:$0xff]   ;;  %v8752_v11 = vld [vmem:[#allocation16 + $0x88] ss:$16 sps:$4 sm:$0xff]  }
0x1541   :  { %v10814_v24 = vadd.f32 %v6921_v53, %v6920_v29  ;;  %v8747_v53 = vld [vmem:[#allocation16 + $0x60] ss:$16 sps:$4 sm:$0xff]   ;;  %v8748_v29 = vld [vmem:[#allocation16 + $0x68] ss:$16 sps:$4 sm:$0xff]  }
0x1543   :  { %8699 = vtanh.f32 %v10814_v24 }
0x154d   :  { %v8700_v1 = vpop.eup %8699 }
0x154e   :  { %v6924_v42 = vmul.f32 %v8700_v1, %v6919_v3  ;;  %v8753_v3 = vld [vmem:[#allocation16 + $0xa4] ss:$16 sps:$4 sm:$0xff]   ;;  %v8754_v1 = vld [vmem:[#allocation16 + $0xac] ss:$16 sps:$4 sm:$0xff]  }
0x1550   :  { %v6929_v28 = vpack.c.bf16 %v6924_v42, %v6924_v42  ;;  %v8755_v42 = vld [vmem:[#allocation16 + $0xa0] ss:$16 sps:$4 sm:$0xff]  }
0x1552   :  { %6963 = vmatmul.mubr.bf16.vlgmr.msra.gmra.mrb[132].mxu0 %v6929_v28  ;;  %7004 = vmatmul.mubr.bf16.vlgmr.msra.gmra.mrb[132].mxu1 %v6929_v28  ;;  %v8756_v28 = vld [vmem:[#allocation16 + $0xa8] ss:$16 sps:$4 sm:$0xff]  }
0x1553   :  { %7037 = vmatpush1.bf16.msra.mxu0 %v10401_v8  ;;  %7078 = vmatpush1.bf16.msra.mxu1 %v10403_v62  ;;  %v8733_v8 = vld [vmem:[#allocation16 + $0x4] ss:$16 sps:$4 sm:$0xff]   ;;  %v8734_v62 = vld [vmem:[#allocation16 + $0xc] ss:$16 sps:$4 sm:$0xff]  }
0x1554   :  { %7038 = vmatprep.subr.bf16.mxu0 %v10409_v17  ;;  %7079 = vmatprep.subr.bf16.mxu1 %v10411_v56  ;;  %v11055_v17 = vld [vmem:[#allocation41_spill] sm:$0xff] }
0x1555   :  { %7068 = vmatprep.mubr.bf16.mxu0 %v10946_v21  ;;  %7109 = vmatprep.mubr.bf16.mxu1 %v10946_v21  ;;  %v6085_v56 = vadd.f32 %v11055_v17, %v10607_v43  ;;  %v8759_v17 = vld [vmem:[#allocation16 + $0xc0] ss:$16 sps:$4 sm:$0xff]  }
0x1557   :  { %7039 = vmatpush1.bf16.msra.mxu0 %v10413_v37  ;;  %7080 = vmatpush1.bf16.msra.mxu1 %v10415_v63  ;;  %v11056_v37 = vld [vmem:[#allocation42_spill] sm:$0xff] }
0x1558   :  { %7040 = vmatprep.subr.bf16.mxu0 %v10421_v4  ;;  %7081 = vmatprep.subr.bf16.mxu1 %v10423_v40  ;;  %v6158_v63 = vadd.f32 %v11056_v37, %v10610_v6  ;;  %v11057_v4 = vld [vmem:[#allocation43_spill] sm:$0xff] }
0x1559   :  { %v6087_v40 = vadd.f32 %v11057_v4, %v10617_v12  ;;  %v8761_v37 = vld [vmem:[#allocation16 + $0xe4] ss:$16 sps:$4 sm:$0xff]   ;;  %v8763_v4 = vld [vmem:[#allocation16 + $0xe0] ss:$16 sps:$4 sm:$0xff]  }
0x155b   :  { %7041 = vmatpush1.bf16.msra.mxu0 %v10425_v46  ;;  %7082 = vmatpush1.bf16.msra.mxu1 %v10427_v50  ;;  %v11058_v46 = vld [vmem:[#allocation44_spill] sm:$0xff] }
0x155c   :  { %7042 = vmatprep.subr.bf16.mxu0 %v10431_v44  ;;  %7083 = vmatprep.subr.bf16.mxu1 %v10433_v14  ;;  %v6160_v50 = vadd.f32 %v11058_v46, %v10620_v54  ;;  %v11059_v46 = vld [vmem:[#allocation45_spill] sm:$0xff] }
0x155f   :  { %7043 = vmatpush1.bf16.msra.mxu0 %v10437_v13  ;;  %7084 = vmatpush1.bf16.msra.mxu1 %v10439_v15 }
0x1560   :  { %7044 = vmatprep.subr.bf16.mxu0 %v10443_v33  ;;  %7085 = vmatprep.subr.bf16.mxu1 %v10445_v34 }
0x1563   :  { %7045 = vmatpush1.bf16.msra.mxu0 %v10451_v57  ;;  %7086 = vmatpush1.bf16.msra.mxu1 %v10453_v41 }
0x1564   :  { %7046 = vmatprep.subr.bf16.mxu0 %v10457_v60  ;;  %7087 = vmatprep.subr.bf16.mxu1 %v10459_v55 }
0x1567   :  { %7047 = vmatpush1.bf16.msra.mxu0 %v10461_v39  ;;  %7088 = vmatpush1.bf16.msra.mxu1 %v10463_v31 }
0x1568   :  { %7048 = vmatprep.subr.bf16.mxu0 %v10469_v30  ;;  %7089 = vmatprep.subr.bf16.mxu1 %v10471_v23 }
0x156b   :  { %7049 = vmatpush1.bf16.msra.mxu0 %v10473_v18  ;;  %7090 = vmatpush1.bf16.msra.mxu1 %v10475_v19 }
0x156c   :  { %7050 = vmatprep.subr.bf16.mxu0 %v10481_v25  ;;  %7091 = vmatprep.subr.bf16.mxu1 %v10483_v0 }
0x156f   :  { %7051 = vmatpush1.bf16.msra.mxu0 %v10485_v16  ;;  %7092 = vmatpush1.bf16.msra.mxu1 %v10487_v27 }
0x1570   :  { %7142 = vmatprep.subr.bf16.mxu0 %v8733_v8  ;;  %7183 = vmatprep.subr.bf16.mxu1 %v8734_v62  ;;  %v8757_v8 = vld [vmem:[#allocation16 + $0xc4] ss:$16 sps:$4 sm:$0xff]   ;;  %v8758_v62 = vld [vmem:[#allocation16 + $0xcc] ss:$16 sps:$4 sm:$0xff]  }
0x1625   :  { %v6964_v44 = vpop.f32.mrb[132].mxu0  ;;  %v7005_v14 = vpop.f32.mrb[132].mxu1 }
0x1626   :  { %v7012_v13 = vadd.f32 %v6964_v44, %v6085_v56  ;;  %v7014_v15 = vadd.f32 %v7005_v14, %v6158_v63  ;;  %v6966_v33 = vpop.f32.mrb[133].mxu0  ;;  %v7007_v34 = vpop.f32.mrb[133].mxu1  ;;  %v8760_v56 = vld [vmem:[#allocation16 + $0xc8] ss:$16 sps:$4 sm:$0xff]   ;;  %v8762_v63 = vld [vmem:[#allocation16 + $0xec] ss:$16 sps:$4 sm:$0xff]  }
0x1627   :  { %v7013_v57 = vadd.f32 %v6966_v33, %v6087_v40  ;;  %v7015_v41 = vadd.f32 %v7007_v34, %v6160_v50  ;;  %v6968_v60 = vpop.f32.mrb[134].mxu0  ;;  %v7009_v55 = vpop.f32.mrb[134].mxu1  ;;  %v8764_v40 = vld [vmem:[#allocation16 + $0xe8] ss:$16 sps:$4 sm:$0xff]   ;;  %v6091_v50 = vadd.f32 %v11059_v46, %v10607_v43 }
0x1628   :  { %8701 = vtanh.f32 %v7012_v13  ;;  %v6969_v39 = vpop.f32.mrb[135].mxu0  ;;  %v7010_v31 = vpop.f32.mrb[135].mxu1  ;;  %v11060_v44 = vld [vmem:[#allocation46_spill] sm:$0xff]  ;;  %v11061_v13 = vld [vmem:[#allocation47_spill] sm:$0xff]  ;;  %v11062_v33 = vld [vmem:[#allocation48_spill] sm:$0xff] }
0x1629   :  { %8703 = vtanh.f32 %v7013_v57  ;;  %v6164_v14 = vadd.f32 %v11060_v44, %v10610_v6  ;;  %v6166_v34 = vadd.f32 %v11062_v33, %v10620_v54  ;;  %v11063_v44 = vld [vmem:[#allocation49_spill] sm:$0xff]  ;;  %v11065_v33 = vld [vmem:[#allocation51_spill] sm:$0xff] }
0x162a   :  { %8705 = vtanh.f32 %v7014_v15  ;;  %v6093_v15 = vadd.f32 %v11061_v13, %v10617_v12  ;;  %v11064_v13 = vld [vmem:[#allocation50_spill] sm:$0xff] }
0x162b   :  { %8707 = vtanh.f32 %v7015_v41 }
0x1632   :  { %v8702_v30 = vpop.eup %8701 }
0x1633   :  { %v7020_v23 = vmul.f32 0.5, %v8702_v30  ;;  %v8704_v18 = vpop.eup %8703 }
0x1634   :  { %v7022_v25 = vmul.f32 0.5, %v8704_v18  ;;  %v8706_v0 = vpop.eup %8705 }
0x1635   :  { %v7021_v19 = vadd.f32 0.5, %v7020_v23  ;;  %v8708_v45 = vpop.eup %8707 }
0x1636   :  { %v7023_v16 = vadd.f32 0.5, %v7022_v25  ;;  %v7024_v52 = vmul.f32 0.5, %v8708_v45 }
0x1637   :  { %v7027_v27 = vmul.f32 %v8706_v0, %v7021_v19 }
0x1638   :  { %v7026_v38 = vmul.f32 %v7023_v16, %v10814_v24  ;;  %v7025_v58 = vadd.f32 0.5, %v7024_v52  ;;  %v8750_v24 = vld [vmem:[#allocation16 + $0x8c] ss:$16 sps:$4 sm:$0xff]  }
0x163a   :  { %v10858_v10 = vadd.f32 %v7027_v27, %v7026_v38 }
0x163c   :  { %8709 = vtanh.f32 %v10858_v10 }
0x1646   :  { %v8710_v59 = vpop.eup %8709 }
0x1647   :  { %v7030_v49 = vmul.f32 %v8710_v59, %v7025_v58 }
0x1649   :  { %v7035_v32 = vpack.c.bf16 %v7030_v49, %v7030_v49 }
0x164b   :  { %7069 = vmatmul.mubr.bf16.vlgmr.msra.gmra.mrb[136].mxu0 %v7035_v32  ;;  %7110 = vmatmul.mubr.bf16.vlgmr.msra.gmra.mrb[136].mxu1 %v7035_v32 }
0x164c   :  { %7143 = vmatpush1.bf16.msra.mxu0 %v8735_v7  ;;  %7184 = vmatpush1.bf16.msra.mxu1 %v8736_v5 }
0x164d   :  { %7144 = vmatprep.subr.bf16.mxu0 %v8737_v47  ;;  %7185 = vmatprep.subr.bf16.mxu1 %v8738_v2 }
0x164e   :  { %7174 = vmatprep.mubr.bf16.mxu0 %v10946_v21  ;;  %7215 = vmatprep.mubr.bf16.mxu1 %v10946_v21  ;;  %v8749_v21 = vld [vmem:[#allocation16 + $0x84] ss:$16 sps:$4 sm:$0xff]  }
0x1650   :  { %7145 = vmatpush1.bf16.msra.mxu0 %v8739_v26  ;;  %7186 = vmatpush1.bf16.msra.mxu1 %v8740_v36 }
0x1651   :  { %7146 = vmatprep.subr.bf16.mxu0 %v8741_v35  ;;  %7187 = vmatprep.subr.bf16.mxu1 %v8742_v48  ;;  %v7243_v48 = vld [vmem:[#allocation17] sm:$0xff] }
0x1654   :  { %7147 = vmatpush1.bf16.msra.mxu0 %v8743_v20  ;;  %7188 = vmatpush1.bf16.msra.mxu1 %v8744_v22  ;;  %v7244_v20 = vld [vmem:[#allocation17 + $0x8] sm:$0xff] }
0x1655   :  { %7148 = vmatprep.subr.bf16.mxu0 %v8745_v61  ;;  %7189 = vmatprep.subr.bf16.mxu1 %v8746_v9  ;;  %v8061_v22 = vpack.c.bf16 %v7244_v20, %v7243_v48  ;;  %v8990_v61 = vmov 0.0|0.0   ;;  %v7246_v9 = vld [vmem:[#allocation17 + $0x18] sm:$0xff] }
0x1658   :  { %7149 = vmatpush1.bf16.msra.mxu0 %v8747_v53  ;;  %7190 = vmatpush1.bf16.msra.mxu1 %v8748_v29  ;;  %v7247_v29 = vld [vmem:[#allocation17 + $0x20] sm:$0xff] }
0x1659   :  { %7150 = vmatprep.subr.bf16.mxu0 %v8749_v21  ;;  %7191 = vmatprep.subr.bf16.mxu1 %v8750_v24  ;;  %v7248_v21 = vld [vmem:[#allocation17 + $0x28] sm:$0xff] }
0x165a   :  { %v8067_v24 = vpack.c.bf16 %v7248_v21, %v7247_v29 }
0x165c   :  { %7151 = vmatpush1.bf16.msra.mxu0 %v8751_v51  ;;  %7192 = vmatpush1.bf16.msra.mxu1 %v8752_v11  ;;  %v7249_v51 = vld [vmem:[#allocation17 + $0x30] sm:$0xff]  ;;  %v7250_v11 = vld [vmem:[#allocation17 + $0x38] sm:$0xff] }
0x165d   :  { %7152 = vmatprep.subr.bf16.mxu0 %v8753_v3  ;;  %7193 = vmatprep.subr.bf16.mxu1 %v8754_v1  ;;  %v8070_v3 = vpack.c.bf16 %v7250_v11, %v7249_v51  ;;  %v7251_v1 = vld [vmem:[#allocation17 + $0x40] sm:$0xff] }
0x1660   :  { %7153 = vmatpush1.bf16.msra.mxu0 %v8755_v42  ;;  %7194 = vmatpush1.bf16.msra.mxu1 %v8756_v28  ;;  %v7252_v42 = vld [vmem:[#allocation17 + $0x48] sm:$0xff] }
0x1661   :  { %7154 = vmatprep.subr.bf16.mxu0 %v8757_v8  ;;  %7195 = vmatprep.subr.bf16.mxu1 %v8758_v62  ;;  %v8073_v28 = vpack.c.bf16 %v7252_v42, %v7251_v1  ;;  %v7253_v8 = vld [vmem:[#allocation17 + $0x50] sm:$0xff]  ;;  %v7254_v62 = vld [vmem:[#allocation17 + $0x58] sm:$0xff] }
0x1664   :  { %7155 = vmatpush1.bf16.msra.mxu0 %v8759_v17  ;;  %7196 = vmatpush1.bf16.msra.mxu1 %v8760_v56  ;;  %v8076_v17 = vpack.c.bf16 %v7254_v62, %v7253_v8  ;;  %v7255_v56 = vld [vmem:[#allocation17 + $0x60] sm:$0xff] }
0x1665   :  { %7156 = vmatprep.subr.bf16.mxu0 %v8761_v37  ;;  %7197 = vmatprep.subr.bf16.mxu1 %v8762_v63  ;;  %v7256_v37 = vld [vmem:[#allocation17 + $0x68] sm:$0xff] }
0x1666   :  { %v8079_v63 = vpack.c.bf16 %v7256_v37, %v7255_v56 }
0x1668   :  { %7157 = vmatpush1.bf16.msra.mxu0 %v8763_v4  ;;  %7198 = vmatpush1.bf16.msra.mxu1 %v8764_v40  ;;  %v7257_v4 = vld [vmem:[#allocation17 + $0x70] sm:$0xff]  ;;  %v7258_v40 = vld [vmem:[#allocation17 + $0x78] sm:$0xff] }
0x1669   :  { %8060 = vmatprep.subr.bf16.mxu0 %v8990_v61  ;;  %v8082_v46 = vpack.c.bf16 %v7258_v40, %v7257_v4 }
0x171e   :  { %v7070_v57 = vpop.f32.mrb[136].mxu0  ;;  %v7111_v41 = vpop.f32.mrb[136].mxu1 }
0x171f   :  { %v7118_v60 = vadd.f32 %v7070_v57, %v6091_v50  ;;  %v7120_v55 = vadd.f32 %v7111_v41, %v6164_v14  ;;  %v7072_v39 = vpop.f32.mrb[137].mxu0  ;;  %v7113_v31 = vpop.f32.mrb[137].mxu1  ;;  %v8992_v50 = vmov 0.0   ;;  %v6095_v14 = vadd.f32 %v11063_v44, %v10607_v43  ;;  %v11066_v57 = vld [vmem:[#allocation52_spill] sm:$0xff] }
0x1720   :  { %v7119_v30 = vadd.f32 %v7072_v39, %v6093_v15  ;;  %v7121_v23 = vadd.f32 %v7113_v31, %v6166_v34  ;;  %v7074_v18 = vpop.f32.mrb[138].mxu0  ;;  %v7115_v19 = vpop.f32.mrb[138].mxu1  ;;  %v6168_v15 = vadd.f32 %v11064_v13, %v10610_v6  ;;  %v6097_v34 = vadd.f32 %v11065_v33, %v10617_v12 }
0x1721   :  { %8711 = vtanh.f32 %v7118_v60  ;;  %v7075_v25 = vpop.f32.mrb[139].mxu0  ;;  %v7116_v0 = vpop.f32.mrb[139].mxu1  ;;  %v6170_v41 = vadd.f32 %v11066_v57, %v10620_v54 }
0x1722   :  { %8713 = vtanh.f32 %v7119_v30 }
0x1723   :  { %8715 = vtanh.f32 %v7120_v55 }
0x1724   :  { %8717 = vtanh.f32 %v7121_v23 }
0x172b   :  { %v8712_v16 = vpop.eup %8711 }
0x172c   :  { %v7126_v27 = vmul.f32 0.5, %v8712_v16  ;;  %v8714_v38 = vpop.eup %8713 }
0x172d   :  { %v7128_v52 = vmul.f32 0.5, %v8714_v38  ;;  %v8716_v58 = vpop.eup %8715 }
0x172e   :  { %v7127_v45 = vadd.f32 0.5, %v7126_v27  ;;  %v8718_v5 = vpop.eup %8717 }
0x172f   :  { %v7129_v59 = vadd.f32 0.5, %v7128_v52  ;;  %v7130_v47 = vmul.f32 0.5, %v8718_v5 }
0x1730   :  { %v7133_v49 = vmul.f32 %v8716_v58, %v7127_v45 }
0x1731   :  { %v7132_v32 = vmul.f32 %v7129_v59, %v10858_v10  ;;  %v7131_v2 = vadd.f32 0.5, %v7130_v47  ;;  %v7245_v10 = vld [vmem:[#allocation17 + $0x10] sm:$0xff] }
0x1732   :  { %v8064_v53 = vpack.c.bf16 %v7246_v9, %v7245_v10 }
0x1733   :  { %v10872_v7 = vadd.f32 %v7133_v49, %v7132_v32 }
0x1735   :  { %8719 = vtanh.f32 %v10872_v7 }
0x173f   :  { %v8720_v26 = vpop.eup %8719 }
0x1740   :  { %v7136_v36 = vmul.f32 %v8720_v26, %v7131_v2 }
0x1742   :  { %v7141_v35 = vpack.c.bf16 %v7136_v36, %v7136_v36  ;;  %v8007_v36 = vld [vmem:[%s10910_s11] ss:$0 sm:$0xff] }
0x1744   :  { %7175 = vmatmul.mubr.bf16.vlgmr.msra.gmra.mrb[140].mxu0 %v7141_v35  ;;  %7216 = vmatmul.mubr.bf16.vlgmr.msra.gmra.mrb[140].mxu1 %v7141_v35 }
0x1745   :  { %8062 = vmatpush3.bf16.msra.mxu0 %v8061_v22  ;;  %8057 = vmatprep.mubr.msk.f32.mxu0 %vm8991_vm0, %v8992_v50 }
0x1746   :  { %8063 = vmatprep.subr.bf16.mxu0 %v8990_v61 }
0x1749   :  { %8065 = vmatpush3.bf16.msra.mxu0 %v8064_v53 }
0x174a   :  { %8066 = vmatprep.subr.bf16.mxu0 %v8990_v61 }
0x174d   :  { %8068 = vmatpush3.bf16.msra.mxu0 %v8067_v24 }
0x174e   :  { %8069 = vmatprep.subr.bf16.mxu0 %v8990_v61 }
0x1751   :  { %8071 = vmatpush3.bf16.msra.mxu0 %v8070_v3 }
0x1752   :  { %8072 = vmatprep.subr.bf16.mxu0 %v8990_v61 }
0x1755   :  { %8074 = vmatpush3.bf16.msra.mxu0 %v8073_v28 }
0x1756   :  { %8075 = vmatprep.subr.bf16.mxu0 %v8990_v61 }
0x1759   :  { %8077 = vmatpush3.bf16.msra.mxu0 %v8076_v17 }
0x175a   :  { %8078 = vmatprep.subr.bf16.mxu0 %v8990_v61 }
0x175d   :  { %8080 = vmatpush3.bf16.msra.mxu0 %v8079_v63 }
0x175e   :  { %8081 = vmatprep.subr.bf16.mxu0 %v8990_v61 }
0x1761   :  { %8083 = vmatpush3.bf16.msra.mxu0 %v8082_v46 }
0x1817   :  { %v7176_v60 = vpop.f32.mrb[140].mxu0  ;;  %v7217_v55 = vpop.f32.mrb[140].mxu1 }
0x1818   :  { %v7224_v39 = vadd.f32 %v7176_v60, %v6095_v14  ;;  %v7226_v31 = vadd.f32 %v7217_v55, %v6168_v15  ;;  %v7178_v30 = vpop.f32.mrb[141].mxu0  ;;  %v7219_v23 = vpop.f32.mrb[141].mxu1 }
0x1819   :  { %v7225_v18 = vadd.f32 %v7178_v30, %v6097_v34  ;;  %v7227_v19 = vadd.f32 %v7219_v23, %v6170_v41  ;;  %v7180_v25 = vpop.f32.mrb[142].mxu0  ;;  %v7221_v0 = vpop.f32.mrb[142].mxu1 }
0x181a   :  { %8721 = vtanh.f32 %v7224_v39  ;;  %v7181_v43 = vpop.f32.mrb[143].mxu0  ;;  %v7222_v16 = vpop.f32.mrb[143].mxu1 }
0x181b   :  { %8723 = vtanh.f32 %v7225_v18 }
0x181c   :  { %8725 = vtanh.f32 %v7226_v31 }
0x181d   :  { %8727 = vtanh.f32 %v7227_v19 }
0x1824   :  { %v8722_v6 = vpop.eup %8721 }
0x1825   :  { %v7232_v12 = vmul.f32 0.5, %v8722_v6  ;;  %v8724_v27 = vpop.eup %8723 }
0x1826   :  { %v7234_v54 = vmul.f32 0.5, %v8724_v27  ;;  %v8726_v45 = vpop.eup %8725 }
0x1827   :  { %v7233_v38 = vadd.f32 0.5, %v7232_v12  ;;  %v8728_v32 = vpop.eup %8727 }
0x1828   :  { %v7235_v52 = vadd.f32 0.5, %v7234_v54  ;;  %v7236_v5 = vmul.f32 0.5, %v8728_v32 }
0x1829   :  { %v7239_v58 = vmul.f32 %v8726_v45, %v7233_v38 }
0x182a   :  { %v7238_v59 = vmul.f32 %v7235_v52, %v10872_v7  ;;  %v7237_v47 = vadd.f32 0.5, %v7236_v5 }
0x182c   :  { %v7240_v49 = vadd.f32 %v7239_v58, %v7238_v59 }
0x182e   :  { %8729 = vtanh.f32 %v7240_v49 }
0x1838   :  { %v8730_v2 = vpop.eup %8729 }
0x1839   :  { %v7242_v26 = vmul.f32 %v8730_v2, %v7237_v47 }
0x183b   :  { %8058 = vmatmul.mubr.f32.vlgmr.msra.gmra.mrb[144].mxu0 %v7242_v26 }
0x190e   :  { %v7332_v35 = vpop.f32.mrb[144].mxu0 }
0x190f   :  { %v7333_v48 = vadd.f32 %v8007_v36, %v7332_v35  ;;  %v8059_v20 = vpop.f32.mrb[145].mxu0 }
0x1911   :  { %7336 = vst [vmem:[#allocation19] sm:$0xff] %v7333_v48 }
0x1912   :  { %8952 = shalt.err (!%p8949_p12)
}
0x1913   :  { %s8953_s15 = scalar_lea.hbm %s10911_s12, 128 }
0x1914   :  { %p8954_p13 = scmp.ne.s32.totalorder %s10911_s12, %s8953_s15  ;;  %p8957_p0 = scmp.lt.u32.totalorder %s8953_s15, %s10911_s12 }
0x1916   :  { %p8959_p1 = pnand %p8957_p0, %p8954_p13 }
0x1918   :  { %8962 = shalt.err (!%p8959_p1)
}
0x1919   :  { %7346 = dma.vmem_to_hbm [thread:$0]  %s7344_s29, 128, %s10911_s12, [#allocation7]  }
0x191a   :  { %8973 = dma.done.wait [#allocation7], 128  }
0x191b   :  { %8974 = vsyncadd [#allocation7], 4294967168 }
0x191c   :  { %7350 = vsyncpa [#allocation6], 1 }
0x191d   :  { %7351 = vsyncpa [#allocation9], 1 }
0x191e   :  { %7352 = vsyncpa [#allocation12], 1 }
0x191f   :  { %7353 = vsyncpa [#allocation15], 1 }
0x1920   :  { %7354 = vsyncpa [#allocation18], 1 }
0x1921   :  { %7355 = vsyncpa [#allocation7], 1 }

</bundles_post_ra>
